<compile_context>
chip_gen: v6e
topology: v6e:2x2x1
jax: 0.10.0
libtpu: 0.0.40
codegen_flags: <defaults>
</compile_context>

<pallas_src>
import jax
import jax.numpy as jnp
from jax.experimental import pallas as pl
from jax.experimental.pallas import tpu as pltpu

# ----------------------------- configuration --------------------------------
B, C, T = 2, 2, 8          # batch, channels, time
IDIM = 16                  # F (frequency bins) == idim
LAYERS = 2                 # LSTM layers
UNITS = 32                 # LSTM hidden size H
PROJS = 16                 # projection size of l_last
NMASK = 2                  # number of mask heads
DTYPE = jnp.float32

N = B * C                  # real parallel sequences per time step (= 4)
NP = 8                     # sublane-padded sequence count (full 8-row sublane)
H = UNITS
G = 8 * H                  # fused gate width: 2 directions x 4 gates x H = 256
TN = T * NP                # 64 time-major rows inside the kernel
OUT_COLS = 128             # lane-dense (unmasked-store) output width; real cols = NMASK*IDIM

# --------------------- weight-slab static row offsets ------------------------
# Every section starts at a multiple of 8 rows; all sections are G=256 wide.
O_WXF0 = 0                      # (IDIM, G)   layer-0 fwd input proj
O_WXB0 = O_WXF0 + IDIM          # (IDIM, G)   layer-0 bwd input proj
O_B0 = O_WXB0 + IDIM            # (1, G) in an 8-row pad: fused layer-0 bias
O_WH0 = O_B0 + 8                # (2H, G)     layer-0 block-diag recurrent
O_WXF1 = O_WH0 + 2 * H          # (2H, G)     layer-1 fwd input proj
O_WXB1 = O_WXF1 + 2 * H         # (2H, G)     layer-1 bwd input proj
O_B1 = O_WXB1 + 2 * H           # (1, G) in an 8-row pad
O_WH1 = O_B1 + 8                # (2H, G)
O_LLW = O_WH1 + 2 * H           # (2H, G)  l_last weight (cols [:PROJS] real)
O_LLB = O_LLW + 2 * H           # (1, G) in an 8-row pad (cols [:PROJS] real)
O_MW = O_LLB + 8                # (PROJS, G)  both mask heads (cols [:NMASK*IDIM] real)
O_MB = O_MW + PROJS             # (1, G) in an 8-row pad
SLAB_ROWS = O_MB + 8            # 400

_VMEM = pl.BlockSpec(memory_space=pltpu.MemorySpace.VMEM)


# ------------------------------ Pallas kernel --------------------------------
def _mask_estimator_kernel(x_ref, w_ref, out_ref, h0_scr, h1_scr, gsum_scr):
    """Fused forward: magnitude -> 2x BLSTM -> tanh(l_last) -> sigmoid(masks)."""
    s = x_ref[...]                                   # (TN, 2F): [xr | xi]
    sq = s * s
    x = jnp.sqrt(sq[:, :IDIM] + sq[:, IDIM:2 * IDIM])  # (TN, F) magnitude

    def bilstm_layer(x_in, din, o_wxf, o_wxb, o_b, o_wh, h_scr):
        # Hoisted, time-invariant input projections (one matmul per direction).
        gx_f = jnp.dot(x_in, w_ref[o_wxf:o_wxf + din, :],
                       preferred_element_type=jnp.float32)
        gx_b = jnp.dot(x_in, w_ref[o_wxb:o_wxb + din, :],
                       preferred_element_type=jnp.float32)
        bias = w_ref[o_b:o_b + 1, :]                 # fused (b_ih+b_hh) fwd+bwd
        # Hoist fwd/bwd gate-input sum out of the serial recurrence into VMEM.
        for t in range(T):
            rb = T - 1 - t
            gsum_scr[t * NP:(t + 1) * NP, :] = (
                gx_f[t * NP:(t + 1) * NP, :]
                + gx_b[rb * NP:(rb + 1) * NP, :] + bias)

        h = jnp.zeros((NP, 2 * H), dtype=jnp.float32)   # [h_fwd | h_bwd]
        c = jnp.zeros((NP, 2 * H), dtype=jnp.float32)   # [c_fwd | c_bwd]
        # Fully unrolled time loop (T=8 static): fwd walks t, bwd walks T-1-t.
        for t in range(T):
            rb = T - 1 - t
            gates = (gsum_scr[t * NP:(t + 1) * NP, :]
                     + jnp.dot(h, w_ref[o_wh:o_wh + 2 * H, :],
                               preferred_element_type=jnp.float32))
            # gate order [i, f, o, g], direction-interleaved inside each gate:
            # lanes 0:6H are the three sigmoid gates (one EUP pass), 6H:8H tanh.
            sig = jax.nn.sigmoid(gates[:, 0:6 * H])
            i_g = sig[:, 0 * H:2 * H]
            f_g = sig[:, 2 * H:4 * H]
            o_g = sig[:, 4 * H:6 * H]
            g_g = jnp.tanh(gates[:, 6 * H:8 * H])
            c = f_g * c + i_g * g_g
            h = o_g * jnp.tanh(c)
            h_scr[t * NP:(t + 1) * NP, 0:H] = h[:, 0:H]          # fwd @ t
            h_scr[rb * NP:(rb + 1) * NP, H:2 * H] = h[:, H:2 * H]  # bwd @ T-1-t
        # Layer output (TN, 2H), time-major rows, [fwd | bwd] feature order.
        return h_scr[...]

    x1 = bilstm_layer(x, IDIM, O_WXF0, O_WXB0, O_B0, O_WH0, h0_scr)
    x2 = bilstm_layer(x1, 2 * H, O_WXF1, O_WXB1, O_B1, O_WH1, h1_scr)

    proj = jnp.tanh(
        jnp.dot(x2, w_ref[O_LLW:O_LLW + 2 * H, 0:PROJS],
                preferred_element_type=jnp.float32)
        + w_ref[O_LLB:O_LLB + 1, 0:PROJS])
    masks = jax.nn.sigmoid(
        jnp.dot(proj, w_ref[O_MW:O_MW + PROJS, 0:OUT_COLS],
                preferred_element_type=jnp.float32)
        + w_ref[O_MB:O_MB + 1, 0:OUT_COLS])          # (TN, 128), cols [:32] real
    out_ref[...] = masks.astype(out_ref.dtype)


def _fused_forward_2d(x2d, slab):
    """Single grid-less pallas_call; everything resident in VMEM (2 input DMAs)."""
    return pl.pallas_call(
        _mask_estimator_kernel,
        out_shape=jax.ShapeDtypeStruct((TN, OUT_COLS), DTYPE),
        in_specs=[_VMEM, _VMEM],
        out_specs=_VMEM,
        scratch_shapes=[pltpu.VMEM((TN, 2 * H), DTYPE),   # layer-0 hidden sequence
                        pltpu.VMEM((TN, 2 * H), DTYPE),   # layer-1 hidden sequence
                        pltpu.VMEM((TN, G), DTYPE)],      # hoisted gate-input sums
    )(x2d, slab)


# ---------------------------- parameter creation -----------------------------
def init_params(key):
    """Per-direction LSTM params in conventional (w_ih, w_hh, b_ih+b_hh) form."""
    params = {"lstm_layers": []}
    k_hidden = 1.0 / jnp.sqrt(jnp.float32(UNITS))

    def uni(key, shape, scale):
        return jax.random.uniform(key, shape, DTYPE, -scale, scale)

    in_dim = IDIM
    for _ in range(LAYERS):
        layer = {}
        for direction in ("fwd", "bwd"):
            key, k1, k2, k3, k4 = jax.random.split(key, 5)
            w_ih = uni(k1, (in_dim, 4 * UNITS), k_hidden)   # gate order i,f,g,o
            w_hh = uni(k2, (UNITS, 4 * UNITS), k_hidden)
            b_ih = uni(k3, (1, 4 * UNITS), k_hidden)
            b_hh = uni(k4, (1, 4 * UNITS), k_hidden)
            layer[direction] = (w_ih, w_hh, b_ih + b_hh)
        params["lstm_layers"].append(layer)
        in_dim = 2 * UNITS   # bidirectional concat feeds the next layer

    key, k1, k2 = jax.random.split(key, 3)
    k_proj = 1.0 / jnp.sqrt(jnp.float32(2 * UNITS))
    params["l_last_w"] = uni(k1, (2 * UNITS, PROJS), k_proj)
    params["l_last_b"] = uni(k2, (1, PROJS), k_proj)

    params["mask_linears"] = []
    k_mask = 1.0 / jnp.sqrt(jnp.float32(PROJS))
    for _ in range(NMASK):
        key, k1, k2 = jax.random.split(key, 3)
        params["mask_linears"].append(
            (uni(k1, (PROJS, IDIM), k_mask), uni(k2, (1, IDIM), k_mask)))
    return params


# Source gate order is (i, f, g, o); packed order is (i, f, o, g) so all sigmoid
# gates are lane-contiguous and tanh(g) is one contiguous chunk.
_GATE_ORDER = (0, 1, 3, 2)


def _interleave(w_f, w_b):
    """(D,4H) fwd + (D,4H) bwd -> (D,8H) columns
    [i_f,i_b, f_f,f_b, o_f,o_b, g_f,g_b]."""
    cols = []
    for gk in _GATE_ORDER:
        cols.append(w_f[:, gk * H:(gk + 1) * H])
        cols.append(w_b[:, gk * H:(gk + 1) * H])
    return jnp.concatenate(cols, axis=1)


def _pad_rows(a, rows):
    return jnp.pad(a, ((0, rows - a.shape[0]), (0, 0)))


def _pad_cols(a, cols):
    return jnp.pad(a, ((0, 0), (0, cols - a.shape[1])))


def pack_params(params):
    """Pure layout transform: all weights/biases into ONE (SLAB_ROWS, G) slab."""
    sections = []
    for layer in params["lstm_layers"]:
        w_ih_f, w_hh_f, b_f = layer["fwd"]
        w_ih_b, w_hh_b, b_b = layer["bwd"]
        zx = jnp.zeros_like(w_ih_f)
        zh = jnp.zeros_like(w_hh_f)
        wx_f = _interleave(w_ih_f, zx)                # (D_in, G): bwd cols zeroed
        wx_b = _interleave(zx, w_ih_b)                # (D_in, G): fwd cols zeroed
        bias = _interleave(b_f, b_b)                  # (1, G) fused fwd+bwd bias
        # Block-diagonal recurrent weights: [h_f | h_b] (NP, 2H) @ wh -> (NP, G).
        wh = jnp.concatenate([_interleave(w_hh_f, zh),
                              _interleave(zh, w_hh_b)], axis=0)
        sections += [wx_f, wx_b, _pad_rows(bias, 8), wh]

    llw = _pad_cols(params["l_last_w"], G)                     # (2H, G)
    llb = _pad_rows(_pad_cols(params["l_last_b"], G), 8)       # (8, G)
    mw = _pad_cols(jnp.concatenate(
        [w for (w, _) in params["mask_linears"]], axis=1), G)  # (PROJS, G)
    mb = _pad_rows(_pad_cols(jnp.concatenate(
        [bb for (_, bb) in params["mask_linears"]], axis=1), G), 8)
    sections += [llw, llb, mw, mb]

    slab = jnp.concatenate(sections, axis=0)
    assert slab.shape == (SLAB_ROWS, G), slab.shape
    return slab


# ------------------------------ forward (glue) -------------------------------
@jax.jit
def mask_estimator_forward(xs_real, xs_imag, ilens, slab):
    """Pallas implementation of MaskEstimator.forward.

    Args:
      xs_real, xs_imag: (B, F, C, T) float32 (real/imag of the complex input)
      ilens: (B,) int32
      slab: packed weight slab from pack_params
    Returns:
      (tuple of masks each (B, F, C, T), ilens)
    """
    b, f, c, t = xs_real.shape
    input_length = t
    n = b * c
    # (B, F, C, T) -> (T, B*C, F): time-major, row = b*C + c within each block.
    xr = jnp.transpose(xs_real, (3, 0, 2, 1)).reshape(t, n, f)
    xi = jnp.transpose(xs_imag, (3, 0, 2, 1)).reshape(t, n, f)
    x = jnp.concatenate([xr, xi], axis=-1)            # (T, N, 2F)
    x = jnp.pad(x, ((0, 0), (0, NP - n), (0, 0)))     # pad rows to full sublane
    x2d = x.reshape(t * NP, 2 * f)

    out2d = _fused_forward_2d(x2d, slab)              # (T*NP, 128)
    out = out2d.reshape(t, NP, OUT_COLS)[:, :n, :NMASK * f]
    out = out.reshape(t, b, c, NMASK, f)

    masks = []
    for k in range(NMASK):
        m = jnp.transpose(out[:, :, :, k, :], (1, 3, 2, 0))   # (B, F, C, T), in XLA
        # NOTE: reference `mask.masked_fill(...)` result is discarded -> no-op.
        if m.shape[-1] < input_length:                         # never hit here
            m = jnp.pad(m, ((0, 0),) * 3 + ((0, input_length - m.shape[-1]),))
        masks.append(m)
    return tuple(masks), ilens


# ---------------------------------- main -------------------------------------
if __name__ == "__main__":
    key = jax.random.PRNGKey(0)
    k_params, k_re, k_im = jax.random.split(key, 3)

    params = init_params(k_params)
    slab = pack_params(params)

    xs_real = jax.random.normal(k_re, (B, IDIM, C, T), DTYPE)
    xs_imag = jax.random.normal(k_im, (B, IDIM, C, T), DTYPE)
    ilens = jnp.full((B,), T, dtype=jnp.int32)

    masks, out_ilens = mask_estimator_forward(xs_real, xs_imag, ilens, slab)
    for m in masks:
        jax.block_until_ready(m)
        assert m.shape == (B, IDIM, C, T), m.shape
    jax.block_until_ready(out_ilens)
    print("KERNEL_OK")
</pallas_src>

<mosaic_0001>
module attributes {stable_mosaic.version = 11 : i64} {
  func.func @_mask_estimator_kernel(%arg0: memref<64x32xf32, #tpu.memory_space<vmem>>, %arg1: memref<400x256xf32, #tpu.memory_space<vmem>>, %arg2: memref<64x128xf32, #tpu.memory_space<vmem>>, %arg3: memref<64x64xf32, #tpu.memory_space<vmem>>, %arg4: memref<64x64xf32, #tpu.memory_space<vmem>>, %arg5: memref<64x256xf32, #tpu.memory_space<vmem>>) attributes {dimension_semantics = [], scalar_prefetch = 0 : i64, scratch_operands = 3 : i64, tpu.core_type = #tpu.core_type<tc>} {
    %c0 = arith.constant 0 : index
    %c0_0 = arith.constant 0 : index
    %0 = vector.load %arg0[%c0, %c0_0] : memref<64x32xf32, #tpu.memory_space<vmem>>, vector<64x32xf32>
    %1 = arith.mulf %0, %0 : vector<64x32xf32>
    %2 = vector.extract_strided_slice %1 {offsets = [0, 0], sizes = [64, 16], strides = [1, 1]} : vector<64x32xf32> to vector<64x16xf32>
    %3 = vector.extract_strided_slice %1 {offsets = [0, 16], sizes = [64, 16], strides = [1, 1]} : vector<64x32xf32> to vector<64x16xf32>
    %4 = arith.addf %2, %3 : vector<64x16xf32>
    %5 = math.sqrt %4 : vector<64x16xf32>
    %c0_1 = arith.constant 0 : index
    %c0_2 = arith.constant 0 : index
    %6 = vector.load %arg1[%c0_1, %c0_2] : memref<400x256xf32, #tpu.memory_space<vmem>>, vector<16x256xf32>
    %cst = arith.constant dense<0.000000e+00> : vector<64x256xf32>
    %7 = tpu.matmul %5, %6, %cst {dimension_numbers = #tpu.dot_dimension_numbers<[1], [0], [0], [1], [0, 0, 1, 1], [], []>} : vector<64x16xf32>, vector<16x256xf32>, vector<64x256xf32> -> vector<64x256xf32>
    %c16 = arith.constant 16 : index
    %c0_3 = arith.constant 0 : index
    %8 = vector.load %arg1[%c16, %c0_3] : memref<400x256xf32, #tpu.memory_space<vmem>>, vector<16x256xf32>
    %cst_4 = arith.constant dense<0.000000e+00> : vector<64x256xf32>
    %9 = tpu.matmul %5, %8, %cst_4 {dimension_numbers = #tpu.dot_dimension_numbers<[1], [0], [0], [1], [0, 0, 1, 1], [], []>} : vector<64x16xf32>, vector<16x256xf32>, vector<64x256xf32> -> vector<64x256xf32>
    %c32 = arith.constant 32 : index
    %c0_5 = arith.constant 0 : index
    %10 = vector.load %arg1[%c32, %c0_5] : memref<400x256xf32, #tpu.memory_space<vmem>>, vector<1x256xf32>
    %11 = vector.extract_strided_slice %7 {offsets = [0, 0], sizes = [8, 256], strides = [1, 1]} : vector<64x256xf32> to vector<8x256xf32>
    %12 = vector.extract_strided_slice %9 {offsets = [56, 0], sizes = [8, 256], strides = [1, 1]} : vector<64x256xf32> to vector<8x256xf32>
    %13 = arith.addf %11, %12 : vector<8x256xf32>
    %14 = vector.broadcast %10 : vector<1x256xf32> to vector<8x256xf32>
    %15 = arith.addf %13, %14 : vector<8x256xf32>
    %c0_6 = arith.constant 0 : index
    %c0_7 = arith.constant 0 : index
    %16 = vector.load %arg5[%c0_6, %c0_7] : memref<64x256xf32, #tpu.memory_space<vmem>>, vector<8x256xf32>
    tpu.vector_store %arg5[%c0_6, %c0_7], %15 {strides = array<i32>} : memref<64x256xf32, #tpu.memory_space<vmem>>, vector<8x256xf32>,
    %17 = vector.extract_strided_slice %7 {offsets = [8, 0], sizes = [8, 256], strides = [1, 1]} : vector<64x256xf32> to vector<8x256xf32>
    %18 = vector.extract_strided_slice %9 {offsets = [48, 0], sizes = [8, 256], strides = [1, 1]} : vector<64x256xf32> to vector<8x256xf32>
    %19 = arith.addf %17, %18 : vector<8x256xf32>
    %20 = vector.broadcast %10 : vector<1x256xf32> to vector<8x256xf32>
    %21 = arith.addf %19, %20 : vector<8x256xf32>
    %c8 = arith.constant 8 : index
    %c0_8 = arith.constant 0 : index
    %22 = vector.load %arg5[%c8, %c0_8] : memref<64x256xf32, #tpu.memory_space<vmem>>, vector<8x256xf32>
    tpu.vector_store %arg5[%c8, %c0_8], %21 {strides = array<i32>} : memref<64x256xf32, #tpu.memory_space<vmem>>, vector<8x256xf32>,
    %23 = vector.extract_strided_slice %7 {offsets = [16, 0], sizes = [8, 256], strides = [1, 1]} : vector<64x256xf32> to vector<8x256xf32>
    %24 = vector.extract_strided_slice %9 {offsets = [40, 0], sizes = [8, 256], strides = [1, 1]} : vector<64x256xf32> to vector<8x256xf32>
    %25 = arith.addf %23, %24 : vector<8x256xf32>
    %26 = vector.broadcast %10 : vector<1x256xf32> to vector<8x256xf32>
    %27 = arith.addf %25, %26 : vector<8x256xf32>
    %c16_9 = arith.constant 16 : index
    %c0_10 = arith.constant 0 : index
    %28 = vector.load %arg5[%c16_9, %c0_10] : memref<64x256xf32, #tpu.memory_space<vmem>>, vector<8x256xf32>
    tpu.vector_store %arg5[%c16_9, %c0_10], %27 {strides = array<i32>} : memref<64x256xf32, #tpu.memory_space<vmem>>, vector<8x256xf32>,
    %29 = vector.extract_strided_slice %7 {offsets = [24, 0], sizes = [8, 256], strides = [1, 1]} : vector<64x256xf32> to vector<8x256xf32>
    %30 = vector.extract_strided_slice %9 {offsets = [32, 0], sizes = [8, 256], strides = [1, 1]} : vector<64x256xf32> to vector<8x256xf32>
    %31 = arith.addf %29, %30 : vector<8x256xf32>
    %32 = vector.broadcast %10 : vector<1x256xf32> to vector<8x256xf32>
    %33 = arith.addf %31, %32 : vector<8x256xf32>
    %c24 = arith.constant 24 : index
    %c0_11 = arith.constant 0 : index
    %34 = vector.load %arg5[%c24, %c0_11] : memref<64x256xf32, #tpu.memory_space<vmem>>, vector<8x256xf32>
    tpu.vector_store %arg5[%c24, %c0_11], %33 {strides = array<i32>} : memref<64x256xf32, #tpu.memory_space<vmem>>, vector<8x256xf32>,
    %35 = vector.extract_strided_slice %7 {offsets = [32, 0], sizes = [8, 256], strides = [1, 1]} : vector<64x256xf32> to vector<8x256xf32>
    %36 = vector.extract_strided_slice %9 {offsets = [24, 0], sizes = [8, 256], strides = [1, 1]} : vector<64x256xf32> to vector<8x256xf32>
    %37 = arith.addf %35, %36 : vector<8x256xf32>
    %38 = vector.broadcast %10 : vector<1x256xf32> to vector<8x256xf32>
    %39 = arith.addf %37, %38 : vector<8x256xf32>
    %c32_12 = arith.constant 32 : index
    %c0_13 = arith.constant 0 : index
    %40 = vector.load %arg5[%c32_12, %c0_13] : memref<64x256xf32, #tpu.memory_space<vmem>>, vector<8x256xf32>
    tpu.vector_store %arg5[%c32_12, %c0_13], %39 {strides = array<i32>} : memref<64x256xf32, #tpu.memory_space<vmem>>, vector<8x256xf32>,
    %41 = vector.extract_strided_slice %7 {offsets = [40, 0], sizes = [8, 256], strides = [1, 1]} : vector<64x256xf32> to vector<8x256xf32>
    %42 = vector.extract_strided_slice %9 {offsets = [16, 0], sizes = [8, 256], strides = [1, 1]} : vector<64x256xf32> to vector<8x256xf32>
    %43 = arith.addf %41, %42 : vector<8x256xf32>
    %44 = vector.broadcast %10 : vector<1x256xf32> to vector<8x256xf32>
    %45 = arith.addf %43, %44 : vector<8x256xf32>
    %c40 = arith.constant 40 : index
    %c0_14 = arith.constant 0 : index
    %46 = vector.load %arg5[%c40, %c0_14] : memref<64x256xf32, #tpu.memory_space<vmem>>, vector<8x256xf32>
    tpu.vector_store %arg5[%c40, %c0_14], %45 {strides = array<i32>} : memref<64x256xf32, #tpu.memory_space<vmem>>, vector<8x256xf32>,
    %47 = vector.extract_strided_slice %7 {offsets = [48, 0], sizes = [8, 256], strides = [1, 1]} : vector<64x256xf32> to vector<8x256xf32>
    %48 = vector.extract_strided_slice %9 {offsets = [8, 0], sizes = [8, 256], strides = [1, 1]} : vector<64x256xf32> to vector<8x256xf32>
    %49 = arith.addf %47, %48 : vector<8x256xf32>
    %50 = vector.broadcast %10 : vector<1x256xf32> to vector<8x256xf32>
    %51 = arith.addf %49, %50 : vector<8x256xf32>
    %c48 = arith.constant 48 : index
    %c0_15 = arith.constant 0 : index
    %52 = vector.load %arg5[%c48, %c0_15] : memref<64x256xf32, #tpu.memory_space<vmem>>, vector<8x256xf32>
    tpu.vector_store %arg5[%c48, %c0_15], %51 {strides = array<i32>} : memref<64x256xf32, #tpu.memory_space<vmem>>, vector<8x256xf32>,
    %53 = vector.extract_strided_slice %7 {offsets = [56, 0], sizes = [8, 256], strides = [1, 1]} : vector<64x256xf32> to vector<8x256xf32>
    %54 = vector.extract_strided_slice %9 {offsets = [0, 0], sizes = [8, 256], strides = [1, 1]} : vector<64x256xf32> to vector<8x256xf32>
    %55 = arith.addf %53, %54 : vector<8x256xf32>
    %56 = vector.broadcast %10 : vector<1x256xf32> to vector<8x256xf32>
    %57 = arith.addf %55, %56 : vector<8x256xf32>
    %c56 = arith.constant 56 : index
    %c0_16 = arith.constant 0 : index
    %58 = vector.load %arg5[%c56, %c0_16] : memref<64x256xf32, #tpu.memory_space<vmem>>, vector<8x256xf32>
    tpu.vector_store %arg5[%c56, %c0_16], %57 {strides = array<i32>} : memref<64x256xf32, #tpu.memory_space<vmem>>, vector<8x256xf32>,
    %cst_17 = arith.constant 0.000000e+00 : f32
    %59 = vector.broadcast %cst_17 : f32 to vector<8x64xf32>
    %cst_18 = arith.constant 0.000000e+00 : f32
    %60 = vector.broadcast %cst_18 : f32 to vector<8x64xf32>
    %c0_19 = arith.constant 0 : index
    %c0_20 = arith.constant 0 : index
    %61 = vector.load %arg5[%c0_19, %c0_20] : memref<64x256xf32, #tpu.memory_space<vmem>>, vector<8x256xf32>
    %c40_21 = arith.constant 40 : index
    %c0_22 = arith.constant 0 : index
    %62 = vector.load %arg1[%c40_21, %c0_22] : memref<400x256xf32, #tpu.memory_space<vmem>>, vector<64x256xf32>
    %cst_23 = arith.constant dense<0.000000e+00> : vector<8x256xf32>
    %63 = tpu.matmul %59, %62, %cst_23 {dimension_numbers = #tpu.dot_dimension_numbers<[1], [0], [0], [1], [0, 0, 1, 1], [], []>} : vector<8x64xf32>, vector<64x256xf32>, vector<8x256xf32> -> vector<8x256xf32>
    %64 = arith.addf %61, %63 : vector<8x256xf32>
    %65 = vector.extract_strided_slice %64 {offsets = [0, 0], sizes = [8, 192], strides = [1, 1]} : vector<8x256xf32> to vector<8x192xf32>
    %66 = arith.negf %65 : vector<8x192xf32>
    %67 = math.exp %66 : vector<8x192xf32>
    %cst_24 = arith.constant 1.000000e+00 : f32
    %68 = vector.broadcast %cst_24 : f32 to vector<8x192xf32>
    %69 = arith.addf %68, %67 : vector<8x192xf32>
    %70 = arith.divf %68, %69 : vector<8x192xf32>
    %71 = vector.extract_strided_slice %70 {offsets = [0, 0], sizes = [8, 64], strides = [1, 1]} : vector<8x192xf32> to vector<8x64xf32>
    %72 = vector.extract_strided_slice %70 {offsets = [0, 64], sizes = [8, 64], strides = [1, 1]} : vector<8x192xf32> to vector<8x64xf32>
    %73 = vector.extract_strided_slice %70 {offsets = [0, 128], sizes = [8, 64], strides = [1, 1]} : vector<8x192xf32> to vector<8x64xf32>
    %74 = vector.extract_strided_slice %64 {offsets = [0, 192], sizes = [8, 64], strides = [1, 1]} : vector<8x256xf32> to vector<8x64xf32>
    %75 = math.tanh %74 : vector<8x64xf32>
    %76 = arith.mulf %72, %60 : vector<8x64xf32>
    %77 = arith.mulf %71, %75 : vector<8x64xf32>
    %78 = arith.addf %76, %77 : vector<8x64xf32>
    %79 = math.tanh %78 : vector<8x64xf32>
    %80 = arith.mulf %73, %79 : vector<8x64xf32>
    %81 = vector.extract_strided_slice %80 {offsets = [0, 0], sizes = [8, 32], strides = [1, 1]} : vector<8x64xf32> to vector<8x32xf32>
    %c0_25 = arith.constant 0 : index
    %c0_26 = arith.constant 0 : index
    %82 = vector.load %arg3[%c0_25, %c0_26] : memref<64x64xf32, #tpu.memory_space<vmem>>, vector<8x32xf32>
    tpu.vector_store %arg3[%c0_25, %c0_26], %81 {strides = array<i32>} : memref<64x64xf32, #tpu.memory_space<vmem>>, vector<8x32xf32>,
    %83 = vector.extract_strided_slice %80 {offsets = [0, 32], sizes = [8, 32], strides = [1, 1]} : vector<8x64xf32> to vector<8x32xf32>
    %c56_27 = arith.constant 56 : index
    %c32_28 = arith.constant 32 : index
    %84 = vector.load %arg3[%c56_27, %c32_28] : memref<64x64xf32, #tpu.memory_space<vmem>>, vector<8x32xf32>
    tpu.vector_store %arg3[%c56_27, %c32_28], %83 {strides = array<i32>} : memref<64x64xf32, #tpu.memory_space<vmem>>, vector<8x32xf32>,
    %c8_29 = arith.constant 8 : index
    %c0_30 = arith.constant 0 : index
    %85 = vector.load %arg5[%c8_29, %c0_30] : memref<64x256xf32, #tpu.memory_space<vmem>>, vector<8x256xf32>
    %c40_31 = arith.constant 40 : index
    %c0_32 = arith.constant 0 : index
    %86 = vector.load %arg1[%c40_31, %c0_32] : memref<400x256xf32, #tpu.memory_space<vmem>>, vector<64x256xf32>
    %cst_33 = arith.constant dense<0.000000e+00> : vector<8x256xf32>
    %87 = tpu.matmul %80, %86, %cst_33 {dimension_numbers = #tpu.dot_dimension_numbers<[1], [0], [0], [1], [0, 0, 1, 1], [], []>} : vector<8x64xf32>, vector<64x256xf32>, vector<8x256xf32> -> vector<8x256xf32>
    %88 = arith.addf %85, %87 : vector<8x256xf32>
    %89 = vector.extract_strided_slice %88 {offsets = [0, 0], sizes = [8, 192], strides = [1, 1]} : vector<8x256xf32> to vector<8x192xf32>
    %90 = arith.negf %89 : vector<8x192xf32>
    %91 = math.exp %90 : vector<8x192xf32>
    %cst_34 = arith.constant 1.000000e+00 : f32
    %92 = vector.broadcast %cst_34 : f32 to vector<8x192xf32>
    %93 = arith.addf %92, %91 : vector<8x192xf32>
    %94 = arith.divf %92, %93 : vector<8x192xf32>
    %95 = vector.extract_strided_slice %94 {offsets = [0, 0], sizes = [8, 64], strides = [1, 1]} : vector<8x192xf32> to vector<8x64xf32>
    %96 = vector.extract_strided_slice %94 {offsets = [0, 64], sizes = [8, 64], strides = [1, 1]} : vector<8x192xf32> to vector<8x64xf32>
    %97 = vector.extract_strided_slice %94 {offsets = [0, 128], sizes = [8, 64], strides = [1, 1]} : vector<8x192xf32> to vector<8x64xf32>
    %98 = vector.extract_strided_slice %88 {offsets = [0, 192], sizes = [8, 64], strides = [1, 1]} : vector<8x256xf32> to vector<8x64xf32>
    %99 = math.tanh %98 : vector<8x64xf32>
    %100 = arith.mulf %96, %78 : vector<8x64xf32>
    %101 = arith.mulf %95, %99 : vector<8x64xf32>
    %102 = arith.addf %100, %101 : vector<8x64xf32>
    %103 = math.tanh %102 : vector<8x64xf32>
    %104 = arith.mulf %97, %103 : vector<8x64xf32>
    %105 = vector.extract_strided_slice %104 {offsets = [0, 0], sizes = [8, 32], strides = [1, 1]} : vector<8x64xf32> to vector<8x32xf32>
    %c8_35 = arith.constant 8 : index
    %c0_36 = arith.constant 0 : index
    %106 = vector.load %arg3[%c8_35, %c0_36] : memref<64x64xf32, #tpu.memory_space<vmem>>, vector<8x32xf32>
    tpu.vector_store %arg3[%c8_35, %c0_36], %105 {strides = array<i32>} : memref<64x64xf32, #tpu.memory_space<vmem>>, vector<8x32xf32>,
    %107 = vector.extract_strided_slice %104 {offsets = [0, 32], sizes = [8, 32], strides = [1, 1]} : vector<8x64xf32> to vector<8x32xf32>
    %c48_37 = arith.constant 48 : index
    %c32_38 = arith.constant 32 : index
    %108 = vector.load %arg3[%c48_37, %c32_38] : memref<64x64xf32, #tpu.memory_space<vmem>>, vector<8x32xf32>
    tpu.vector_store %arg3[%c48_37, %c32_38], %107 {strides = array<i32>} : memref<64x64xf32, #tpu.memory_space<vmem>>, vector<8x32xf32>,
    %c16_39 = arith.constant 16 : index
    %c0_40 = arith.constant 0 : index
    %109 = vector.load %arg5[%c16_39, %c0_40] : memref<64x256xf32, #tpu.memory_space<vmem>>, vector<8x256xf32>
    %c40_41 = arith.constant 40 : index
    %c0_42 = arith.constant 0 : index
    %110 = vector.load %arg1[%c40_41, %c0_42] : memref<400x256xf32, #tpu.memory_space<vmem>>, vector<64x256xf32>
    %cst_43 = arith.constant dense<0.000000e+00> : vector<8x256xf32>
    %111 = tpu.matmul %104, %110, %cst_43 {dimension_numbers = #tpu.dot_dimension_numbers<[1], [0], [0], [1], [0, 0, 1, 1], [], []>} : vector<8x64xf32>, vector<64x256xf32>, vector<8x256xf32> -> vector<8x256xf32>
    %112 = arith.addf %109, %111 : vector<8x256xf32>
    %113 = vector.extract_strided_slice %112 {offsets = [0, 0], sizes = [8, 192], strides = [1, 1]} : vector<8x256xf32> to vector<8x192xf32>
    %114 = arith.negf %113 : vector<8x192xf32>
    %115 = math.exp %114 : vector<8x192xf32>
    %cst_44 = arith.constant 1.000000e+00 : f32
    %116 = vector.broadcast %cst_44 : f32 to vector<8x192xf32>
    %117 = arith.addf %116, %115 : vector<8x192xf32>
    %118 = arith.divf %116, %117 : vector<8x192xf32>
    %119 = vector.extract_strided_slice %118 {offsets = [0, 0], sizes = [8, 64], strides = [1, 1]} : vector<8x192xf32> to vector<8x64xf32>
    %120 = vector.extract_strided_slice %118 {offsets = [0, 64], sizes = [8, 64], strides = [1, 1]} : vector<8x192xf32> to vector<8x64xf32>
    %121 = vector.extract_strided_slice %118 {offsets = [0, 128], sizes = [8, 64], strides = [1, 1]} : vector<8x192xf32> to vector<8x64xf32>
    %122 = vector.extract_strided_slice %112 {offsets = [0, 192], sizes = [8, 64], strides = [1, 1]} : vector<8x256xf32> to vector<8x64xf32>
    %123 = math.tanh %122 : vector<8x64xf32>
    %124 = arith.mulf %120, %102 : vector<8x64xf32>
    %125 = arith.mulf %119, %123 : vector<8x64xf32>
    %126 = arith.addf %124, %125 : vector<8x64xf32>
    %127 = math.tanh %126 : vector<8x64xf32>
    %128 = arith.mulf %121, %127 : vector<8x64xf32>
    %129 = vector.extract_strided_slice %128 {offsets = [0, 0], sizes = [8, 32], strides = [1, 1]} : vector<8x64xf32> to vector<8x32xf32>
    %c16_45 = arith.constant 16 : index
    %c0_46 = arith.constant 0 : index
    %130 = vector.load %arg3[%c16_45, %c0_46] : memref<64x64xf32, #tpu.memory_space<vmem>>, vector<8x32xf32>
    tpu.vector_store %arg3[%c16_45, %c0_46], %129 {strides = array<i32>} : memref<64x64xf32, #tpu.memory_space<vmem>>, vector<8x32xf32>,
    %131 = vector.extract_strided_slice %128 {offsets = [0, 32], sizes = [8, 32], strides = [1, 1]} : vector<8x64xf32> to vector<8x32xf32>
    %c40_47 = arith.constant 40 : index
    %c32_48 = arith.constant 32 : index
    %132 = vector.load %arg3[%c40_47, %c32_48] : memref<64x64xf32, #tpu.memory_space<vmem>>, vector<8x32xf32>
    tpu.vector_store %arg3[%c40_47, %c32_48], %131 {strides = array<i32>} : memref<64x64xf32, #tpu.memory_space<vmem>>, vector<8x32xf32>,
    %c24_49 = arith.constant 24 : index
    %c0_50 = arith.constant 0 : index
    %133 = vector.load %arg5[%c24_49, %c0_50] : memref<64x256xf32, #tpu.memory_space<vmem>>, vector<8x256xf32>
    %c40_51 = arith.constant 40 : index
    %c0_52 = arith.constant 0 : index
    %134 = vector.load %arg1[%c40_51, %c0_52] : memref<400x256xf32, #tpu.memory_space<vmem>>, vector<64x256xf32>
    %cst_53 = arith.constant dense<0.000000e+00> : vector<8x256xf32>
    %135 = tpu.matmul %128, %134, %cst_53 {dimension_numbers = #tpu.dot_dimension_numbers<[1], [0], [0], [1], [0, 0, 1, 1], [], []>} : vector<8x64xf32>, vector<64x256xf32>, vector<8x256xf32> -> vector<8x256xf32>
    %136 = arith.addf %133, %135 : vector<8x256xf32>
    %137 = vector.extract_strided_slice %136 {offsets = [0, 0], sizes = [8, 192], strides = [1, 1]} : vector<8x256xf32> to vector<8x192xf32>
    %138 = arith.negf %137 : vector<8x192xf32>
    %139 = math.exp %138 : vector<8x192xf32>
    %cst_54 = arith.constant 1.000000e+00 : f32
    %140 = vector.broadcast %cst_54 : f32 to vector<8x192xf32>
    %141 = arith.addf %140, %139 : vector<8x192xf32>
    %142 = arith.divf %140, %141 : vector<8x192xf32>
    %143 = vector.extract_strided_slice %142 {offsets = [0, 0], sizes = [8, 64], strides = [1, 1]} : vector<8x192xf32> to vector<8x64xf32>
    %144 = vector.extract_strided_slice %142 {offsets = [0, 64], sizes = [8, 64], strides = [1, 1]} : vector<8x192xf32> to vector<8x64xf32>
    %145 = vector.extract_strided_slice %142 {offsets = [0, 128], sizes = [8, 64], strides = [1, 1]} : vector<8x192xf32> to vector<8x64xf32>
    %146 = vector.extract_strided_slice %136 {offsets = [0, 192], sizes = [8, 64], strides = [1, 1]} : vector<8x256xf32> to vector<8x64xf32>
    %147 = math.tanh %146 : vector<8x64xf32>
    %148 = arith.mulf %144, %126 : vector<8x64xf32>
    %149 = arith.mulf %143, %147 : vector<8x64xf32>
    %150 = arith.addf %148, %149 : vector<8x64xf32>
    %151 = math.tanh %150 : vector<8x64xf32>
    %152 = arith.mulf %145, %151 : vector<8x64xf32>
    %153 = vector.extract_strided_slice %152 {offsets = [0, 0], sizes = [8, 32], strides = [1, 1]} : vector<8x64xf32> to vector<8x32xf32>
    %c24_55 = arith.constant 24 : index
    %c0_56 = arith.constant 0 : index
    %154 = vector.load %arg3[%c24_55, %c0_56] : memref<64x64xf32, #tpu.memory_space<vmem>>, vector<8x32xf32>
    tpu.vector_store %arg3[%c24_55, %c0_56], %153 {strides = array<i32>} : memref<64x64xf32, #tpu.memory_space<vmem>>, vector<8x32xf32>,
    %155 = vector.extract_strided_slice %152 {offsets = [0, 32], sizes = [8, 32], strides = [1, 1]} : vector<8x64xf32> to vector<8x32xf32>
    %c32_57 = arith.constant 32 : index
    %c32_58 = arith.constant 32 : index
    %156 = vector.load %arg3[%c32_57, %c32_58] : memref<64x64xf32, #tpu.memory_space<vmem>>, vector<8x32xf32>
    tpu.vector_store %arg3[%c32_57, %c32_58], %155 {strides = array<i32>} : memref<64x64xf32, #tpu.memory_space<vmem>>, vector<8x32xf32>,
    %c32_59 = arith.constant 32 : index
    %c0_60 = arith.constant 0 : index
    %157 = vector.load %arg5[%c32_59, %c0_60] : memref<64x256xf32, #tpu.memory_space<vmem>>, vector<8x256xf32>
    %c40_61 = arith.constant 40 : index
    %c0_62 = arith.constant 0 : index
    %158 = vector.load %arg1[%c40_61, %c0_62] : memref<400x256xf32, #tpu.memory_space<vmem>>, vector<64x256xf32>
    %cst_63 = arith.constant dense<0.000000e+00> : vector<8x256xf32>
    %159 = tpu.matmul %152, %158, %cst_63 {dimension_numbers = #tpu.dot_dimension_numbers<[1], [0], [0], [1], [0, 0, 1, 1], [], []>} : vector<8x64xf32>, vector<64x256xf32>, vector<8x256xf32> -> vector<8x256xf32>
    %160 = arith.addf %157, %159 : vector<8x256xf32>
    %161 = vector.extract_strided_slice %160 {offsets = [0, 0], sizes = [8, 192], strides = [1, 1]} : vector<8x256xf32> to vector<8x192xf32>
    %162 = arith.negf %161 : vector<8x192xf32>
    %163 = math.exp %162 : vector<8x192xf32>
    %cst_64 = arith.constant 1.000000e+00 : f32
    %164 = vector.broadcast %cst_64 : f32 to vector<8x192xf32>
    %165 = arith.addf %164, %163 : vector<8x192xf32>
    %166 = arith.divf %164, %165 : vector<8x192xf32>
    %167 = vector.extract_strided_slice %166 {offsets = [0, 0], sizes = [8, 64], strides = [1, 1]} : vector<8x192xf32> to vector<8x64xf32>
    %168 = vector.extract_strided_slice %166 {offsets = [0, 64], sizes = [8, 64], strides = [1, 1]} : vector<8x192xf32> to vector<8x64xf32>
    %169 = vector.extract_strided_slice %166 {offsets = [0, 128], sizes = [8, 64], strides = [1, 1]} : vector<8x192xf32> to vector<8x64xf32>
    %170 = vector.extract_strided_slice %160 {offsets = [0, 192], sizes = [8, 64], strides = [1, 1]} : vector<8x256xf32> to vector<8x64xf32>
    %171 = math.tanh %170 : vector<8x64xf32>
    %172 = arith.mulf %168, %150 : vector<8x64xf32>
    %173 = arith.mulf %167, %171 : vector<8x64xf32>
    %174 = arith.addf %172, %173 : vector<8x64xf32>
    %175 = math.tanh %174 : vector<8x64xf32>
    %176 = arith.mulf %169, %175 : vector<8x64xf32>
    %177 = vector.extract_strided_slice %176 {offsets = [0, 0], sizes = [8, 32], strides = [1, 1]} : vector<8x64xf32> to vector<8x32xf32>
    %c32_65 = arith.constant 32 : index
    %c0_66 = arith.constant 0 : index
    %178 = vector.load %arg3[%c32_65, %c0_66] : memref<64x64xf32, #tpu.memory_space<vmem>>, vector<8x32xf32>
    tpu.vector_store %arg3[%c32_65, %c0_66], %177 {strides = array<i32>} : memref<64x64xf32, #tpu.memory_space<vmem>>, vector<8x32xf32>,
    %179 = vector.extract_strided_slice %176 {offsets = [0, 32], sizes = [8, 32], strides = [1, 1]} : vector<8x64xf32> to vector<8x32xf32>
    %c24_67 = arith.constant 24 : index
    %c32_68 = arith.constant 32 : index
    %180 = vector.load %arg3[%c24_67, %c32_68] : memref<64x64xf32, #tpu.memory_space<vmem>>, vector<8x32xf32>
    tpu.vector_store %arg3[%c24_67, %c32_68], %179 {strides = array<i32>} : memref<64x64xf32, #tpu.memory_space<vmem>>, vector<8x32xf32>,
    %c40_69 = arith.constant 40 : index
    %c0_70 = arith.constant 0 : index
    %181 = vector.load %arg5[%c40_69, %c0_70] : memref<64x256xf32, #tpu.memory_space<vmem>>, vector<8x256xf32>
    %c40_71 = arith.constant 40 : index
    %c0_72 = arith.constant 0 : index
    %182 = vector.load %arg1[%c40_71, %c0_72] : memref<400x256xf32, #tpu.memory_space<vmem>>, vector<64x256xf32>
    %cst_73 = arith.constant dense<0.000000e+00> : vector<8x256xf32>
    %183 = tpu.matmul %176, %182, %cst_73 {dimension_numbers = #tpu.dot_dimension_numbers<[1], [0], [0], [1], [0, 0, 1, 1], [], []>} : vector<8x64xf32>, vector<64x256xf32>, vector<8x256xf32> -> vector<8x256xf32>
    %184 = arith.addf %181, %183 : vector<8x256xf32>
    %185 = vector.extract_strided_slice %184 {offsets = [0, 0], sizes = [8, 192], strides = [1, 1]} : vector<8x256xf32> to vector<8x192xf32>
    %186 = arith.negf %185 : vector<8x192xf32>
    %187 = math.exp %186 : vector<8x192xf32>
    %cst_74 = arith.constant 1.000000e+00 : f32
    %188 = vector.broadcast %cst_74 : f32 to vector<8x192xf32>
    %189 = arith.addf %188, %187 : vector<8x192xf32>
    %190 = arith.divf %188, %189 : vector<8x192xf32>
    %191 = vector.extract_strided_slice %190 {offsets = [0, 0], sizes = [8, 64], strides = [1, 1]} : vector<8x192xf32> to vector<8x64xf32>
    %192 = vector.extract_strided_slice %190 {offsets = [0, 64], sizes = [8, 64], strides = [1, 1]} : vector<8x192xf32> to vector<8x64xf32>
    %193 = vector.extract_strided_slice %190 {offsets = [0, 128], sizes = [8, 64], strides = [1, 1]} : vector<8x192xf32> to vector<8x64xf32>
    %194 = vector.extract_strided_slice %184 {offsets = [0, 192], sizes = [8, 64], strides = [1, 1]} : vector<8x256xf32> to vector<8x64xf32>
    %195 = math.tanh %194 : vector<8x64xf32>
    %196 = arith.mulf %192, %174 : vector<8x64xf32>
    %197 = arith.mulf %191, %195 : vector<8x64xf32>
    %198 = arith.addf %196, %197 : vector<8x64xf32>
    %199 = math.tanh %198 : vector<8x64xf32>
    %200 = arith.mulf %193, %199 : vector<8x64xf32>
    %201 = vector.extract_strided_slice %200 {offsets = [0, 0], sizes = [8, 32], strides = [1, 1]} : vector<8x64xf32> to vector<8x32xf32>
    %c40_75 = arith.constant 40 : index
    %c0_76 = arith.constant 0 : index
    %202 = vector.load %arg3[%c40_75, %c0_76] : memref<64x64xf32, #tpu.memory_space<vmem>>, vector<8x32xf32>
    tpu.vector_store %arg3[%c40_75, %c0_76], %201 {strides = array<i32>} : memref<64x64xf32, #tpu.memory_space<vmem>>, vector<8x32xf32>,
    %203 = vector.extract_strided_slice %200 {offsets = [0, 32], sizes = [8, 32], strides = [1, 1]} : vector<8x64xf32> to vector<8x32xf32>
    %c16_77 = arith.constant 16 : index
    %c32_78 = arith.constant 32 : index
    %204 = vector.load %arg3[%c16_77, %c32_78] : memref<64x64xf32, #tpu.memory_space<vmem>>, vector<8x32xf32>
    tpu.vector_store %arg3[%c16_77, %c32_78], %203 {strides = array<i32>} : memref<64x64xf32, #tpu.memory_space<vmem>>, vector<8x32xf32>,
    %c48_79 = arith.constant 48 : index
    %c0_80 = arith.constant 0 : index
    %205 = vector.load %arg5[%c48_79, %c0_80] : memref<64x256xf32, #tpu.memory_space<vmem>>, vector<8x256xf32>
    %c40_81 = arith.constant 40 : index
    %c0_82 = arith.constant 0 : index
    %206 = vector.load %arg1[%c40_81, %c0_82] : memref<400x256xf32, #tpu.memory_space<vmem>>, vector<64x256xf32>
    %cst_83 = arith.constant dense<0.000000e+00> : vector<8x256xf32>
    %207 = tpu.matmul %200, %206, %cst_83 {dimension_numbers = #tpu.dot_dimension_numbers<[1], [0], [0], [1], [0, 0, 1, 1], [], []>} : vector<8x64xf32>, vector<64x256xf32>, vector<8x256xf32> -> vector<8x256xf32>
    %208 = arith.addf %205, %207 : vector<8x256xf32>
    %209 = vector.extract_strided_slice %208 {offsets = [0, 0], sizes = [8, 192], strides = [1, 1]} : vector<8x256xf32> to vector<8x192xf32>
    %210 = arith.negf %209 : vector<8x192xf32>
    %211 = math.exp %210 : vector<8x192xf32>
    %cst_84 = arith.constant 1.000000e+00 : f32
    %212 = vector.broadcast %cst_84 : f32 to vector<8x192xf32>
    %213 = arith.addf %212, %211 : vector<8x192xf32>
    %214 = arith.divf %212, %213 : vector<8x192xf32>
    %215 = vector.extract_strided_slice %214 {offsets = [0, 0], sizes = [8, 64], strides = [1, 1]} : vector<8x192xf32> to vector<8x64xf32>
    %216 = vector.extract_strided_slice %214 {offsets = [0, 64], sizes = [8, 64], strides = [1, 1]} : vector<8x192xf32> to vector<8x64xf32>
    %217 = vector.extract_strided_slice %214 {offsets = [0, 128], sizes = [8, 64], strides = [1, 1]} : vector<8x192xf32> to vector<8x64xf32>
    %218 = vector.extract_strided_slice %208 {offsets = [0, 192], sizes = [8, 64], strides = [1, 1]} : vector<8x256xf32> to vector<8x64xf32>
    %219 = math.tanh %218 : vector<8x64xf32>
    %220 = arith.mulf %216, %198 : vector<8x64xf32>
    %221 = arith.mulf %215, %219 : vector<8x64xf32>
    %222 = arith.addf %220, %221 : vector<8x64xf32>
    %223 = math.tanh %222 : vector<8x64xf32>
    %224 = arith.mulf %217, %223 : vector<8x64xf32>
    %225 = vector.extract_strided_slice %224 {offsets = [0, 0], sizes = [8, 32], strides = [1, 1]} : vector<8x64xf32> to vector<8x32xf32>
    %c48_85 = arith.constant 48 : index
    %c0_86 = arith.constant 0 : index
    %226 = vector.load %arg3[%c48_85, %c0_86] : memref<64x64xf32, #tpu.memory_space<vmem>>, vector<8x32xf32>
    tpu.vector_store %arg3[%c48_85, %c0_86], %225 {strides = array<i32>} : memref<64x64xf32, #tpu.memory_space<vmem>>, vector<8x32xf32>,
    %227 = vector.extract_strided_slice %224 {offsets = [0, 32], sizes = [8, 32], strides = [1, 1]} : vector<8x64xf32> to vector<8x32xf32>
    %c8_87 = arith.constant 8 : index
    %c32_88 = arith.constant 32 : index
    %228 = vector.load %arg3[%c8_87, %c32_88] : memref<64x64xf32, #tpu.memory_space<vmem>>, vector<8x32xf32>
    tpu.vector_store %arg3[%c8_87, %c32_88], %227 {strides = array<i32>} : memref<64x64xf32, #tpu.memory_space<vmem>>, vector<8x32xf32>,
    %c56_89 = arith.constant 56 : index
    %c0_90 = arith.constant 0 : index
    %229 = vector.load %arg5[%c56_89, %c0_90] : memref<64x256xf32, #tpu.memory_space<vmem>>, vector<8x256xf32>
    %c40_91 = arith.constant 40 : index
    %c0_92 = arith.constant 0 : index
    %230 = vector.load %arg1[%c40_91, %c0_92] : memref<400x256xf32, #tpu.memory_space<vmem>>, vector<64x256xf32>
    %cst_93 = arith.constant dense<0.000000e+00> : vector<8x256xf32>
    %231 = tpu.matmul %224, %230, %cst_93 {dimension_numbers = #tpu.dot_dimension_numbers<[1], [0], [0], [1], [0, 0, 1, 1], [], []>} : vector<8x64xf32>, vector<64x256xf32>, vector<8x256xf32> -> vector<8x256xf32>
    %232 = arith.addf %229, %231 : vector<8x256xf32>
    %233 = vector.extract_strided_slice %232 {offsets = [0, 0], sizes = [8, 192], strides = [1, 1]} : vector<8x256xf32> to vector<8x192xf32>
    %234 = arith.negf %233 : vector<8x192xf32>
    %235 = math.exp %234 : vector<8x192xf32>
    %cst_94 = arith.constant 1.000000e+00 : f32
    %236 = vector.broadcast %cst_94 : f32 to vector<8x192xf32>
    %237 = arith.addf %236, %235 : vector<8x192xf32>
    %238 = arith.divf %236, %237 : vector<8x192xf32>
    %239 = vector.extract_strided_slice %238 {offsets = [0, 0], sizes = [8, 64], strides = [1, 1]} : vector<8x192xf32> to vector<8x64xf32>
    %240 = vector.extract_strided_slice %238 {offsets = [0, 64], sizes = [8, 64], strides = [1, 1]} : vector<8x192xf32> to vector<8x64xf32>
    %241 = vector.extract_strided_slice %238 {offsets = [0, 128], sizes = [8, 64], strides = [1, 1]} : vector<8x192xf32> to vector<8x64xf32>
    %242 = vector.extract_strided_slice %232 {offsets = [0, 192], sizes = [8, 64], strides = [1, 1]} : vector<8x256xf32> to vector<8x64xf32>
    %243 = math.tanh %242 : vector<8x64xf32>
    %244 = arith.mulf %240, %222 : vector<8x64xf32>
    %245 = arith.mulf %239, %243 : vector<8x64xf32>
    %246 = arith.addf %244, %245 : vector<8x64xf32>
    %247 = math.tanh %246 : vector<8x64xf32>
    %248 = arith.mulf %241, %247 : vector<8x64xf32>
    %249 = vector.extract_strided_slice %248 {offsets = [0, 0], sizes = [8, 32], strides = [1, 1]} : vector<8x64xf32> to vector<8x32xf32>
    %c56_95 = arith.constant 56 : index
    %c0_96 = arith.constant 0 : index
    %250 = vector.load %arg3[%c56_95, %c0_96] : memref<64x64xf32, #tpu.memory_space<vmem>>, vector<8x32xf32>
    tpu.vector_store %arg3[%c56_95, %c0_96], %249 {strides = array<i32>} : memref<64x64xf32, #tpu.memory_space<vmem>>, vector<8x32xf32>,
    %251 = vector.extract_strided_slice %248 {offsets = [0, 32], sizes = [8, 32], strides = [1, 1]} : vector<8x64xf32> to vector<8x32xf32>
    %c0_97 = arith.constant 0 : index
    %c32_98 = arith.constant 32 : index
    %252 = vector.load %arg3[%c0_97, %c32_98] : memref<64x64xf32, #tpu.memory_space<vmem>>, vector<8x32xf32>
    tpu.vector_store %arg3[%c0_97, %c32_98], %251 {strides = array<i32>} : memref<64x64xf32, #tpu.memory_space<vmem>>, vector<8x32xf32>,
    %c0_99 = arith.constant 0 : index
    %c0_100 = arith.constant 0 : index
    %253 = vector.load %arg3[%c0_99, %c0_100] : memref<64x64xf32, #tpu.memory_space<vmem>>, vector<64x64xf32>
    %c104 = arith.constant 104 : index
    %c0_101 = arith.constant 0 : index
    %254 = vector.load %arg1[%c104, %c0_101] : memref<400x256xf32, #tpu.memory_space<vmem>>, vector<64x256xf32>
    %cst_102 = arith.constant dense<0.000000e+00> : vector<64x256xf32>
    %255 = tpu.matmul %253, %254, %cst_102 {dimension_numbers = #tpu.dot_dimension_numbers<[1], [0], [0], [1], [0, 0, 1, 1], [], []>} : vector<64x64xf32>, vector<64x256xf32>, vector<64x256xf32> -> vector<64x256xf32>
    %c168 = arith.constant 168 : index
    %c0_103 = arith.constant 0 : index
    %256 = vector.load %arg1[%c168, %c0_103] : memref<400x256xf32, #tpu.memory_space<vmem>>, vector<64x256xf32>
    %cst_104 = arith.constant dense<0.000000e+00> : vector<64x256xf32>
    %257 = tpu.matmul %253, %256, %cst_104 {dimension_numbers = #tpu.dot_dimension_numbers<[1], [0], [0], [1], [0, 0, 1, 1], [], []>} : vector<64x64xf32>, vector<64x256xf32>, vector<64x256xf32> -> vector<64x256xf32>
    %c232 = arith.constant 232 : index
    %c0_105 = arith.constant 0 : index
    %258 = vector.load %arg1[%c232, %c0_105] : memref<400x256xf32, #tpu.memory_space<vmem>>, vector<1x256xf32>
    %259 = vector.extract_strided_slice %255 {offsets = [0, 0], sizes = [8, 256], strides = [1, 1]} : vector<64x256xf32> to vector<8x256xf32>
    %260 = vector.extract_strided_slice %257 {offsets = [56, 0], sizes = [8, 256], strides = [1, 1]} : vector<64x256xf32> to vector<8x256xf32>
    %261 = arith.addf %259, %260 : vector<8x256xf32>
    %262 = vector.broadcast %258 : vector<1x256xf32> to vector<8x256xf32>
    %263 = arith.addf %261, %262 : vector<8x256xf32>
    %c0_106 = arith.constant 0 : index
    %c0_107 = arith.constant 0 : index
    %264 = vector.load %arg5[%c0_106, %c0_107] : memref<64x256xf32, #tpu.memory_space<vmem>>, vector<8x256xf32>
    tpu.vector_store %arg5[%c0_106, %c0_107], %263 {strides = array<i32>} : memref<64x256xf32, #tpu.memory_space<vmem>>, vector<8x256xf32>,
    %265 = vector.extract_strided_slice %255 {offsets = [8, 0], sizes = [8, 256], strides = [1, 1]} : vector<64x256xf32> to vector<8x256xf32>
    %266 = vector.extract_strided_slice %257 {offsets = [48, 0], sizes = [8, 256], strides = [1, 1]} : vector<64x256xf32> to vector<8x256xf32>
    %267 = arith.addf %265, %266 : vector<8x256xf32>
    %268 = vector.broadcast %258 : vector<1x256xf32> to vector<8x256xf32>
    %269 = arith.addf %267, %268 : vector<8x256xf32>
    %c8_108 = arith.constant 8 : index
    %c0_109 = arith.constant 0 : index
    %270 = vector.load %arg5[%c8_108, %c0_109] : memref<64x256xf32, #tpu.memory_space<vmem>>, vector<8x256xf32>
    tpu.vector_store %arg5[%c8_108, %c0_109], %269 {strides = array<i32>} : memref<64x256xf32, #tpu.memory_space<vmem>>, vector<8x256xf32>,
    %271 = vector.extract_strided_slice %255 {offsets = [16, 0], sizes = [8, 256], strides = [1, 1]} : vector<64x256xf32> to vector<8x256xf32>
    %272 = vector.extract_strided_slice %257 {offsets = [40, 0], sizes = [8, 256], strides = [1, 1]} : vector<64x256xf32> to vector<8x256xf32>
    %273 = arith.addf %271, %272 : vector<8x256xf32>
    %274 = vector.broadcast %258 : vector<1x256xf32> to vector<8x256xf32>
    %275 = arith.addf %273, %274 : vector<8x256xf32>
    %c16_110 = arith.constant 16 : index
    %c0_111 = arith.constant 0 : index
    %276 = vector.load %arg5[%c16_110, %c0_111] : memref<64x256xf32, #tpu.memory_space<vmem>>, vector<8x256xf32>
    tpu.vector_store %arg5[%c16_110, %c0_111], %275 {strides = array<i32>} : memref<64x256xf32, #tpu.memory_space<vmem>>, vector<8x256xf32>,
    %277 = vector.extract_strided_slice %255 {offsets = [24, 0], sizes = [8, 256], strides = [1, 1]} : vector<64x256xf32> to vector<8x256xf32>
    %278 = vector.extract_strided_slice %257 {offsets = [32, 0], sizes = [8, 256], strides = [1, 1]} : vector<64x256xf32> to vector<8x256xf32>
    %279 = arith.addf %277, %278 : vector<8x256xf32>
    %280 = vector.broadcast %258 : vector<1x256xf32> to vector<8x256xf32>
    %281 = arith.addf %279, %280 : vector<8x256xf32>
    %c24_112 = arith.constant 24 : index
    %c0_113 = arith.constant 0 : index
    %282 = vector.load %arg5[%c24_112, %c0_113] : memref<64x256xf32, #tpu.memory_space<vmem>>, vector<8x256xf32>
    tpu.vector_store %arg5[%c24_112, %c0_113], %281 {strides = array<i32>} : memref<64x256xf32, #tpu.memory_space<vmem>>, vector<8x256xf32>,
    %283 = vector.extract_strided_slice %255 {offsets = [32, 0], sizes = [8, 256], strides = [1, 1]} : vector<64x256xf32> to vector<8x256xf32>
    %284 = vector.extract_strided_slice %257 {offsets = [24, 0], sizes = [8, 256], strides = [1, 1]} : vector<64x256xf32> to vector<8x256xf32>
    %285 = arith.addf %283, %284 : vector<8x256xf32>
    %286 = vector.broadcast %258 : vector<1x256xf32> to vector<8x256xf32>
    %287 = arith.addf %285, %286 : vector<8x256xf32>
    %c32_114 = arith.constant 32 : index
    %c0_115 = arith.constant 0 : index
    %288 = vector.load %arg5[%c32_114, %c0_115] : memref<64x256xf32, #tpu.memory_space<vmem>>, vector<8x256xf32>
    tpu.vector_store %arg5[%c32_114, %c0_115], %287 {strides = array<i32>} : memref<64x256xf32, #tpu.memory_space<vmem>>, vector<8x256xf32>,
    %289 = vector.extract_strided_slice %255 {offsets = [40, 0], sizes = [8, 256], strides = [1, 1]} : vector<64x256xf32> to vector<8x256xf32>
    %290 = vector.extract_strided_slice %257 {offsets = [16, 0], sizes = [8, 256], strides = [1, 1]} : vector<64x256xf32> to vector<8x256xf32>
    %291 = arith.addf %289, %290 : vector<8x256xf32>
    %292 = vector.broadcast %258 : vector<1x256xf32> to vector<8x256xf32>
    %293 = arith.addf %291, %292 : vector<8x256xf32>
    %c40_116 = arith.constant 40 : index
    %c0_117 = arith.constant 0 : index
    %294 = vector.load %arg5[%c40_116, %c0_117] : memref<64x256xf32, #tpu.memory_space<vmem>>, vector<8x256xf32>
    tpu.vector_store %arg5[%c40_116, %c0_117], %293 {strides = array<i32>} : memref<64x256xf32, #tpu.memory_space<vmem>>, vector<8x256xf32>,
    %295 = vector.extract_strided_slice %255 {offsets = [48, 0], sizes = [8, 256], strides = [1, 1]} : vector<64x256xf32> to vector<8x256xf32>
    %296 = vector.extract_strided_slice %257 {offsets = [8, 0], sizes = [8, 256], strides = [1, 1]} : vector<64x256xf32> to vector<8x256xf32>
    %297 = arith.addf %295, %296 : vector<8x256xf32>
    %298 = vector.broadcast %258 : vector<1x256xf32> to vector<8x256xf32>
    %299 = arith.addf %297, %298 : vector<8x256xf32>
    %c48_118 = arith.constant 48 : index
    %c0_119 = arith.constant 0 : index
    %300 = vector.load %arg5[%c48_118, %c0_119] : memref<64x256xf32, #tpu.memory_space<vmem>>, vector<8x256xf32>
    tpu.vector_store %arg5[%c48_118, %c0_119], %299 {strides = array<i32>} : memref<64x256xf32, #tpu.memory_space<vmem>>, vector<8x256xf32>,
    %301 = vector.extract_strided_slice %255 {offsets = [56, 0], sizes = [8, 256], strides = [1, 1]} : vector<64x256xf32> to vector<8x256xf32>
    %302 = vector.extract_strided_slice %257 {offsets = [0, 0], sizes = [8, 256], strides = [1, 1]} : vector<64x256xf32> to vector<8x256xf32>
    %303 = arith.addf %301, %302 : vector<8x256xf32>
    %304 = vector.broadcast %258 : vector<1x256xf32> to vector<8x256xf32>
    %305 = arith.addf %303, %304 : vector<8x256xf32>
    %c56_120 = arith.constant 56 : index
    %c0_121 = arith.constant 0 : index
    %306 = vector.load %arg5[%c56_120, %c0_121] : memref<64x256xf32, #tpu.memory_space<vmem>>, vector<8x256xf32>
    tpu.vector_store %arg5[%c56_120, %c0_121], %305 {strides = array<i32>} : memref<64x256xf32, #tpu.memory_space<vmem>>, vector<8x256xf32>,
    %cst_122 = arith.constant 0.000000e+00 : f32
    %307 = vector.broadcast %cst_122 : f32 to vector<8x64xf32>
    %cst_123 = arith.constant 0.000000e+00 : f32
    %308 = vector.broadcast %cst_123 : f32 to vector<8x64xf32>
    %c0_124 = arith.constant 0 : index
    %c0_125 = arith.constant 0 : index
    %309 = vector.load %arg5[%c0_124, %c0_125] : memref<64x256xf32, #tpu.memory_space<vmem>>, vector<8x256xf32>
    %c240 = arith.constant 240 : index
    %c0_126 = arith.constant 0 : index
    %310 = vector.load %arg1[%c240, %c0_126] : memref<400x256xf32, #tpu.memory_space<vmem>>, vector<64x256xf32>
    %cst_127 = arith.constant dense<0.000000e+00> : vector<8x256xf32>
    %311 = tpu.matmul %307, %310, %cst_127 {dimension_numbers = #tpu.dot_dimension_numbers<[1], [0], [0], [1], [0, 0, 1, 1], [], []>} : vector<8x64xf32>, vector<64x256xf32>, vector<8x256xf32> -> vector<8x256xf32>
    %312 = arith.addf %309, %311 : vector<8x256xf32>
    %313 = vector.extract_strided_slice %312 {offsets = [0, 0], sizes = [8, 192], strides = [1, 1]} : vector<8x256xf32> to vector<8x192xf32>
    %314 = arith.negf %313 : vector<8x192xf32>
    %315 = math.exp %314 : vector<8x192xf32>
    %cst_128 = arith.constant 1.000000e+00 : f32
    %316 = vector.broadcast %cst_128 : f32 to vector<8x192xf32>
    %317 = arith.addf %316, %315 : vector<8x192xf32>
    %318 = arith.divf %316, %317 : vector<8x192xf32>
    %319 = vector.extract_strided_slice %318 {offsets = [0, 0], sizes = [8, 64], strides = [1, 1]} : vector<8x192xf32> to vector<8x64xf32>
    %320 = vector.extract_strided_slice %318 {offsets = [0, 64], sizes = [8, 64], strides = [1, 1]} : vector<8x192xf32> to vector<8x64xf32>
    %321 = vector.extract_strided_slice %318 {offsets = [0, 128], sizes = [8, 64], strides = [1, 1]} : vector<8x192xf32> to vector<8x64xf32>
    %322 = vector.extract_strided_slice %312 {offsets = [0, 192], sizes = [8, 64], strides = [1, 1]} : vector<8x256xf32> to vector<8x64xf32>
    %323 = math.tanh %322 : vector<8x64xf32>
    %324 = arith.mulf %320, %308 : vector<8x64xf32>
    %325 = arith.mulf %319, %323 : vector<8x64xf32>
    %326 = arith.addf %324, %325 : vector<8x64xf32>
    %327 = math.tanh %326 : vector<8x64xf32>
    %328 = arith.mulf %321, %327 : vector<8x64xf32>
    %329 = vector.extract_strided_slice %328 {offsets = [0, 0], sizes = [8, 32], strides = [1, 1]} : vector<8x64xf32> to vector<8x32xf32>
    %c0_129 = arith.constant 0 : index
    %c0_130 = arith.constant 0 : index
    %330 = vector.load %arg4[%c0_129, %c0_130] : memref<64x64xf32, #tpu.memory_space<vmem>>, vector<8x32xf32>
    tpu.vector_store %arg4[%c0_129, %c0_130], %329 {strides = array<i32>} : memref<64x64xf32, #tpu.memory_space<vmem>>, vector<8x32xf32>,
    %331 = vector.extract_strided_slice %328 {offsets = [0, 32], sizes = [8, 32], strides = [1, 1]} : vector<8x64xf32> to vector<8x32xf32>
    %c56_131 = arith.constant 56 : index
    %c32_132 = arith.constant 32 : index
    %332 = vector.load %arg4[%c56_131, %c32_132] : memref<64x64xf32, #tpu.memory_space<vmem>>, vector<8x32xf32>
    tpu.vector_store %arg4[%c56_131, %c32_132], %331 {strides = array<i32>} : memref<64x64xf32, #tpu.memory_space<vmem>>, vector<8x32xf32>,
    %c8_133 = arith.constant 8 : index
    %c0_134 = arith.constant 0 : index
    %333 = vector.load %arg5[%c8_133, %c0_134] : memref<64x256xf32, #tpu.memory_space<vmem>>, vector<8x256xf32>
    %c240_135 = arith.constant 240 : index
    %c0_136 = arith.constant 0 : index
    %334 = vector.load %arg1[%c240_135, %c0_136] : memref<400x256xf32, #tpu.memory_space<vmem>>, vector<64x256xf32>
    %cst_137 = arith.constant dense<0.000000e+00> : vector<8x256xf32>
    %335 = tpu.matmul %328, %334, %cst_137 {dimension_numbers = #tpu.dot_dimension_numbers<[1], [0], [0], [1], [0, 0, 1, 1], [], []>} : vector<8x64xf32>, vector<64x256xf32>, vector<8x256xf32> -> vector<8x256xf32>
    %336 = arith.addf %333, %335 : vector<8x256xf32>
    %337 = vector.extract_strided_slice %336 {offsets = [0, 0], sizes = [8, 192], strides = [1, 1]} : vector<8x256xf32> to vector<8x192xf32>
    %338 = arith.negf %337 : vector<8x192xf32>
    %339 = math.exp %338 : vector<8x192xf32>
    %cst_138 = arith.constant 1.000000e+00 : f32
    %340 = vector.broadcast %cst_138 : f32 to vector<8x192xf32>
    %341 = arith.addf %340, %339 : vector<8x192xf32>
    %342 = arith.divf %340, %341 : vector<8x192xf32>
    %343 = vector.extract_strided_slice %342 {offsets = [0, 0], sizes = [8, 64], strides = [1, 1]} : vector<8x192xf32> to vector<8x64xf32>
    %344 = vector.extract_strided_slice %342 {offsets = [0, 64], sizes = [8, 64], strides = [1, 1]} : vector<8x192xf32> to vector<8x64xf32>
    %345 = vector.extract_strided_slice %342 {offsets = [0, 128], sizes = [8, 64], strides = [1, 1]} : vector<8x192xf32> to vector<8x64xf32>
    %346 = vector.extract_strided_slice %336 {offsets = [0, 192], sizes = [8, 64], strides = [1, 1]} : vector<8x256xf32> to vector<8x64xf32>
    %347 = math.tanh %346 : vector<8x64xf32>
    %348 = arith.mulf %344, %326 : vector<8x64xf32>
    %349 = arith.mulf %343, %347 : vector<8x64xf32>
    %350 = arith.addf %348, %349 : vector<8x64xf32>
    %351 = math.tanh %350 : vector<8x64xf32>
    %352 = arith.mulf %345, %351 : vector<8x64xf32>
    %353 = vector.extract_strided_slice %352 {offsets = [0, 0], sizes = [8, 32], strides = [1, 1]} : vector<8x64xf32> to vector<8x32xf32>
    %c8_139 = arith.constant 8 : index
    %c0_140 = arith.constant 0 : index
    %354 = vector.load %arg4[%c8_139, %c0_140] : memref<64x64xf32, #tpu.memory_space<vmem>>, vector<8x32xf32>
    tpu.vector_store %arg4[%c8_139, %c0_140], %353 {strides = array<i32>} : memref<64x64xf32, #tpu.memory_space<vmem>>, vector<8x32xf32>,
    %355 = vector.extract_strided_slice %352 {offsets = [0, 32], sizes = [8, 32], strides = [1, 1]} : vector<8x64xf32> to vector<8x32xf32>
    %c48_141 = arith.constant 48 : index
    %c32_142 = arith.constant 32 : index
    %356 = vector.load %arg4[%c48_141, %c32_142] : memref<64x64xf32, #tpu.memory_space<vmem>>, vector<8x32xf32>
    tpu.vector_store %arg4[%c48_141, %c32_142], %355 {strides = array<i32>} : memref<64x64xf32, #tpu.memory_space<vmem>>, vector<8x32xf32>,
    %c16_143 = arith.constant 16 : index
    %c0_144 = arith.constant 0 : index
    %357 = vector.load %arg5[%c16_143, %c0_144] : memref<64x256xf32, #tpu.memory_space<vmem>>, vector<8x256xf32>
    %c240_145 = arith.constant 240 : index
    %c0_146 = arith.constant 0 : index
    %358 = vector.load %arg1[%c240_145, %c0_146] : memref<400x256xf32, #tpu.memory_space<vmem>>, vector<64x256xf32>
    %cst_147 = arith.constant dense<0.000000e+00> : vector<8x256xf32>
    %359 = tpu.matmul %352, %358, %cst_147 {dimension_numbers = #tpu.dot_dimension_numbers<[1], [0], [0], [1], [0, 0, 1, 1], [], []>} : vector<8x64xf32>, vector<64x256xf32>, vector<8x256xf32> -> vector<8x256xf32>
    %360 = arith.addf %357, %359 : vector<8x256xf32>
    %361 = vector.extract_strided_slice %360 {offsets = [0, 0], sizes = [8, 192], strides = [1, 1]} : vector<8x256xf32> to vector<8x192xf32>
    %362 = arith.negf %361 : vector<8x192xf32>
    %363 = math.exp %362 : vector<8x192xf32>
    %cst_148 = arith.constant 1.000000e+00 : f32
    %364 = vector.broadcast %cst_148 : f32 to vector<8x192xf32>
    %365 = arith.addf %364, %363 : vector<8x192xf32>
    %366 = arith.divf %364, %365 : vector<8x192xf32>
    %367 = vector.extract_strided_slice %366 {offsets = [0, 0], sizes = [8, 64], strides = [1, 1]} : vector<8x192xf32> to vector<8x64xf32>
    %368 = vector.extract_strided_slice %366 {offsets = [0, 64], sizes = [8, 64], strides = [1, 1]} : vector<8x192xf32> to vector<8x64xf32>
    %369 = vector.extract_strided_slice %366 {offsets = [0, 128], sizes = [8, 64], strides = [1, 1]} : vector<8x192xf32> to vector<8x64xf32>
    %370 = vector.extract_strided_slice %360 {offsets = [0, 192], sizes = [8, 64], strides = [1, 1]} : vector<8x256xf32> to vector<8x64xf32>
    %371 = math.tanh %370 : vector<8x64xf32>
    %372 = arith.mulf %368, %350 : vector<8x64xf32>
    %373 = arith.mulf %367, %371 : vector<8x64xf32>
    %374 = arith.addf %372, %373 : vector<8x64xf32>
    %375 = math.tanh %374 : vector<8x64xf32>
    %376 = arith.mulf %369, %375 : vector<8x64xf32>
    %377 = vector.extract_strided_slice %376 {offsets = [0, 0], sizes = [8, 32], strides = [1, 1]} : vector<8x64xf32> to vector<8x32xf32>
    %c16_149 = arith.constant 16 : index
    %c0_150 = arith.constant 0 : index
    %378 = vector.load %arg4[%c16_149, %c0_150] : memref<64x64xf32, #tpu.memory_space<vmem>>, vector<8x32xf32>
    tpu.vector_store %arg4[%c16_149, %c0_150], %377 {strides = array<i32>} : memref<64x64xf32, #tpu.memory_space<vmem>>, vector<8x32xf32>,
    %379 = vector.extract_strided_slice %376 {offsets = [0, 32], sizes = [8, 32], strides = [1, 1]} : vector<8x64xf32> to vector<8x32xf32>
    %c40_151 = arith.constant 40 : index
    %c32_152 = arith.constant 32 : index
    %380 = vector.load %arg4[%c40_151, %c32_152] : memref<64x64xf32, #tpu.memory_space<vmem>>, vector<8x32xf32>
    tpu.vector_store %arg4[%c40_151, %c32_152], %379 {strides = array<i32>} : memref<64x64xf32, #tpu.memory_space<vmem>>, vector<8x32xf32>,
    %c24_153 = arith.constant 24 : index
    %c0_154 = arith.constant 0 : index
    %381 = vector.load %arg5[%c24_153, %c0_154] : memref<64x256xf32, #tpu.memory_space<vmem>>, vector<8x256xf32>
    %c240_155 = arith.constant 240 : index
    %c0_156 = arith.constant 0 : index
    %382 = vector.load %arg1[%c240_155, %c0_156] : memref<400x256xf32, #tpu.memory_space<vmem>>, vector<64x256xf32>
    %cst_157 = arith.constant dense<0.000000e+00> : vector<8x256xf32>
    %383 = tpu.matmul %376, %382, %cst_157 {dimension_numbers = #tpu.dot_dimension_numbers<[1], [0], [0], [1], [0, 0, 1, 1], [], []>} : vector<8x64xf32>, vector<64x256xf32>, vector<8x256xf32> -> vector<8x256xf32>
    %384 = arith.addf %381, %383 : vector<8x256xf32>
    %385 = vector.extract_strided_slice %384 {offsets = [0, 0], sizes = [8, 192], strides = [1, 1]} : vector<8x256xf32> to vector<8x192xf32>
    %386 = arith.negf %385 : vector<8x192xf32>
    %387 = math.exp %386 : vector<8x192xf32>
    %cst_158 = arith.constant 1.000000e+00 : f32
    %388 = vector.broadcast %cst_158 : f32 to vector<8x192xf32>
    %389 = arith.addf %388, %387 : vector<8x192xf32>
    %390 = arith.divf %388, %389 : vector<8x192xf32>
    %391 = vector.extract_strided_slice %390 {offsets = [0, 0], sizes = [8, 64], strides = [1, 1]} : vector<8x192xf32> to vector<8x64xf32>
    %392 = vector.extract_strided_slice %390 {offsets = [0, 64], sizes = [8, 64], strides = [1, 1]} : vector<8x192xf32> to vector<8x64xf32>
    %393 = vector.extract_strided_slice %390 {offsets = [0, 128], sizes = [8, 64], strides = [1, 1]} : vector<8x192xf32> to vector<8x64xf32>
    %394 = vector.extract_strided_slice %384 {offsets = [0, 192], sizes = [8, 64], strides = [1, 1]} : vector<8x256xf32> to vector<8x64xf32>
    %395 = math.tanh %394 : vector<8x64xf32>
    %396 = arith.mulf %392, %374 : vector<8x64xf32>
    %397 = arith.mulf %391, %395 : vector<8x64xf32>
    %398 = arith.addf %396, %397 : vector<8x64xf32>
    %399 = math.tanh %398 : vector<8x64xf32>
    %400 = arith.mulf %393, %399 : vector<8x64xf32>
    %401 = vector.extract_strided_slice %400 {offsets = [0, 0], sizes = [8, 32], strides = [1, 1]} : vector<8x64xf32> to vector<8x32xf32>
    %c24_159 = arith.constant 24 : index
    %c0_160 = arith.constant 0 : index
    %402 = vector.load %arg4[%c24_159, %c0_160] : memref<64x64xf32, #tpu.memory_space<vmem>>, vector<8x32xf32>
    tpu.vector_store %arg4[%c24_159, %c0_160], %401 {strides = array<i32>} : memref<64x64xf32, #tpu.memory_space<vmem>>, vector<8x32xf32>,
    %403 = vector.extract_strided_slice %400 {offsets = [0, 32], sizes = [8, 32], strides = [1, 1]} : vector<8x64xf32> to vector<8x32xf32>
    %c32_161 = arith.constant 32 : index
    %c32_162 = arith.constant 32 : index
    %404 = vector.load %arg4[%c32_161, %c32_162] : memref<64x64xf32, #tpu.memory_space<vmem>>, vector<8x32xf32>
    tpu.vector_store %arg4[%c32_161, %c32_162], %403 {strides = array<i32>} : memref<64x64xf32, #tpu.memory_space<vmem>>, vector<8x32xf32>,
    %c32_163 = arith.constant 32 : index
    %c0_164 = arith.constant 0 : index
    %405 = vector.load %arg5[%c32_163, %c0_164] : memref<64x256xf32, #tpu.memory_space<vmem>>, vector<8x256xf32>
    %c240_165 = arith.constant 240 : index
    %c0_166 = arith.constant 0 : index
    %406 = vector.load %arg1[%c240_165, %c0_166] : memref<400x256xf32, #tpu.memory_space<vmem>>, vector<64x256xf32>
    %cst_167 = arith.constant dense<0.000000e+00> : vector<8x256xf32>
    %407 = tpu.matmul %400, %406, %cst_167 {dimension_numbers = #tpu.dot_dimension_numbers<[1], [0], [0], [1], [0, 0, 1, 1], [], []>} : vector<8x64xf32>, vector<64x256xf32>, vector<8x256xf32> -> vector<8x256xf32>
    %408 = arith.addf %405, %407 : vector<8x256xf32>
    %409 = vector.extract_strided_slice %408 {offsets = [0, 0], sizes = [8, 192], strides = [1, 1]} : vector<8x256xf32> to vector<8x192xf32>
    %410 = arith.negf %409 : vector<8x192xf32>
    %411 = math.exp %410 : vector<8x192xf32>
    %cst_168 = arith.constant 1.000000e+00 : f32
    %412 = vector.broadcast %cst_168 : f32 to vector<8x192xf32>
    %413 = arith.addf %412, %411 : vector<8x192xf32>
    %414 = arith.divf %412, %413 : vector<8x192xf32>
    %415 = vector.extract_strided_slice %414 {offsets = [0, 0], sizes = [8, 64], strides = [1, 1]} : vector<8x192xf32> to vector<8x64xf32>
    %416 = vector.extract_strided_slice %414 {offsets = [0, 64], sizes = [8, 64], strides = [1, 1]} : vector<8x192xf32> to vector<8x64xf32>
    %417 = vector.extract_strided_slice %414 {offsets = [0, 128], sizes = [8, 64], strides = [1, 1]} : vector<8x192xf32> to vector<8x64xf32>
    %418 = vector.extract_strided_slice %408 {offsets = [0, 192], sizes = [8, 64], strides = [1, 1]} : vector<8x256xf32> to vector<8x64xf32>
    %419 = math.tanh %418 : vector<8x64xf32>
    %420 = arith.mulf %416, %398 : vector<8x64xf32>
    %421 = arith.mulf %415, %419 : vector<8x64xf32>
    %422 = arith.addf %420, %421 : vector<8x64xf32>
    %423 = math.tanh %422 : vector<8x64xf32>
    %424 = arith.mulf %417, %423 : vector<8x64xf32>
    %425 = vector.extract_strided_slice %424 {offsets = [0, 0], sizes = [8, 32], strides = [1, 1]} : vector<8x64xf32> to vector<8x32xf32>
    %c32_169 = arith.constant 32 : index
    %c0_170 = arith.constant 0 : index
    %426 = vector.load %arg4[%c32_169, %c0_170] : memref<64x64xf32, #tpu.memory_space<vmem>>, vector<8x32xf32>
    tpu.vector_store %arg4[%c32_169, %c0_170], %425 {strides = array<i32>} : memref<64x64xf32, #tpu.memory_space<vmem>>, vector<8x32xf32>,
    %427 = vector.extract_strided_slice %424 {offsets = [0, 32], sizes = [8, 32], strides = [1, 1]} : vector<8x64xf32> to vector<8x32xf32>
    %c24_171 = arith.constant 24 : index
    %c32_172 = arith.constant 32 : index
    %428 = vector.load %arg4[%c24_171, %c32_172] : memref<64x64xf32, #tpu.memory_space<vmem>>, vector<8x32xf32>
    tpu.vector_store %arg4[%c24_171, %c32_172], %427 {strides = array<i32>} : memref<64x64xf32, #tpu.memory_space<vmem>>, vector<8x32xf32>,
    %c40_173 = arith.constant 40 : index
    %c0_174 = arith.constant 0 : index
    %429 = vector.load %arg5[%c40_173, %c0_174] : memref<64x256xf32, #tpu.memory_space<vmem>>, vector<8x256xf32>
    %c240_175 = arith.constant 240 : index
    %c0_176 = arith.constant 0 : index
    %430 = vector.load %arg1[%c240_175, %c0_176] : memref<400x256xf32, #tpu.memory_space<vmem>>, vector<64x256xf32>
    %cst_177 = arith.constant dense<0.000000e+00> : vector<8x256xf32>
    %431 = tpu.matmul %424, %430, %cst_177 {dimension_numbers = #tpu.dot_dimension_numbers<[1], [0], [0], [1], [0, 0, 1, 1], [], []>} : vector<8x64xf32>, vector<64x256xf32>, vector<8x256xf32> -> vector<8x256xf32>
    %432 = arith.addf %429, %431 : vector<8x256xf32>
    %433 = vector.extract_strided_slice %432 {offsets = [0, 0], sizes = [8, 192], strides = [1, 1]} : vector<8x256xf32> to vector<8x192xf32>
    %434 = arith.negf %433 : vector<8x192xf32>
    %435 = math.exp %434 : vector<8x192xf32>
    %cst_178 = arith.constant 1.000000e+00 : f32
    %436 = vector.broadcast %cst_178 : f32 to vector<8x192xf32>
    %437 = arith.addf %436, %435 : vector<8x192xf32>
    %438 = arith.divf %436, %437 : vector<8x192xf32>
    %439 = vector.extract_strided_slice %438 {offsets = [0, 0], sizes = [8, 64], strides = [1, 1]} : vector<8x192xf32> to vector<8x64xf32>
    %440 = vector.extract_strided_slice %438 {offsets = [0, 64], sizes = [8, 64], strides = [1, 1]} : vector<8x192xf32> to vector<8x64xf32>
    %441 = vector.extract_strided_slice %438 {offsets = [0, 128], sizes = [8, 64], strides = [1, 1]} : vector<8x192xf32> to vector<8x64xf32>
    %442 = vector.extract_strided_slice %432 {offsets = [0, 192], sizes = [8, 64], strides = [1, 1]} : vector<8x256xf32> to vector<8x64xf32>
    %443 = math.tanh %442 : vector<8x64xf32>
    %444 = arith.mulf %440, %422 : vector<8x64xf32>
    %445 = arith.mulf %439, %443 : vector<8x64xf32>
    %446 = arith.addf %444, %445 : vector<8x64xf32>
    %447 = math.tanh %446 : vector<8x64xf32>
    %448 = arith.mulf %441, %447 : vector<8x64xf32>
    %449 = vector.extract_strided_slice %448 {offsets = [0, 0], sizes = [8, 32], strides = [1, 1]} : vector<8x64xf32> to vector<8x32xf32>
    %c40_179 = arith.constant 40 : index
    %c0_180 = arith.constant 0 : index
    %450 = vector.load %arg4[%c40_179, %c0_180] : memref<64x64xf32, #tpu.memory_space<vmem>>, vector<8x32xf32>
    tpu.vector_store %arg4[%c40_179, %c0_180], %449 {strides = array<i32>} : memref<64x64xf32, #tpu.memory_space<vmem>>, vector<8x32xf32>,
    %451 = vector.extract_strided_slice %448 {offsets = [0, 32], sizes = [8, 32], strides = [1, 1]} : vector<8x64xf32> to vector<8x32xf32>
    %c16_181 = arith.constant 16 : index
    %c32_182 = arith.constant 32 : index
    %452 = vector.load %arg4[%c16_181, %c32_182] : memref<64x64xf32, #tpu.memory_space<vmem>>, vector<8x32xf32>
    tpu.vector_store %arg4[%c16_181, %c32_182], %451 {strides = array<i32>} : memref<64x64xf32, #tpu.memory_space<vmem>>, vector<8x32xf32>,
    %c48_183 = arith.constant 48 : index
    %c0_184 = arith.constant 0 : index
    %453 = vector.load %arg5[%c48_183, %c0_184] : memref<64x256xf32, #tpu.memory_space<vmem>>, vector<8x256xf32>
    %c240_185 = arith.constant 240 : index
    %c0_186 = arith.constant 0 : index
    %454 = vector.load %arg1[%c240_185, %c0_186] : memref<400x256xf32, #tpu.memory_space<vmem>>, vector<64x256xf32>
    %cst_187 = arith.constant dense<0.000000e+00> : vector<8x256xf32>
    %455 = tpu.matmul %448, %454, %cst_187 {dimension_numbers = #tpu.dot_dimension_numbers<[1], [0], [0], [1], [0, 0, 1, 1], [], []>} : vector<8x64xf32>, vector<64x256xf32>, vector<8x256xf32> -> vector<8x256xf32>
    %456 = arith.addf %453, %455 : vector<8x256xf32>
    %457 = vector.extract_strided_slice %456 {offsets = [0, 0], sizes = [8, 192], strides = [1, 1]} : vector<8x256xf32> to vector<8x192xf32>
    %458 = arith.negf %457 : vector<8x192xf32>
    %459 = math.exp %458 : vector<8x192xf32>
    %cst_188 = arith.constant 1.000000e+00 : f32
    %460 = vector.broadcast %cst_188 : f32 to vector<8x192xf32>
    %461 = arith.addf %460, %459 : vector<8x192xf32>
    %462 = arith.divf %460, %461 : vector<8x192xf32>
    %463 = vector.extract_strided_slice %462 {offsets = [0, 0], sizes = [8, 64], strides = [1, 1]} : vector<8x192xf32> to vector<8x64xf32>
    %464 = vector.extract_strided_slice %462 {offsets = [0, 64], sizes = [8, 64], strides = [1, 1]} : vector<8x192xf32> to vector<8x64xf32>
    %465 = vector.extract_strided_slice %462 {offsets = [0, 128], sizes = [8, 64], strides = [1, 1]} : vector<8x192xf32> to vector<8x64xf32>
    %466 = vector.extract_strided_slice %456 {offsets = [0, 192], sizes = [8, 64], strides = [1, 1]} : vector<8x256xf32> to vector<8x64xf32>
    %467 = math.tanh %466 : vector<8x64xf32>
    %468 = arith.mulf %464, %446 : vector<8x64xf32>
    %469 = arith.mulf %463, %467 : vector<8x64xf32>
    %470 = arith.addf %468, %469 : vector<8x64xf32>
    %471 = math.tanh %470 : vector<8x64xf32>
    %472 = arith.mulf %465, %471 : vector<8x64xf32>
    %473 = vector.extract_strided_slice %472 {offsets = [0, 0], sizes = [8, 32], strides = [1, 1]} : vector<8x64xf32> to vector<8x32xf32>
    %c48_189 = arith.constant 48 : index
    %c0_190 = arith.constant 0 : index
    %474 = vector.load %arg4[%c48_189, %c0_190] : memref<64x64xf32, #tpu.memory_space<vmem>>, vector<8x32xf32>
    tpu.vector_store %arg4[%c48_189, %c0_190], %473 {strides = array<i32>} : memref<64x64xf32, #tpu.memory_space<vmem>>, vector<8x32xf32>,
    %475 = vector.extract_strided_slice %472 {offsets = [0, 32], sizes = [8, 32], strides = [1, 1]} : vector<8x64xf32> to vector<8x32xf32>
    %c8_191 = arith.constant 8 : index
    %c32_192 = arith.constant 32 : index
    %476 = vector.load %arg4[%c8_191, %c32_192] : memref<64x64xf32, #tpu.memory_space<vmem>>, vector<8x32xf32>
    tpu.vector_store %arg4[%c8_191, %c32_192], %475 {strides = array<i32>} : memref<64x64xf32, #tpu.memory_space<vmem>>, vector<8x32xf32>,
    %c56_193 = arith.constant 56 : index
    %c0_194 = arith.constant 0 : index
    %477 = vector.load %arg5[%c56_193, %c0_194] : memref<64x256xf32, #tpu.memory_space<vmem>>, vector<8x256xf32>
    %c240_195 = arith.constant 240 : index
    %c0_196 = arith.constant 0 : index
    %478 = vector.load %arg1[%c240_195, %c0_196] : memref<400x256xf32, #tpu.memory_space<vmem>>, vector<64x256xf32>
    %cst_197 = arith.constant dense<0.000000e+00> : vector<8x256xf32>
    %479 = tpu.matmul %472, %478, %cst_197 {dimension_numbers = #tpu.dot_dimension_numbers<[1], [0], [0], [1], [0, 0, 1, 1], [], []>} : vector<8x64xf32>, vector<64x256xf32>, vector<8x256xf32> -> vector<8x256xf32>
    %480 = arith.addf %477, %479 : vector<8x256xf32>
    %481 = vector.extract_strided_slice %480 {offsets = [0, 0], sizes = [8, 192], strides = [1, 1]} : vector<8x256xf32> to vector<8x192xf32>
    %482 = arith.negf %481 : vector<8x192xf32>
    %483 = math.exp %482 : vector<8x192xf32>
    %cst_198 = arith.constant 1.000000e+00 : f32
    %484 = vector.broadcast %cst_198 : f32 to vector<8x192xf32>
    %485 = arith.addf %484, %483 : vector<8x192xf32>
    %486 = arith.divf %484, %485 : vector<8x192xf32>
    %487 = vector.extract_strided_slice %486 {offsets = [0, 0], sizes = [8, 64], strides = [1, 1]} : vector<8x192xf32> to vector<8x64xf32>
    %488 = vector.extract_strided_slice %486 {offsets = [0, 64], sizes = [8, 64], strides = [1, 1]} : vector<8x192xf32> to vector<8x64xf32>
    %489 = vector.extract_strided_slice %486 {offsets = [0, 128], sizes = [8, 64], strides = [1, 1]} : vector<8x192xf32> to vector<8x64xf32>
    %490 = vector.extract_strided_slice %480 {offsets = [0, 192], sizes = [8, 64], strides = [1, 1]} : vector<8x256xf32> to vector<8x64xf32>
    %491 = math.tanh %490 : vector<8x64xf32>
    %492 = arith.mulf %488, %470 : vector<8x64xf32>
    %493 = arith.mulf %487, %491 : vector<8x64xf32>
    %494 = arith.addf %492, %493 : vector<8x64xf32>
    %495 = math.tanh %494 : vector<8x64xf32>
    %496 = arith.mulf %489, %495 : vector<8x64xf32>
    %497 = vector.extract_strided_slice %496 {offsets = [0, 0], sizes = [8, 32], strides = [1, 1]} : vector<8x64xf32> to vector<8x32xf32>
    %c56_199 = arith.constant 56 : index
    %c0_200 = arith.constant 0 : index
    %498 = vector.load %arg4[%c56_199, %c0_200] : memref<64x64xf32, #tpu.memory_space<vmem>>, vector<8x32xf32>
    tpu.vector_store %arg4[%c56_199, %c0_200], %497 {strides = array<i32>} : memref<64x64xf32, #tpu.memory_space<vmem>>, vector<8x32xf32>,
    %499 = vector.extract_strided_slice %496 {offsets = [0, 32], sizes = [8, 32], strides = [1, 1]} : vector<8x64xf32> to vector<8x32xf32>
    %c0_201 = arith.constant 0 : index
    %c32_202 = arith.constant 32 : index
    %500 = vector.load %arg4[%c0_201, %c32_202] : memref<64x64xf32, #tpu.memory_space<vmem>>, vector<8x32xf32>
    tpu.vector_store %arg4[%c0_201, %c32_202], %499 {strides = array<i32>} : memref<64x64xf32, #tpu.memory_space<vmem>>, vector<8x32xf32>,
    %c0_203 = arith.constant 0 : index
    %c0_204 = arith.constant 0 : index
    %501 = vector.load %arg4[%c0_203, %c0_204] : memref<64x64xf32, #tpu.memory_space<vmem>>, vector<64x64xf32>
    %c304 = arith.constant 304 : index
    %c0_205 = arith.constant 0 : index
    %502 = vector.load %arg1[%c304, %c0_205] : memref<400x256xf32, #tpu.memory_space<vmem>>, vector<64x16xf32>
    %cst_206 = arith.constant dense<0.000000e+00> : vector<64x16xf32>
    %503 = tpu.matmul %501, %502, %cst_206 {dimension_numbers = #tpu.dot_dimension_numbers<[1], [0], [0], [1], [0, 0, 1, 1], [], []>} : vector<64x64xf32>, vector<64x16xf32>, vector<64x16xf32> -> vector<64x16xf32>
    %c368 = arith.constant 368 : index
    %c0_207 = arith.constant 0 : index
    %504 = vector.load %arg1[%c368, %c0_207] : memref<400x256xf32, #tpu.memory_space<vmem>>, vector<1x16xf32>
    %505 = vector.broadcast %504 : vector<1x16xf32> to vector<64x16xf32>
    %506 = arith.addf %503, %505 : vector<64x16xf32>
    %507 = math.tanh %506 : vector<64x16xf32>
    %c376 = arith.constant 376 : index
    %c0_208 = arith.constant 0 : index
    %508 = vector.load %arg1[%c376, %c0_208] : memref<400x256xf32, #tpu.memory_space<vmem>>, vector<16x128xf32>
    %cst_209 = arith.constant dense<0.000000e+00> : vector<64x128xf32>
    %509 = tpu.matmul %507, %508, %cst_209 {dimension_numbers = #tpu.dot_dimension_numbers<[1], [0], [0], [1], [0, 0, 1, 1], [], []>} : vector<64x16xf32>, vector<16x128xf32>, vector<64x128xf32> -> vector<64x128xf32>
    %c392 = arith.constant 392 : index
    %c0_210 = arith.constant 0 : index
    %510 = vector.load %arg1[%c392, %c0_210] : memref<400x256xf32, #tpu.memory_space<vmem>>, vector<1x128xf32>
    %511 = vector.broadcast %510 : vector<1x128xf32> to vector<64x128xf32>
    %512 = arith.addf %509, %511 : vector<64x128xf32>
    %513 = arith.negf %512 : vector<64x128xf32>
    %514 = math.exp %513 : vector<64x128xf32>
    %cst_211 = arith.constant 1.000000e+00 : f32
    %515 = vector.broadcast %cst_211 : f32 to vector<64x128xf32>
    %516 = arith.addf %515, %514 : vector<64x128xf32>
    %517 = arith.divf %515, %516 : vector<64x128xf32>
    %c0_212 = arith.constant 0 : index
    %c0_213 = arith.constant 0 : index
    %518 = vector.load %arg2[%c0_212, %c0_213] : memref<64x128xf32, #tpu.memory_space<vmem>>, vector<64x128xf32>
    tpu.vector_store %arg2[%c0_212, %c0_213], %517 {strides = array<i32>} : memref<64x128xf32, #tpu.memory_space<vmem>>, vector<64x128xf32>,
    return
  }
}

</mosaic_0001>

<bundles_post_ra>
// kernel: mask_estimator_forward.1
= control target key start
LH: loop header
LB: loop body
LE: loop exit
PB: predicated region body
PF: predicated region fallthrough
CT: control target
= control target key end

     0   :  { %7 = vsyncpa [#allocation6], 0  ;;  %s3631_s9 = smov [#allocation5]   ;;  %s4374_s0 = inlined_call_operand.vmem [shape: f32[64,32], index: 0, kind: input, shape index: {}]   ;;  %s4375_s1 = inlined_call_operand.hbm [shape: f32[400,256], index: 1, kind: input, shape index: {}]   ;;  %s4376_s2 = inlined_call_operand.vmem [shape: f32[64,128], index: 2, kind: output, shape index: {}]  }
   0x1   :  { %s15_s10 = sshll.u32 %s3631_s9, 4  ;;  %s16_s10 = int_to_ptr.vmem [resolvable:$true] %s15_s10 }
   0x2   :  { %s3617_s11 = scalar_lea.vmem %s16_s10, 12800  ;;  %p3622_p1 = scmp.lt.s32.totalorder %s16_s10, %s16_s10 }
   0x3   :  { %p3618_p0 = scmp.ne.s32.totalorder %s16_s10, %s3617_s11  ;;  %p3623_p2 = scmp.lt.s32.totalorder %s3617_s11, %s3617_s11 }
   0x5   :  { %p3624_p3 = por %p3623_p2, %p3622_p1 }
   0x7   :  { %p3625_p4 = pnand %p3624_p3, %p3618_p0 }
   0x9   :  { %3628 = shalt.err (!%p3625_p4)
}
   0xa   :  { %s3632_s12 = smov 256   ;;  %s3633_s13 = smov 16  }
   0xb   :  { %21 = dma.hbm_to_vmem [thread:$0]  %s4375_s1, 12800, %s16_s10, [#allocation6], %s3632_s12, %s3632_s12, %s3633_s13  }
   0xc   :  { %3629 = dma.done.wait [#allocation6], 12800  }
   0xd   :  { %3630 = vsyncadd [#allocation6], 4294954496  ;;  %v32_v0 = vld [vmem:[%s4374_s0 + $0x38] sm:$0xff]  ;;  %v26_v1 = vld [vmem:[%s4374_s0 + $0x8] sm:$0xff]  ;;  %s3634_s1 = smov 112   ;;  %v3635_v13 = vmov 0.0  }
   0xe   :  { %v27_v2 = vld [vmem:[%s4374_s0 + $0x10] sm:$0xff]  ;;  %v40_v3 = vmul.f32 %v32_v0, %v32_v0  ;;  %v34_v4 = vmul.f32 %v26_v1, %v26_v1  ;;  %v25_v5 = vld [vmem:[%s4374_s0] sm:$0xff]  ;;  %v28_v9 = vld [vmem:[%s4374_s0 + $0x18] sm:$0xff]  ;;  %272 = vmatprep.mubr.f32.mxu1 %v3635_v13  ;;  %230 = vmatprep.mubr.f32.mxu0 %v3635_v13  ;;  %vm141_vm0 = vcmask 130048  }
   0xf   :  { %v35_v6 = vmul.f32 %v27_v2, %v27_v2  ;;  %v33_v7 = vmul.f32 %v25_v5, %v25_v5  ;;  %v29_v8 = vld [vmem:[%s4374_s0 + $0x20] sm:$0xff]  ;;  %v140_v10 = vld [vmem:[#allocation5 + $0x18] sm:$0xff]  ;;  %v139_v11 = vld [vmem:[#allocation5 + $0x10] sm:$0xff]  ;;  %v36_v15 = vmul.f32 %v28_v9, %v28_v9 }
  0x10   :  { %63 = vrot.lane.b32.xlu0 %v40_v3, %s3634_s1  ;;  %51 = vrot.lane.b32.xlu1 %v34_v4, %s3634_s1  ;;  %v138_v12 = vld [vmem:[#allocation5 + $0x8] sm:$0xff]  ;;  %v37_v14 = vmul.f32 %v29_v8, %v29_v8  ;;  %v137_v16 = vld [vmem:[#allocation5] sm:$0xff]  ;;  %v31_v17 = vld [vmem:[%s4374_s0 + $0x30] sm:$0xff] }
  0x11   :  { %3343 = vmatprep.subr.mxu1 %v140_v10  ;;  %v30_v18 = vld [vmem:[%s4374_s0 + $0x28] sm:$0xff]  ;;  %194 = vmatprep.subr.mxu0 %v140_v10  ;;  %v282_v19 = vld [vmem:[#allocation5 + $0x38] sm:$0xff]  ;;  %v39_v20 = vmul.f32 %v31_v17, %v31_v17  ;;  %v281_v43 = vld [vmem:[#allocation5 + $0x30] sm:$0xff]  ;;  %s3636_s0 = smov 64  }
  0x12   :  { %3345 = vmatpush1.msra.mxu1 %v139_v11  ;;  %195 = vmatpush1.msra.mxu0 %v139_v11  ;;  %v38_v21 = vmul.f32 %v30_v18, %v30_v18  ;;  %v3689_v22 = vld [vmem:[#allocation5 + $0xc8] sm:$0xff]  ;;  %v279_v47 = vld [vmem:[#allocation5 + $0x20] sm:$0xff]  ;;  %v3723_v57 = vld [vmem:[#allocation5 + $0xb8] sm:$0xff] }
  0x13   :  { %3344 = vmatprep.subr.mxu1 %v138_v12  ;;  %196 = vmatprep.subr.mxu0 %v138_v12  ;;  %v280_v45 = vld [vmem:[#allocation5 + $0x28] sm:$0xff]  ;;  %v3716_v55 = vld [vmem:[#allocation5 + $0xc0] sm:$0xff]  ;;  %v3734_v62 = vld [vmem:[#allocation5 + $0xb0] sm:$0xff] }
  0x14   :  { %53 = vrot.lane.b32.xlu1 %v35_v6, %s3634_s1  ;;  %49 = vrot.lane.b32.xlu0 %v33_v7, %s3634_s1  ;;  %v3740_v0 = vld [vmem:[#allocation5 + $0xa8] sm:$0xff]  ;;  %v3750_v5 = vld [vmem:[#allocation5 + $0xa0] sm:$0xff]  ;;  %v3767_v12 = vld [vmem:[#allocation5 + $0x90] sm:$0xff] }
  0x15   :  { %3346 = vmatpush1.msra.mxu1 %v137_v16  ;;  %197 = vmatpush1.msra.mxu0 %v137_v16 }
  0x16   :  { %311 = vmatprep.subr.mxu1 %v282_v19  ;;  %495 = vmatprep.subr.mxu0 %v3689_v22  ;;  %v3782_v19 = vld [vmem:[#allocation5 + $0x80] sm:$0xff] }
  0x18   :  { %57 = vrot.lane.b32.xlu1 %v37_v14, %s3634_s1  ;;  %55 = vrot.lane.b32.xlu0 %v36_v15, %s3634_s1 }
  0x1c   :  { %61 = vrot.lane.b32.xlu1 %v39_v20, %s3634_s1  ;;  %59 = vrot.lane.b32.xlu0 %v38_v21, %s3634_s1 }
  0x82   :  { %v64_v23 = vpop.permute.xlu0 %63  ;;  %v52_v24 = vpop.permute.xlu1 %51 }
  0x83   :  { %v80_v25 = vadd.f32 %v64_v23, %v40_v3  ;;  %v3692_v26 = vadd.f32 %v52_v24, %v34_v4  ;;  %v3793_v24 = vld [vmem:[#allocation5 + $0x70] sm:$0xff] }
  0x85   :  { %3353 = vrsqrt.f32 %v80_v25  ;;  %vm132_vm1 = vcmp.eq.f32.partialorder %v80_v25, inf  ;;  %v135_v39 = vand.u32 2147483648, %v80_v25  ;;  %vm134_vm2 = vcmp.eq.f32.partialorder %v80_v25, 0.0 }
  0x86   :  { %v54_v27 = vpop.permute.xlu1 %53  ;;  %v50_v28 = vpop.permute.xlu0 %49  ;;  %3355 = vrsqrt.f32 %v3692_v26  ;;  %vm90_vm5 = vcmp.eq.f32.partialorder %v3692_v26, inf  ;;  %v93_v60 = vand.u32 2147483648, %v3692_v26  ;;  %vm92_vm6 = vcmp.eq.f32.partialorder %v3692_v26, 0.0 }
  0x87   :  { %v73_v29 = vadd.f32 %v50_v28, %v33_v7  ;;  %v3695_v30 = vadd.f32 %v54_v27, %v35_v6  ;;  %v3757_v7 = vld [vmem:[#allocation5 + $0x98] sm:$0xff] }
  0x89   :  { %3357 = vrsqrt.f32 %v73_v29  ;;  %vm83_vm3 = vcmp.eq.f32.partialorder %v73_v29, inf  ;;  %v86_v52 = vand.u32 2147483648, %v73_v29  ;;  %vm85_vm4 = vcmp.eq.f32.partialorder %v73_v29, 0.0 }
  0x8a   :  { %v56_v31 = vpop.permute.xlu0 %55  ;;  %3359 = vrsqrt.f32 %v3695_v30  ;;  %v58_v33 = vpop.permute.xlu1 %57  ;;  %vm97_vm7 = vcmp.eq.f32.partialorder %v3695_v30, inf  ;;  %v100_v3 = vand.u32 2147483648, %v3695_v30  ;;  %vm99_vm8 = vcmp.eq.f32.partialorder %v3695_v30, 0.0 }
  0x8b   :  { %v3698_v32 = vadd.f32 %v56_v31, %v36_v15  ;;  %v3700_v34 = vadd.f32 %v58_v33, %v37_v14  ;;  %v3774_v15 = vld [vmem:[#allocation5 + $0x88] sm:$0xff]  ;;  %v3812_v31 = vld [vmem:[#allocation5 + $0x60] sm:$0xff] }
  0x8d   :  { %3361 = vrsqrt.f32 %v3698_v32  ;;  %vm104_vm9 = vcmp.eq.f32.partialorder %v3698_v32, inf  ;;  %v107_v10 = vand.u32 2147483648, %v3698_v32  ;;  %vm106_vm10 = vcmp.eq.f32.partialorder %v3698_v32, 0.0 }
  0x8e   :  { %v60_v35 = vpop.permute.xlu0 %59  ;;  %3363 = vrsqrt.f32 %v3700_v34  ;;  %v62_v41 = vpop.permute.xlu1 %61  ;;  %vm111_vm11 = vcmp.eq.f32.partialorder %v3700_v34, inf  ;;  %v114_v18 = vand.u32 2147483648, %v3700_v34  ;;  %vm113_vm12 = vcmp.eq.f32.partialorder %v3700_v34, 0.0 }
  0x8f   :  { %v3704_v38 = vadd.f32 %v60_v35, %v38_v21  ;;  %v3710_v48 = vadd.f32 %v62_v41, %v39_v20  ;;  %v3787_v21 = vld [vmem:[#allocation5 + $0x78] sm:$0xff]  ;;  %v401_v35 = vlaneseq }
  0x91   :  { %3365 = vrsqrt.f32 %v3704_v38  ;;  %vm118_vm13 = vcmp.eq.f32.partialorder %v3704_v38, inf  ;;  %vm125_vm14 = vcmp.eq.f32.partialorder %v3710_v48, inf  ;;  %vm120_vm15 = vcmp.eq.f32.partialorder %v3704_v38, 0.0 }
  0x92   :  { %v3354_v36 = vpop.eup %3353  ;;  %3367 = vrsqrt.f32 %v3710_v48  ;;  %v128_v28 = vand.u32 2147483648, %v3710_v48 }
  0x93   :  { %v131_v37 = vmul.f32 %v3354_v36, %v80_v25  ;;  %v3356_v40 = vpop.eup %3355  ;;  %v3857_v36 = vshrl.u32 %v401_v35, 7 }
  0x94   :  { %v89_v50 = vmul.f32 %v3356_v40, %v3692_v26 }
  0x95   :  { %v133_v42 = vsel %vm132_vm1, %v80_v25, %v131_v37  ;;  %vm127_vm1 = vcmp.eq.f32.partialorder %v3710_v48, 0.0  ;;  %v407_v41 = vsub.s32 1, %v3857_v36 }
  0x96   :  { %v3706_v44 = vsel %vm134_vm2, %v135_v39, %v133_v42  ;;  %v3358_v46 = vpop.eup %3357  ;;  %v91_v56 = vsel %vm90_vm5, %v3692_v26, %v89_v50  ;;  %v121_v26 = vand.u32 2147483648, %v3704_v38  ;;  %v397_v39 = vld [vmem:[#allocation5 + $0x40] ss:$8 sm:$0x3]  ;;  %vm582_vm2 = vcmask 261120  }
  0x97   :  { %3178 = vmatmul.mubr.msk.f32.vlgmr.msra.gmra.mxu1 %vm141_vm0, %v3706_v44  ;;  %v82_v49 = vmul.f32 %v3358_v46, %v73_v29  ;;  %v3360_v51 = vpop.eup %3359  ;;  %v94_v61 = vsel %vm92_vm6, %v93_v60, %v91_v56  ;;  %v408_v46 = vrot.slane %v397_v39, %v407_v41 }
  0x98   :  { %312 = vmatpush1.msra.mxu1 %v281_v43  ;;  %347 = vmatprep.mubr.f32.mxu1 %v3635_v13  ;;  %v96_v58 = vmul.f32 %v3360_v51, %v3695_v30 }
  0x99   :  { %313 = vmatprep.subr.mxu1 %v280_v45  ;;  %v84_v53 = vsel %vm83_vm3, %v73_v29, %v82_v49  ;;  %v3805_v29 = vld [vmem:[#allocation5 + $0x68] sm:$0xff]  ;;  %vm584_vm3 = vcmask 523520  }
  0x9a   :  { %314 = vmatpush1.msra.mxu1 %v279_v47  ;;  %v87_v54 = vsel %vm85_vm4, %v86_v52, %v84_v53  ;;  %v3362_v59 = vpop.eup %3361  ;;  %v98_v63 = vsel %vm97_vm7, %v3695_v30, %v96_v58  ;;  %vm475_vm4 = vcmask 523264  }
  0x9b   :  { %623 = vmatprep.subr.mxu1 %v3689_v22  ;;  %3171 = vmatmul.mubr.msk.f32.vlgmr.msra.gmra.mxu0 %vm141_vm0, %v87_v54  ;;  %v103_v1 = vmul.f32 %v3362_v59, %v3698_v32  ;;  %v3364_v2 = vpop.eup %3363  ;;  %v101_v4 = vsel %vm99_vm8, %v100_v3, %v98_v63 }
  0x9c   :  { %3179 = vmatmul.mubr.msk.f32.vlgmr.msra.gmra.mxu1 %vm141_vm0, %v87_v54  ;;  %236 = vmatprep.mubr.f32.mxu0 %v3635_v13  ;;  %v110_v8 = vmul.f32 %v3364_v2, %v3700_v34 }
  0x9d   :  { %353 = vmatprep.mubr.f32.mxu1 %v3635_v13  ;;  %496 = vmatpush1.msra.mxu0 %v3716_v55  ;;  %v105_v6 = vsel %vm104_vm9, %v3698_v32, %v103_v1  ;;  %v3817_v32 = vld [vmem:[#allocation5 + $0x58] sm:$0xff] }
  0x9e   :  { %624 = vmatpush1.msra.mxu1 %v3716_v55  ;;  %497 = vmatprep.subr.mxu0 %v3723_v57  ;;  %v3366_v9 = vpop.eup %3365  ;;  %v108_v11 = vsel %vm106_vm10, %v107_v10, %v105_v6  ;;  %v112_v14 = vsel %vm111_vm11, %v3700_v34, %v110_v8  ;;  %v3821_v34 = vld [vmem:[#allocation5 + $0x50] sm:$0xff] }
  0x9f   :  { %625 = vmatprep.subr.mxu1 %v3723_v57  ;;  %3172 = vmatmul.mubr.msk.f32.gmra.mxu0 %vm141_vm0, %v94_v61  ;;  %v117_v16 = vmul.f32 %v3366_v9, %v3704_v38  ;;  %v3368_v17 = vpop.eup %3367  ;;  %v115_v20 = vsel %vm113_vm12, %v114_v18, %v112_v14 }
  0xa0   :  { %3180 = vmatmul.mubr.msk.f32.gmra.mxu1 %vm141_vm0, %v94_v61  ;;  %242 = vmatprep.mubr.f32.mxu0 %v3635_v13  ;;  %v124_v25 = vmul.f32 %v3368_v17, %v3710_v48 }
  0xa1   :  { %359 = vmatprep.mubr.f32.mxu1 %v3635_v13  ;;  %498 = vmatpush1.msra.mxu0 %v3734_v62  ;;  %v119_v23 = vsel %vm118_vm13, %v3704_v38, %v117_v16  ;;  %v403_v38 = vsub.s32 0, %v3857_v36 }
  0xa2   :  { %626 = vmatpush1.msra.mxu1 %v3734_v62  ;;  %499 = vmatprep.subr.mxu0 %v3740_v0  ;;  %v122_v27 = vsel %vm120_vm15, %v121_v26, %v119_v23  ;;  %v126_v30 = vsel %vm125_vm14, %v3710_v48, %v124_v25 }
  0xa3   :  { %627 = vmatprep.subr.mxu1 %v3740_v0  ;;  %3173 = vmatmul.mubr.msk.f32.gmra.mxu0 %vm141_vm0, %v101_v4  ;;  %v129_v33 = vsel %vm127_vm1, %v128_v28, %v126_v30  ;;  %v3863_v42 = vrot.slane %v397_v39, %v403_v38 }
  0xa4   :  { %3181 = vmatmul.mubr.msk.f32.gmra.mxu1 %vm141_vm0, %v101_v4  ;;  %248 = vmatprep.mubr.f32.mxu0 %v3635_v13 }
  0xa5   :  { %365 = vmatprep.mubr.f32.mxu1 %v3635_v13  ;;  %500 = vmatpush1.msra.mxu0 %v3750_v5 }
  0xa6   :  { %628 = vmatpush1.msra.mxu1 %v3750_v5  ;;  %501 = vmatprep.subr.mxu0 %v3757_v7 }
  0xa7   :  { %629 = vmatprep.subr.mxu1 %v3757_v7  ;;  %3174 = vmatmul.mubr.msk.f32.gmra.mxu0 %vm141_vm0, %v108_v11 }
  0xa8   :  { %3182 = vmatmul.mubr.msk.f32.gmra.mxu1 %vm141_vm0, %v108_v11  ;;  %254 = vmatprep.mubr.f32.mxu0 %v3635_v13 }
  0xa9   :  { %371 = vmatprep.mubr.f32.mxu1 %v3635_v13  ;;  %502 = vmatpush1.msra.mxu0 %v3767_v12 }
  0xaa   :  { %630 = vmatpush1.msra.mxu1 %v3767_v12  ;;  %503 = vmatprep.subr.mxu0 %v3774_v15 }
  0xab   :  { %631 = vmatprep.subr.mxu1 %v3774_v15  ;;  %3175 = vmatmul.mubr.msk.f32.gmra.mxu0 %vm141_vm0, %v115_v20 }
  0xac   :  { %3183 = vmatmul.mubr.msk.f32.gmra.mxu1 %vm141_vm0, %v115_v20  ;;  %504 = vmatpush1.msra.mxu0 %v3782_v19 }
  0xad   :  { %260 = vmatprep.mubr.f32.mxu0 %v3635_v13  ;;  %377 = vmatprep.mubr.f32.mxu1 %v3635_v13 }
  0xae   :  { %505 = vmatprep.subr.mxu0 %v3787_v21  ;;  %632 = vmatpush1.msra.mxu1 %v3782_v19 }
  0xaf   :  { %506 = vmatpush1.msra.mxu0 %v3793_v24  ;;  %633 = vmatprep.subr.mxu1 %v3787_v21 }
  0xb0   :  { %3176 = vmatmul.mubr.msk.f32.gmra.mxu0 %vm141_vm0, %v122_v27  ;;  %3184 = vmatmul.mubr.msk.f32.gmra.mxu1 %vm141_vm0, %v122_v27 }
  0xb1   :  { %266 = vmatprep.mubr.f32.mxu0 %v3635_v13  ;;  %383 = vmatprep.mubr.f32.mxu1 %v3635_v13 }
  0xb2   :  { %507 = vmatprep.subr.mxu0 %v3805_v29  ;;  %634 = vmatpush1.msra.mxu1 %v3793_v24 }
  0xb3   :  { %508 = vmatpush1.msra.mxu0 %v3812_v31  ;;  %635 = vmatprep.subr.mxu1 %v3805_v29 }
  0xb4   :  { %3177 = vmatmul.mubr.msk.f32.gmra.mxu0 %vm141_vm0, %v129_v33  ;;  %3185 = vmatmul.mubr.msk.f32.gmra.mxu1 %vm141_vm0, %v129_v33 }
  0xb5   :  { %389 = vmatprep.mubr.f32.mxu1 %v3635_v13  ;;  %509 = vmatprep.subr.mxu0 %v3817_v32 }
  0xb6   :  { %510 = vmatpush1.msra.mxu0 %v3821_v34  ;;  %543 = vmatprep.mubr.f32.mxu0 %v3635_v13 }
  0xb7   :  { %749 = vmatprep.subr.mxu0 %v3689_v22  ;;  %636 = vmatpush1.msra.mxu1 %v3812_v31 }
  0xb8   :  { %3186 = vmatmul.mubr.msk.f32.gmra.mxu1 %vm141_vm0, %v3706_v44  ;;  %544 = vmatmul.mubr.f32.vlgmr.msra.gmra.mxu0 %v3635_v13 }
  0xb9   :  { %671 = vmatprep.mubr.f32.mxu1 %v3635_v13  ;;  %637 = vmatprep.subr.mxu1 %v3817_v32 }
  0xba   :  { %750 = vmatpush1.msra.mxu0 %v3716_v55  ;;  %638 = vmatpush1.msra.mxu1 %v3821_v34 }
  0xbb   :  { %751 = vmatprep.subr.mxu0 %v3723_v57  ;;  %797 = vmatprep.mubr.f32.mxu0 %v3635_v13 }
  0xbc   :  { %752 = vmatpush1.msra.mxu0 %v3734_v62  ;;  %875 = vmatprep.subr.mxu1 %v3689_v22 }
  0xbd   :  { %753 = vmatprep.subr.mxu0 %v3740_v0 }
  0xbe   :  { %754 = vmatpush1.msra.mxu0 %v3750_v5 }
  0xbf   :  { %755 = vmatprep.subr.mxu0 %v3757_v7 }
  0xc0   :  { %756 = vmatpush1.msra.mxu0 %v3767_v12 }
  0xc1   :  { %757 = vmatprep.subr.mxu0 %v3774_v15 }
  0xc2   :  { %758 = vmatpush1.msra.mxu0 %v3782_v19 }
  0xc3   :  { %759 = vmatprep.subr.mxu0 %v3787_v21 }
  0xc4   :  { %760 = vmatpush1.msra.mxu0 %v3793_v24 }
  0xc5   :  { %761 = vmatprep.subr.mxu0 %v3805_v29 }
  0xc6   :  { %762 = vmatpush1.msra.mxu0 %v3812_v31 }
  0xc7   :  { %763 = vmatprep.subr.mxu0 %v3817_v32 }
  0xc8   :  { %764 = vmatpush1.msra.mxu0 %v3821_v34 }
  0xc9   :  { %1001 = vmatprep.subr.mxu0 %v3689_v22 }
 0x157   :  { %v274_v37 = vpop.f32.mrf.mxu1 }
 0x159   :  { %v276_v40 = vpop.f32.mrf.mxu1 }
 0x15b   :  { %v232_v43 = vpop.f32.mrf.mxu0 }
 0x15c   :  { %v349_v44 = vpop.f32.mrf.mxu1 }
 0x15d   :  { %v451_v45 = vadd.f32 %v349_v44, %v274_v37  ;;  %v234_v47 = vpop.f32.mrf.mxu0 }
 0x15e   :  { %v351_v48 = vpop.f32.mrf.mxu1 }
 0x15f   :  { %v452_v49 = vadd.f32 %v351_v48, %v276_v40  ;;  %v3868_v50 = vadd.f32 %v451_v45, %v3863_v42  ;;  %v238_v51 = vpop.f32.mrf.mxu0 }
 0x160   :  { %v355_v52 = vpop.f32.mrf.mxu1 }
 0x161   :  { %v3870_v53 = vadd.f32 %v452_v49, %v408_v46  ;;  %v240_v54 = vpop.f32.mrf.mxu0 }
 0x162   :  { %v357_v56 = vpop.f32.mrf.mxu1 }
 0x163   :  { %v244_v58 = vpop.f32.mrf.mxu0 }
 0x164   :  { %v361_v59 = vpop.f32.mrf.mxu1 }
 0x165   :  { %v246_v60 = vpop.f32.mrf.mxu0 }
 0x166   :  { %v363_v61 = vpop.f32.mrf.mxu1 }
 0x167   :  { %v250_v63 = vpop.f32.mrf.mxu0 }
 0x168   :  { %v367_v1 = vpop.f32.mrf.mxu1 }
 0x169   :  { %v252_v2 = vpop.f32.mrf.mxu0 }
 0x16a   :  { %v369_v3 = vpop.f32.mrf.mxu1 }
 0x16b   :  { %v256_v4 = vpop.f32.mrf.mxu0 }
 0x16c   :  { %v373_v6 = vpop.f32.mrf.mxu1  ;;  %v433_v8 = vadd.f32 %v367_v1, %v256_v4 }
 0x16d   :  { %v427_v9 = vadd.f32 %v373_v6, %v250_v63  ;;  %v258_v10 = vpop.f32.mrf.mxu0 }
 0x16e   :  { %v375_v11 = vpop.f32.mrf.mxu1  ;;  %v434_v14 = vadd.f32 %v369_v3, %v258_v10  ;;  %v3876_v18 = vadd.f32 %v433_v8, %v3863_v42 }
 0x16f   :  { %v428_v16 = vadd.f32 %v375_v11, %v252_v2  ;;  %v3873_v17 = vadd.f32 %v427_v9, %v3863_v42 }
 0x170   :  { %v262_v20 = vpop.f32.mrf.mxu0  ;;  %v379_v23 = vpop.f32.mrf.mxu1  ;;  %v3880_v28 = vadd.f32 %v434_v14, %v408_v46 }
 0x171   :  { %v439_v25 = vadd.f32 %v361_v59, %v262_v20  ;;  %v421_v26 = vadd.f32 %v379_v23, %v244_v58  ;;  %v3878_v27 = vadd.f32 %v428_v16, %v408_v46 }
 0x172   :  { %v264_v30 = vpop.f32.mrf.mxu0  ;;  %v381_v33 = vpop.f32.mrf.mxu1 }
 0x173   :  { %v440_v35 = vadd.f32 %v363_v61, %v264_v30  ;;  %v422_v37 = vadd.f32 %v381_v33, %v246_v60  ;;  %v3883_v39 = vadd.f32 %v421_v26, %v3863_v42  ;;  %v3886_v40 = vadd.f32 %v439_v25, %v3863_v42 }
 0x174   :  { %v268_v44 = vpop.f32.mrf.mxu0  ;;  %v385_v45 = vpop.f32.mrf.mxu1 }
 0x175   :  { %v445_v48 = vadd.f32 %v355_v52, %v268_v44  ;;  %v415_v49 = vadd.f32 %v385_v45, %v238_v51  ;;  %v3888_v59 = vadd.f32 %v422_v37, %v408_v46  ;;  %v3890_v58 = vadd.f32 %v440_v35, %v408_v46 }
 0x176   :  { %v270_v63 = vpop.f32.mrf.mxu0  ;;  %v387_v1 = vpop.f32.mrf.mxu1 }
 0x177   :  { %v446_v2 = vadd.f32 %v357_v56, %v270_v63  ;;  %v416_v3 = vadd.f32 %v387_v1, %v240_v54  ;;  %v3893_v60 = vadd.f32 %v415_v49, %v3863_v42  ;;  %v3896_v61 = vadd.f32 %v445_v48, %v3863_v42 }
 0x178   :  { %v391_v4 = vpop.f32.mrf.mxu1  ;;  %v545_v9 = vpop.f32.mrf.mxu0 }
 0x179   :  { %v398_v6 = vadd.f32 %v391_v4, %v232_v43  ;;  %v3898_v8 = vadd.f32 %v416_v3, %v408_v46  ;;  %v3900_v52 = vadd.f32 %v446_v2, %v408_v46 }
 0x17a   :  { %v393_v51 = vpop.f32.mrf.mxu1  ;;  %v547_v54 = vpop.f32.mrf.mxu0 }
 0x17b   :  { %v399_v10 = vadd.f32 %v393_v51, %v234_v47  ;;  %v411_v11 = vadd.f32 %v3863_v42, %v398_v6 }
 0x17d   :  { %v550_v14 = vadd.f32 %v545_v9, %v411_v11  ;;  %v412_v56 = vadd.f32 %v408_v46, %v399_v10 }
 0x17f   :  { %v551_v16 = vadd.f32 %v547_v54, %v412_v56  ;;  %v3187_v23 = vmul.f32 -1.442695, %v550_v14 }
 0x181   :  { %3369 = vtanh.f32 %v551_v16  ;;  %v3188_v37 = vmul.f32 -1.442695, %v551_v16 }
 0x182   :  { %3371 = vpow2.f32 %v3187_v23 }
 0x18e   :  { %v3370_v20 = vpop.eup %3369 }
 0x18f   :  { %567 = vrot.lane.b32.xlu0 %v3370_v20, %s3636_s0  ;;  %v3372_v43 = vpop.eup %3371 }
 0x190   :  { %v558_v25 = vadd.f32 1.0, %v3372_v43 }
 0x192   :  { %3373 = vrcp.f32 %v558_v25 }
 0x19f   :  { %v3374_v26 = vpop.eup %3373 }
 0x1a0   :  { %v565_v42 = vmul.f32 0.0, %v3374_v26 }
 0x201   :  { %v568_v30 = vpop.permute.xlu0 %567 }
 0x202   :  { %v570_v33 = vmul.f32 %v3374_v26, %v568_v30 }
 0x204   :  { %572 = vrot.lane.b32.xlu1 %v570_v33, %s3636_s0 }
 0x276   :  { %v573_v47 = vpop.permute.xlu1 %572 }
 0x277   :  { %v575_v46 = vadd.f32 %v573_v47, %v565_v42 }
 0x279   :  { %3375 = vtanh.f32 %v575_v46 }
 0x27a   :  { %3377 = vpow2.f32 %v3188_v37 }
 0x286   :  { %v3376_v35 = vpop.eup %3375 }
 0x287   :  { %578 = vrot.lane.b32.xlu0 %v3376_v35, %s3636_s0  ;;  %v3378_v44 = vpop.eup %3377 }
 0x288   :  { %v559_v45 = vadd.f32 1.0, %v3378_v44 }
 0x28a   :  { %3379 = vrcp.f32 %v559_v45 }
 0x297   :  { %v3380_v48 = vpop.eup %3379 }
 0x2f9   :  { %v579_v49 = vpop.permute.xlu0 %578 }
 0x2fa   :  { %v581_v63 = vmul.f32 %v3380_v48, %v579_v49 }
 0x2fc   :  { %583 = vst.msk [vmem:[#allocation2] sm:$0xff] %vm582_vm2, %v581_v63  ;;  %3189 = vmatmul.mubr.msk.f32.vlgmr.msra.gmra.mxu1 %vm475_vm4, %v581_v63 }
 0x2fd   :  { %585 = vst.msk [vmem:[#allocation2 + $0x38] sm:$0xff] %vm584_vm3, %v581_v63  ;;  %876 = vmatpush1.msra.mxu1 %v3716_v55  ;;  %923 = vmatprep.mubr.f32.mxu1 %v3635_v13 }
 0x2fe   :  { %877 = vmatprep.subr.mxu1 %v3723_v57 }
 0x2ff   :  { %878 = vmatpush1.msra.mxu1 %v3734_v62 }
 0x300   :  { %879 = vmatprep.subr.mxu1 %v3740_v0 }
 0x301   :  { %880 = vmatpush1.msra.mxu1 %v3750_v5 }
 0x302   :  { %881 = vmatprep.subr.mxu1 %v3757_v7 }
 0x303   :  { %882 = vmatpush1.msra.mxu1 %v3767_v12 }
 0x304   :  { %883 = vmatprep.subr.mxu1 %v3774_v15 }
 0x305   :  { %884 = vmatpush1.msra.mxu1 %v3782_v19 }
 0x306   :  { %885 = vmatprep.subr.mxu1 %v3787_v21 }
 0x307   :  { %886 = vmatpush1.msra.mxu1 %v3793_v24 }
 0x308   :  { %887 = vmatprep.subr.mxu1 %v3805_v29 }
 0x309   :  { %888 = vmatpush1.msra.mxu1 %v3812_v31 }
 0x30a   :  { %889 = vmatprep.subr.mxu1 %v3817_v32 }
 0x30b   :  { %890 = vmatpush1.msra.mxu1 %v3821_v34 }
 0x30c   :  { %1127 = vmatprep.subr.mxu1 %v3689_v22 }
 0x3bc   :  { %v673_v1 = vpop.f32.mrf.mxu1 }
 0x3bd   :  { %v678_v2 = vadd.f32 %v673_v1, %v3893_v60 }
 0x3be   :  { %v675_v3 = vpop.f32.mrf.mxu1 }
 0x3bf   :  { %v679_v4 = vadd.f32 %v675_v3, %v3898_v8  ;;  %v3190_v51 = vmul.f32 -1.442695, %v678_v2 }
 0x3c1   :  { %3381 = vtanh.f32 %v679_v4  ;;  %v3191_v8 = vmul.f32 -1.442695, %v679_v4 }
 0x3c2   :  { %3383 = vpow2.f32 %v3190_v51 }
 0x3ce   :  { %v3382_v6 = vpop.eup %3381 }
 0x3cf   :  { %695 = vrot.lane.b32.xlu1 %v3382_v6, %s3636_s0  ;;  %v3384_v9 = vpop.eup %3383 }
 0x3d0   :  { %v686_v10 = vadd.f32 1.0, %v3384_v9 }
 0x3d2   :  { %3385 = vrcp.f32 %v686_v10 }
 0x3df   :  { %v3386_v11 = vpop.eup %3385 }
 0x3e0   :  { %v693_v54 = vmul.f32 %v3386_v11, %v575_v46 }
 0x441   :  { %v696_v14 = vpop.permute.xlu1 %695 }
 0x442   :  { %v698_v56 = vmul.f32 %v3386_v11, %v696_v14 }
 0x444   :  { %700 = vrot.lane.b32.xlu0 %v698_v56, %s3636_s0 }
 0x4b6   :  { %v701_v16 = vpop.permute.xlu0 %700 }
 0x4b7   :  { %v703_v60 = vadd.f32 %v701_v16, %v693_v54 }
 0x4b9   :  { %3387 = vtanh.f32 %v703_v60 }
 0x4ba   :  { %3389 = vpow2.f32 %v3191_v8 }
 0x4c6   :  { %v3388_v20 = vpop.eup %3387 }
 0x4c7   :  { %706 = vrot.lane.b32.xlu1 %v3388_v20, %s3636_s0  ;;  %v3390_v23 = vpop.eup %3389 }
 0x4c8   :  { %v687_v43 = vadd.f32 1.0, %v3390_v23 }
 0x4ca   :  { %3391 = vrcp.f32 %v687_v43 }
 0x4d7   :  { %v3392_v25 = vpop.eup %3391 }
 0x539   :  { %v707_v26 = vpop.permute.xlu1 %706 }
 0x53a   :  { %v709_v30 = vmul.f32 %v3392_v25, %v707_v26 }
 0x53c   :  { %710 = vst.msk [vmem:[#allocation2 + $0x8] sm:$0xff] %vm582_vm2, %v709_v30  ;;  %3192 = vmatmul.mubr.msk.f32.vlgmr.msra.gmra.mxu0 %vm475_vm4, %v709_v30 }
 0x53d   :  { %711 = vst.msk [vmem:[#allocation2 + $0x30] sm:$0xff] %vm584_vm3, %v709_v30  ;;  %1002 = vmatpush1.msra.mxu0 %v3716_v55  ;;  %1049 = vmatprep.mubr.f32.mxu0 %v3635_v13 }
 0x53e   :  { %1003 = vmatprep.subr.mxu0 %v3723_v57 }
 0x53f   :  { %1004 = vmatpush1.msra.mxu0 %v3734_v62 }
 0x540   :  { %1005 = vmatprep.subr.mxu0 %v3740_v0 }
 0x541   :  { %1006 = vmatpush1.msra.mxu0 %v3750_v5 }
 0x542   :  { %1007 = vmatprep.subr.mxu0 %v3757_v7 }
 0x543   :  { %1008 = vmatpush1.msra.mxu0 %v3767_v12 }
 0x544   :  { %1009 = vmatprep.subr.mxu0 %v3774_v15 }
 0x545   :  { %1010 = vmatpush1.msra.mxu0 %v3782_v19 }
 0x546   :  { %1011 = vmatprep.subr.mxu0 %v3787_v21 }
 0x547   :  { %1012 = vmatpush1.msra.mxu0 %v3793_v24 }
 0x548   :  { %1013 = vmatprep.subr.mxu0 %v3805_v29 }
 0x549   :  { %1014 = vmatpush1.msra.mxu0 %v3812_v31 }
 0x54a   :  { %1015 = vmatprep.subr.mxu0 %v3817_v32 }
 0x54b   :  { %1016 = vmatpush1.msra.mxu0 %v3821_v34 }
 0x54c   :  { %1253 = vmatprep.subr.mxu0 %v3689_v22 }
 0x5fc   :  { %v799_v33 = vpop.f32.mrf.mxu0 }
 0x5fd   :  { %v804_v42 = vadd.f32 %v799_v33, %v3883_v39 }
 0x5fe   :  { %v801_v47 = vpop.f32.mrf.mxu0 }
 0x5ff   :  { %v805_v46 = vadd.f32 %v801_v47, %v3888_v59  ;;  %v3193_v37 = vmul.f32 -1.442695, %v804_v42 }
 0x601   :  { %3393 = vtanh.f32 %v805_v46  ;;  %v3194_v59 = vmul.f32 -1.442695, %v805_v46 }
 0x602   :  { %3395 = vpow2.f32 %v3193_v37 }
 0x60e   :  { %v3394_v35 = vpop.eup %3393 }
 0x60f   :  { %821 = vrot.lane.b32.xlu0 %v3394_v35, %s3636_s0  ;;  %v3396_v44 = vpop.eup %3395 }
 0x610   :  { %v812_v45 = vadd.f32 1.0, %v3396_v44 }
 0x612   :  { %3397 = vrcp.f32 %v812_v45 }
 0x61f   :  { %v3398_v48 = vpop.eup %3397 }
 0x620   :  { %v819_v22 = vmul.f32 %v3398_v48, %v703_v60 }
 0x681   :  { %v822_v49 = vpop.permute.xlu0 %821 }
 0x682   :  { %v824_v63 = vmul.f32 %v3398_v48, %v822_v49 }
 0x684   :  { %826 = vrot.lane.b32.xlu1 %v824_v63, %s3636_s0 }
 0x6f6   :  { %v827_v1 = vpop.permute.xlu1 %826 }
 0x6f7   :  { %v829_v39 = vadd.f32 %v827_v1, %v819_v22 }
 0x6f9   :  { %3399 = vtanh.f32 %v829_v39 }
 0x6fa   :  { %3401 = vpow2.f32 %v3194_v59 }
 0x706   :  { %v3400_v2 = vpop.eup %3399 }
 0x707   :  { %832 = vrot.lane.b32.xlu0 %v3400_v2, %s3636_s0  ;;  %v3402_v3 = vpop.eup %3401 }
 0x708   :  { %v813_v4 = vadd.f32 1.0, %v3402_v3 }
 0x70a   :  { %3403 = vrcp.f32 %v813_v4 }
 0x717   :  { %v3404_v6 = vpop.eup %3403 }
 0x779   :  { %v833_v51 = vpop.permute.xlu0 %832 }
 0x77a   :  { %v835_v9 = vmul.f32 %v3404_v6, %v833_v51 }
 0x77c   :  { %836 = vst.msk [vmem:[#allocation2 + $0x10] sm:$0xff] %vm582_vm2, %v835_v9  ;;  %3195 = vmatmul.mubr.msk.f32.vlgmr.msra.gmra.mxu1 %vm475_vm4, %v835_v9 }
 0x77d   :  { %837 = vst.msk [vmem:[#allocation2 + $0x28] sm:$0xff] %vm584_vm3, %v835_v9  ;;  %1128 = vmatpush1.msra.mxu1 %v3716_v55  ;;  %1175 = vmatprep.mubr.f32.mxu1 %v3635_v13 }
 0x77e   :  { %1129 = vmatprep.subr.mxu1 %v3723_v57 }
 0x77f   :  { %1130 = vmatpush1.msra.mxu1 %v3734_v62 }
 0x780   :  { %1131 = vmatprep.subr.mxu1 %v3740_v0 }
 0x781   :  { %1132 = vmatpush1.msra.mxu1 %v3750_v5 }
 0x782   :  { %1133 = vmatprep.subr.mxu1 %v3757_v7 }
 0x783   :  { %1134 = vmatpush1.msra.mxu1 %v3767_v12 }
 0x784   :  { %1135 = vmatprep.subr.mxu1 %v3774_v15 }
 0x785   :  { %1136 = vmatpush1.msra.mxu1 %v3782_v19 }
 0x786   :  { %1137 = vmatprep.subr.mxu1 %v3787_v21 }
 0x787   :  { %1138 = vmatpush1.msra.mxu1 %v3793_v24 }
 0x788   :  { %1139 = vmatprep.subr.mxu1 %v3805_v29 }
 0x789   :  { %1140 = vmatpush1.msra.mxu1 %v3812_v31 }
 0x78a   :  { %1141 = vmatprep.subr.mxu1 %v3817_v32 }
 0x78b   :  { %1142 = vmatpush1.msra.mxu1 %v3821_v34 }
 0x83c   :  { %v925_v10 = vpop.f32.mrf.mxu1 }
 0x83d   :  { %v930_v11 = vadd.f32 %v925_v10, %v3873_v17 }
 0x83e   :  { %v927_v14 = vpop.f32.mrf.mxu1 }
 0x83f   :  { %v931_v56 = vadd.f32 %v927_v14, %v3878_v27  ;;  %v3196_v16 = vmul.f32 -1.442695, %v930_v11 }
 0x841   :  { %3405 = vtanh.f32 %v931_v56  ;;  %v3197_v27 = vmul.f32 -1.442695, %v931_v56 }
 0x842   :  { %3407 = vpow2.f32 %v3196_v16 }
 0x84e   :  { %v3406_v54 = vpop.eup %3405 }
 0x84f   :  { %947 = vrot.lane.b32.xlu1 %v3406_v54, %s3636_s0  ;;  %v3408_v60 = vpop.eup %3407 }
 0x850   :  { %v938_v20 = vadd.f32 1.0, %v3408_v60 }
 0x852   :  { %3409 = vrcp.f32 %v938_v20 }
 0x85f   :  { %v3410_v8 = vpop.eup %3409 }
 0x860   :  { %v945_v25 = vmul.f32 %v3410_v8, %v829_v39 }
 0x8c1   :  { %v948_v23 = vpop.permute.xlu1 %947 }
 0x8c2   :  { %v950_v43 = vmul.f32 %v3410_v8, %v948_v23 }
 0x8c4   :  { %952 = vrot.lane.b32.xlu0 %v950_v43, %s3636_s0 }
 0x936   :  { %v953_v26 = vpop.permute.xlu0 %952 }
 0x937   :  { %v955_v17 = vadd.f32 %v953_v26, %v945_v25 }
 0x939   :  { %3411 = vtanh.f32 %v955_v17 }
 0x93a   :  { %3413 = vpow2.f32 %v3197_v27 }
 0x946   :  { %v3412_v30 = vpop.eup %3411 }
 0x947   :  { %958 = vrot.lane.b32.xlu1 %v3412_v30, %s3636_s0  ;;  %v3414_v33 = vpop.eup %3413 }
 0x948   :  { %v939_v42 = vadd.f32 1.0, %v3414_v33 }
 0x94a   :  { %3415 = vrcp.f32 %v939_v42 }
 0x957   :  { %v3416_v47 = vpop.eup %3415 }
 0x9b9   :  { %v959_v46 = vpop.permute.xlu1 %958 }
 0x9ba   :  { %v961_v35 = vmul.f32 %v3416_v47, %v959_v46 }
 0x9bc   :  { %962 = vst.msk [vmem:[#allocation2 + $0x18] sm:$0xff] %vm582_vm2, %v961_v35  ;;  %3198 = vmatmul.mubr.msk.f32.vlgmr.msra.gmra.mxu0 %vm475_vm4, %v961_v35 }
 0x9bd   :  { %963 = vst.msk [vmem:[#allocation2 + $0x20] sm:$0xff] %vm584_vm3, %v961_v35  ;;  %1254 = vmatpush1.msra.mxu0 %v3716_v55  ;;  %1301 = vmatprep.mubr.f32.mxu0 %v3635_v13 }
 0x9be   :  { %1255 = vmatprep.subr.mxu0 %v3723_v57 }
 0x9bf   :  { %1256 = vmatpush1.msra.mxu0 %v3734_v62 }
 0x9c0   :  { %1257 = vmatprep.subr.mxu0 %v3740_v0 }
 0x9c1   :  { %1258 = vmatpush1.msra.mxu0 %v3750_v5 }
 0x9c2   :  { %1259 = vmatprep.subr.mxu0 %v3757_v7 }
 0x9c3   :  { %1260 = vmatpush1.msra.mxu0 %v3767_v12 }
 0x9c4   :  { %1261 = vmatprep.subr.mxu0 %v3774_v15 }
 0x9c5   :  { %1262 = vmatpush1.msra.mxu0 %v3782_v19 }
 0x9c6   :  { %1263 = vmatprep.subr.mxu0 %v3787_v21 }
 0x9c7   :  { %1264 = vmatpush1.msra.mxu0 %v3793_v24 }
 0x9c8   :  { %1265 = vmatprep.subr.mxu0 %v3805_v29 }
 0x9c9   :  { %1266 = vmatpush1.msra.mxu0 %v3812_v31 }
 0x9ca   :  { %1267 = vmatprep.subr.mxu0 %v3817_v32 }
 0x9cb   :  { %1268 = vmatpush1.msra.mxu0 %v3821_v34 }
 0xa7c   :  { %v1051_v55 = vpop.f32.mrf.mxu0 }
 0xa7d   :  { %v1056_v57 = vadd.f32 %v1051_v55, %v3876_v18 }
 0xa7e   :  { %v1053_v62 = vpop.f32.mrf.mxu0 }
 0xa7f   :  { %v1057_v0 = vadd.f32 %v1053_v62, %v3880_v28  ;;  %v3199_v7 = vmul.f32 -1.442695, %v1056_v57 }
 0xa81   :  { %3417 = vtanh.f32 %v1057_v0  ;;  %v3200_v28 = vmul.f32 -1.442695, %v1057_v0 }
 0xa82   :  { %3419 = vpow2.f32 %v3199_v7  ;;  %v1359_v7 = vld [vmem:[#allocation5 + $0xc8] sm:$0xff] }
 0xa83   :  { %1379 = vmatprep.subr.mxu1 %v1359_v7  ;;  %v1631_v7 = vld [vmem:[#allocation5 + $0x160] sm:$0xff] }
 0xa8e   :  { %v3418_v5 = vpop.eup %3417 }
 0xa8f   :  { %1073 = vrot.lane.b32.xlu0 %v3418_v5, %s3636_s0  ;;  %v3420_v12 = vpop.eup %3419 }
 0xa90   :  { %v1064_v37 = vadd.f32 1.0, %v3420_v12  ;;  %v1358_v12 = vld [vmem:[#allocation5 + $0xc0] sm:$0xff] }
 0xa92   :  { %3421 = vrcp.f32 %v1064_v37  ;;  %v1356_v37 = vld [vmem:[#allocation5 + $0xb0] sm:$0xff] }
 0xa9f   :  { %v3422_v44 = vpop.eup %3421 }
 0xaa0   :  { %v1071_v49 = vmul.f32 %v3422_v44, %v955_v17 }
 0xb01   :  { %v1074_v45 = vpop.permute.xlu0 %1073 }
 0xb02   :  { %v1076_v48 = vmul.f32 %v3422_v44, %v1074_v45  ;;  %v1354_v44 = vld [vmem:[#allocation5 + $0xa0] sm:$0xff]  ;;  %v1353_v45 = vld [vmem:[#allocation5 + $0x98] sm:$0xff] }
 0xb04   :  { %1078 = vrot.lane.b32.xlu1 %v1076_v48, %s3636_s0  ;;  %v1352_v48 = vld [vmem:[#allocation5 + $0x90] sm:$0xff] }
 0xb76   :  { %v1079_v63 = vpop.permute.xlu1 %1078 }
 0xb77   :  { %v1081_v18 = vadd.f32 %v1079_v63, %v1071_v49 }
 0xb79   :  { %3423 = vtanh.f32 %v1081_v18 }
 0xb7a   :  { %3425 = vpow2.f32 %v3200_v28 }
 0xb86   :  { %v3424_v22 = vpop.eup %3423 }
 0xb87   :  { %1084 = vrot.lane.b32.xlu0 %v3424_v22, %s3636_s0  ;;  %v3426_v1 = vpop.eup %3425 }
 0xb88   :  { %v1065_v39 = vadd.f32 1.0, %v3426_v1 }
 0xb8a   :  { %3427 = vrcp.f32 %v1065_v39 }
 0xb97   :  { %v3428_v2 = vpop.eup %3427 }
 0xbf9   :  { %v1085_v59 = vpop.permute.xlu0 %1084 }
 0xbfa   :  { %v1087_v3 = vmul.f32 %v3428_v2, %v1085_v59 }
 0xbfc   :  { %1088 = vst.msk [vmem:[#allocation2 + $0x20] sm:$0xff] %vm582_vm2, %v1087_v3  ;;  %3201 = vmatmul.mubr.msk.f32.vlgmr.msra.gmra.mxu1 %vm475_vm4, %v1087_v3 }
 0xbfd   :  { %1089 = vst.msk [vmem:[#allocation2 + $0x18] sm:$0xff] %vm584_vm3, %v1087_v3  ;;  %1427 = vmatprep.mubr.f32.mxu1 %v3635_v13  ;;  %1380 = vmatpush1.msra.mxu1 %v1358_v12  ;;  %v1476_v12 = vld [vmem:[#allocation5 + $0xd0] sm:$0xff] }
 0xcbc   :  { %v1177_v4 = vpop.f32.mrf.mxu1 }
 0xcbd   :  { %v1182_v6 = vadd.f32 %v1177_v4, %v3886_v40 }
 0xcbe   :  { %v1179_v51 = vpop.f32.mrf.mxu1 }
 0xcbf   :  { %v1183_v9 = vadd.f32 %v1179_v51, %v3890_v58  ;;  %v3202_v11 = vmul.f32 -1.442695, %v1182_v6 }
 0xcc1   :  { %3429 = vtanh.f32 %v1183_v9  ;;  %v3203_v58 = vmul.f32 -1.442695, %v1183_v9  ;;  %v1490_v9 = vld [vmem:[#allocation5 + $0x140] sm:$0xff] }
 0xcc2   :  { %3431 = vpow2.f32 %v3202_v11  ;;  %v1643_v11 = vld [vmem:[#allocation5 + $0x1c0] sm:$0xff] }
 0xcce   :  { %v3430_v10 = vpop.eup %3429 }
 0xccf   :  { %1199 = vrot.lane.b32.xlu1 %v3430_v10, %s3636_s0  ;;  %v3432_v14 = vpop.eup %3431  ;;  %v1644_v10 = vld [vmem:[#allocation5 + $0x1c8] sm:$0xff] }
 0xcd0   :  { %v1190_v56 = vadd.f32 1.0, %v3432_v14  ;;  %v1488_v14 = vld [vmem:[#allocation5 + $0x130] sm:$0xff] }
 0xcd2   :  { %3433 = vrcp.f32 %v1190_v56  ;;  %v1642_v56 = vld [vmem:[#allocation5 + $0x1b8] sm:$0xff] }
 0xcdf   :  { %v3434_v54 = vpop.eup %3433 }
 0xce0   :  { %v1197_v20 = vmul.f32 %v3434_v54, %v1081_v18 }
 0xd41   :  { %v1200_v16 = vpop.permute.xlu1 %1199 }
 0xd42   :  { %v1202_v60 = vmul.f32 %v3434_v54, %v1200_v16  ;;  %v1487_v54 = vld [vmem:[#allocation5 + $0x128] sm:$0xff]  ;;  %v1641_v16 = vld [vmem:[#allocation5 + $0x1b0] sm:$0xff] }
 0xd44   :  { %1204 = vrot.lane.b32.xlu0 %v1202_v60, %s3636_s0  ;;  %v1486_v60 = vld [vmem:[#allocation5 + $0x120] sm:$0xff] }
 0xdb6   :  { %v1205_v8 = vpop.permute.xlu0 %1204 }
 0xdb7   :  { %v1207_v40 = vadd.f32 %v1205_v8, %v1197_v20  ;;  %v1640_v20 = vld [vmem:[#allocation5 + $0x1a8] sm:$0xff]  ;;  %v1485_v8 = vld [vmem:[#allocation5 + $0x118] sm:$0xff] }
 0xdb9   :  { %3435 = vtanh.f32 %v1207_v40 }
 0xdba   :  { %3437 = vpow2.f32 %v3203_v58 }
 0xdc6   :  { %v3436_v23 = vpop.eup %3435 }
 0xdc7   :  { %1210 = vrot.lane.b32.xlu1 %v3436_v23, %s3636_s0  ;;  %v3438_v43 = vpop.eup %3437 }
 0xdc8   :  { %v1191_v25 = vadd.f32 1.0, %v3438_v43 }
 0xdca   :  { %3439 = vrcp.f32 %v1191_v25  ;;  %v1638_v25 = vld [vmem:[#allocation5 + $0x198] sm:$0xff] }
 0xdd7   :  { %v3440_v26 = vpop.eup %3439 }
 0xe39   :  { %v1211_v17 = vpop.permute.xlu1 %1210 }
 0xe3a   :  { %v1213_v30 = vmul.f32 %v3440_v26, %v1211_v17  ;;  %v1484_v26 = vld [vmem:[#allocation5 + $0x110] sm:$0xff] }
 0xe3b   :  { %v1637_v17 = vld [vmem:[#allocation5 + $0x190] sm:$0xff] }
 0xe3c   :  { %1214 = vst.msk [vmem:[#allocation2 + $0x28] sm:$0xff] %vm582_vm2, %v1213_v30  ;;  %3204 = vmatmul.mubr.msk.f32.vlgmr.msra.gmra.mxu0 %vm475_vm4, %v1213_v30 }
 0xe3d   :  { %1215 = vst.msk [vmem:[#allocation2 + $0x10] sm:$0xff] %vm584_vm3, %v1213_v30  ;;  %1580 = vmatprep.mubr.f32.mxu0 %v3635_v13  ;;  %v1483_v30 = vld [vmem:[#allocation5 + $0x108] sm:$0xff] }
 0xefc   :  { %v1303_v27 = vpop.f32.mrf.mxu0 }
 0xefd   :  { %v1308_v33 = vadd.f32 %v1303_v27, %v3896_v61  ;;  %v1357_v61 = vld [vmem:[#allocation5 + $0xb8] sm:$0xff]  ;;  %v1636_v27 = vld [vmem:[#allocation5 + $0x188] sm:$0xff] }
 0xefe   :  { %v1305_v42 = vpop.f32.mrf.mxu0  ;;  %1381 = vmatprep.subr.mxu1 %v1357_v61  ;;  %v1630_v61 = vld [vmem:[#allocation5 + $0x158] sm:$0xff] }
 0xeff   :  { %v1309_v47 = vadd.f32 %v1305_v42, %v3900_v52  ;;  %v3205_v35 = vmul.f32 -1.442695, %v1308_v33  ;;  %v1355_v52 = vld [vmem:[#allocation5 + $0xa8] sm:$0xff]  ;;  %1382 = vmatpush1.msra.mxu1 %v1356_v37  ;;  %v1482_v33 = vld [vmem:[#allocation5 + $0x100] sm:$0xff]  ;;  %v1481_v42 = vld [vmem:[#allocation5 + $0xf8] sm:$0xff] }
 0xf00   :  { %1383 = vmatprep.subr.mxu1 %v1355_v52  ;;  %v1629_v37 = vld [vmem:[#allocation5 + $0x150] sm:$0xff]  ;;  %v4041_v52 = vld [vmem:[#allocation5 + $0x258] sm:$0xff] }
 0xf01   :  { %3441 = vtanh.f32 %v1309_v47  ;;  %1384 = vmatpush1.msra.mxu1 %v1354_v44 }
 0xf02   :  { %3443 = vpow2.f32 %v3205_v35  ;;  %1385 = vmatprep.subr.mxu1 %v1353_v45  ;;  %v1634_v35 = vld [vmem:[#allocation5 + $0x178] sm:$0xff] }
 0xf03   :  { %1386 = vmatpush1.msra.mxu1 %v1352_v48 }
 0xf04   :  { %1387 = vmatprep.subr.mxu1 %v3774_v15  ;;  %v3206_v15 = vmul.f32 -1.442695, %v1309_v47  ;;  %v1635_v47 = vld [vmem:[#allocation5 + $0x180] sm:$0xff] }
 0xf05   :  { %1388 = vmatpush1.msra.mxu1 %v3782_v19 }
 0xf06   :  { %1389 = vmatprep.subr.mxu1 %v3787_v21 }
 0xf07   :  { %1390 = vmatpush1.msra.mxu1 %v3793_v24 }
 0xf08   :  { %1391 = vmatprep.subr.mxu1 %v3805_v29 }
 0xf09   :  { %1392 = vmatpush1.msra.mxu1 %v3812_v31 }
 0xf0a   :  { %1393 = vmatprep.subr.mxu1 %v3817_v32 }
 0xf0b   :  { %1394 = vmatpush1.msra.mxu1 %v3821_v34 }
 0xf0c   :  { %1661 = vmatprep.subr.mxu1 %v1644_v10 }
 0xf0e   :  { %v3442_v46 = vpop.eup %3441 }
 0xf0f   :  { %1325 = vrot.lane.b32.xlu0 %v3442_v46, %s3636_s0  ;;  %v3444_v55 = vpop.eup %3443  ;;  %v1480_v46 = vld [vmem:[#allocation5 + $0xf0] sm:$0xff] }
 0xf10   :  { %v1316_v57 = vadd.f32 1.0, %v3444_v55  ;;  %v1479_v55 = vld [vmem:[#allocation5 + $0xe8] sm:$0xff] }
 0xf12   :  { %3445 = vrcp.f32 %v1316_v57  ;;  %v1633_v57 = vld [vmem:[#allocation5 + $0x170] sm:$0xff] }
 0xf1f   :  { %v3446_v62 = vpop.eup %3445 }
 0xf20   :  { %v1323_v49 = vmul.f32 %v3446_v62, %v1207_v40  ;;  %v1639_v40 = vld [vmem:[#allocation5 + $0x1a0] sm:$0xff] }
 0xf81   :  { %v1326_v0 = vpop.permute.xlu0 %1325 }
 0xf82   :  { %v1328_v5 = vmul.f32 %v3446_v62, %v1326_v0  ;;  %v1478_v62 = vld [vmem:[#allocation5 + $0xe0] sm:$0xff]  ;;  %v1632_v0 = vld [vmem:[#allocation5 + $0x168] sm:$0xff] }
 0xf84   :  { %1330 = vrot.lane.b32.xlu1 %v1328_v5, %s3636_s0  ;;  %v1477_v5 = vld [vmem:[#allocation5 + $0xd8] sm:$0xff] }
 0xff6   :  { %v1331_v63 = vpop.permute.xlu1 %1330 }
 0xff7   :  { %v1333_v18 = vadd.f32 %v1331_v63, %v1323_v49 }
 0xff9   :  { %3447 = vtanh.f32 %v1333_v18 }
 0xffa   :  { %3449 = vpow2.f32 %v3206_v15  ;;  %v4049_v15 = vld [vmem:[#allocation5 + $0x250] sm:$0xff] }
0x1006   :  { %v3448_v22 = vpop.eup %3447 }
0x1007   :  { %1336 = vrot.lane.b32.xlu0 %v3448_v22, %s3636_s0  ;;  %v3450_v19 = vpop.eup %3449 }
0x1008   :  { %v1317_v21 = vadd.f32 1.0, %v3450_v19 }
0x100a   :  { %3451 = vrcp.f32 %v1317_v21  ;;  %v4051_v21 = vld [vmem:[#allocation5 + $0x248] sm:$0xff] }
0x1017   :  { %v3452_v24 = vpop.eup %3451 }
0x1079   :  { %v1337_v29 = vpop.permute.xlu0 %1336 }
0x107a   :  { %v1339_v28 = vmul.f32 %v3452_v24, %v1337_v29  ;;  %v4055_v24 = vld [vmem:[#allocation5 + $0x240] sm:$0xff] }
0x107c   :  { %1340 = vst.msk [vmem:[#allocation2 + $0x30] sm:$0xff] %vm582_vm2, %v1339_v28  ;;  %3207 = vmatmul.mubr.msk.f32.vlgmr.msra.gmra.mxu1 %vm475_vm4, %v1339_v28 }
0x107d   :  { %1341 = vst.msk [vmem:[#allocation2 + $0x8] sm:$0xff] %vm584_vm3, %v1339_v28  ;;  %1709 = vmatprep.mubr.f32.mxu1 %v3635_v13  ;;  %1662 = vmatpush1.msra.mxu1 %v1643_v11  ;;  %v4062_v28 = vld [vmem:[#allocation5 + $0x238] sm:$0xff]  ;;  %v4127_v11 = vld [vmem:[#allocation5 + $0x1e0] sm:$0xff] }
0x107e   :  { %1663 = vmatprep.subr.mxu1 %v1642_v56 }
0x107f   :  { %1664 = vmatpush1.msra.mxu1 %v1641_v16 }
0x1080   :  { %1665 = vmatprep.subr.mxu1 %v1640_v20 }
0x1081   :  { %1666 = vmatpush1.msra.mxu1 %v1639_v40 }
0x1082   :  { %1667 = vmatprep.subr.mxu1 %v1638_v25 }
0x1083   :  { %1668 = vmatpush1.msra.mxu1 %v1637_v17  ;;  %v1474_v10 = vld [vmem:[#allocation2 + $0x30] sm:$0xff] }
0x1084   :  { %1669 = vmatprep.subr.mxu1 %v1636_v27  ;;  %v1469_v29 = vld [vmem:[#allocation2 + $0x8] sm:$0xff]  ;;  %v1759_v27 = vld [vmem:[#allocation5 + $0x1d0] ss:$8 sm:$0x3] }
0x1085   :  { %1670 = vmatpush1.msra.mxu1 %v1635_v47  ;;  %v1766_v47 = vrot.slane %v1759_v27, %v403_v38 }
0x1086   :  { %1671 = vmatprep.subr.mxu1 %v1634_v35 }
0x1087   :  { %1672 = vmatpush1.msra.mxu1 %v1633_v57 }
0x1088   :  { %1673 = vmatprep.subr.mxu1 %v1632_v0 }
0x1089   :  { %1674 = vmatpush1.msra.mxu1 %v1631_v7 }
0x108a   :  { %1675 = vmatprep.subr.mxu1 %v1630_v61 }
0x108b   :  { %1676 = vmatpush1.msra.mxu1 %v1629_v37 }
0x108c   :  { %1979 = vmatprep.subr.mxu1 %v4041_v52 }
0x113c   :  { %v1429_v31 = vpop.f32.mrf.mxu1 }
0x113d   :  { %v1434_v32 = vadd.f32 %v1429_v31, %v3868_v50  ;;  %v1491_v50 = vld [vmem:[#allocation5 + $0x148] sm:$0xff]  ;;  %v4067_v31 = vld [vmem:[#allocation5 + $0x230] sm:$0xff] }
0x113e   :  { %v1431_v34 = vpop.f32.mrf.mxu1  ;;  %1532 = vmatprep.subr.mxu0 %v1491_v50  ;;  %v4110_v50 = vld [vmem:[#allocation5 + $0x1f8] sm:$0xff] }
0x113f   :  { %v4036_v1 = vadd.f32 %v1431_v34, %v3870_v53  ;;  %v3208_v2 = vmul.f32 -1.442695, %v1434_v32  ;;  %v1489_v53 = vld [vmem:[#allocation5 + $0x138] sm:$0xff]  ;;  %1533 = vmatpush1.msra.mxu0 %v1490_v9  ;;  %v1470_v32 = vld [vmem:[#allocation2 + $0x10] sm:$0xff]  ;;  %v4074_v34 = vld [vmem:[#allocation5 + $0x228] sm:$0xff] }
0x1140   :  { %1534 = vmatprep.subr.mxu0 %v1489_v53  ;;  %v4115_v9 = vld [vmem:[#allocation5 + $0x1f0] sm:$0xff]  ;;  %v4122_v53 = vld [vmem:[#allocation5 + $0x1e8] sm:$0xff] }
0x1141   :  { %3453 = vtanh.f32 %v4036_v1  ;;  %1535 = vmatpush1.msra.mxu0 %v1488_v14  ;;  %v3209_v45 = vmul.f32 -1.442695, %v4036_v1  ;;  %v4079_v1 = vld [vmem:[#allocation5 + $0x220] sm:$0xff] }
0x1142   :  { %3455 = vpow2.f32 %v3208_v2  ;;  %1536 = vmatprep.subr.mxu0 %v1487_v54  ;;  %v4086_v2 = vld [vmem:[#allocation5 + $0x218] sm:$0xff] }
0x1143   :  { %1537 = vmatpush1.msra.mxu0 %v1486_v60 }
0x1144   :  { %1538 = vmatprep.subr.mxu0 %v1485_v8 }
0x1145   :  { %1539 = vmatpush1.msra.mxu0 %v1484_v26 }
0x1146   :  { %1540 = vmatprep.subr.mxu0 %v1483_v30 }
0x1147   :  { %1541 = vmatpush1.msra.mxu0 %v1482_v33 }
0x1148   :  { %1542 = vmatprep.subr.mxu0 %v1481_v42 }
0x1149   :  { %1543 = vmatpush1.msra.mxu0 %v1480_v46 }
0x114a   :  { %1544 = vmatprep.subr.mxu0 %v1479_v55 }
0x114b   :  { %1545 = vmatpush1.msra.mxu0 %v1478_v62  ;;  %v1770_v62 = vrot.slane %v1759_v27, %v407_v41 }
0x114c   :  { %1546 = vmatprep.subr.mxu0 %v1477_v5 }
0x114d   :  { %1547 = vmatpush1.msra.mxu0 %v1476_v12 }
0x114e   :  { %v3454_v39 = vpop.eup %3453  ;;  %1853 = vmatprep.subr.mxu0 %v4041_v52 }
0x114f   :  { %1451 = vrot.lane.b32.xlu1 %v3454_v39, %s3636_s0  ;;  %v3456_v59 = vpop.eup %3455  ;;  %v1471_v39 = vld [vmem:[#allocation2 + $0x18] sm:$0xff] }
0x1150   :  { %v1442_v3 = vadd.f32 1.0, %v3456_v59  ;;  %v4091_v59 = vld [vmem:[#allocation5 + $0x210] sm:$0xff] }
0x1152   :  { %3457 = vrcp.f32 %v1442_v3  ;;  %v1472_v3 = vld [vmem:[#allocation2 + $0x20] sm:$0xff] }
0x115f   :  { %v3458_v4 = vpop.eup %3457 }
0x1160   :  { %v1449_v23 = vmul.f32 %v3458_v4, %v1333_v18 }
0x11c1   :  { %v1452_v6 = vpop.permute.xlu1 %1451 }
0x11c2   :  { %v1454_v51 = vmul.f32 %v3458_v4, %v1452_v6  ;;  %v4098_v4 = vld [vmem:[#allocation5 + $0x208] sm:$0xff]  ;;  %v4103_v6 = vld [vmem:[#allocation5 + $0x200] sm:$0xff] }
0x11c4   :  { %1456 = vrot.lane.b32.xlu0 %v1454_v51, %s3636_s0  ;;  %v1473_v51 = vld [vmem:[#allocation2 + $0x28] sm:$0xff] }
0x1236   :  { %v1457_v58 = vpop.permute.xlu0 %1456 }
0x1237   :  { %v1459_v43 = vadd.f32 %v1457_v58, %v1449_v23 }
0x1239   :  { %3459 = vtanh.f32 %v1459_v43 }
0x123a   :  { %3461 = vpow2.f32 %v3209_v45 }
0x1246   :  { %v3460_v44 = vpop.eup %3459 }
0x1247   :  { %1462 = vrot.lane.b32.xlu1 %v3460_v44, %s3636_s0  ;;  %v3462_v48 = vpop.eup %3461 }
0x1248   :  { %v1443_v49 = vadd.f32 1.0, %v3462_v48 }
0x124a   :  { %3463 = vrcp.f32 %v1443_v49 }
0x1257   :  { %v3464_v63 = vpop.eup %3463 }
0x12b9   :  { %v1463_v18 = vpop.permute.xlu1 %1462 }
0x12ba   :  { %v1465_v22 = vmul.f32 %v3464_v63, %v1463_v18 }
0x12bc   :  { %1466 = vst.msk [vmem:[#allocation2 + $0x38] sm:$0xff] %vm582_vm2, %v1465_v22 }
0x12bd   :  { %1467 = vst.msk [vmem:[#allocation2] sm:$0xff] %vm584_vm3, %v1465_v22 }
0x12c3   :  { %v1475_v14 = vld [vmem:[#allocation2 + $0x38] sm:$0xff] }
0x12c4   :  { %v1468_v19 = vld [vmem:[#allocation2] sm:$0xff] }
0x12c5   :  { %3210 = vmatmul.mubr.msk.f32.vlgmr.msra.gmra.mxu0 %vm475_vm4, %v1468_v19  ;;  %3218 = vmatmul.mubr.msk.f32.vlgmr.msra.gmra.mxu1 %vm475_vm4, %v1468_v19 }
0x12c6   :  { %1854 = vmatpush1.msra.mxu0 %v4049_v15  ;;  %1586 = vmatprep.mubr.f32.mxu0 %v3635_v13 }
0x12c7   :  { %1715 = vmatprep.mubr.f32.mxu1 %v3635_v13  ;;  %1855 = vmatprep.subr.mxu0 %v4051_v21 }
0x12c8   :  { %1856 = vmatpush1.msra.mxu0 %v4055_v24  ;;  %1980 = vmatpush1.msra.mxu1 %v4049_v15 }
0x12c9   :  { %3211 = vmatmul.mubr.msk.f32.gmra.mxu0 %vm475_vm4, %v1469_v29  ;;  %3219 = vmatmul.mubr.msk.f32.gmra.mxu1 %vm475_vm4, %v1469_v29 }
0x12ca   :  { %1592 = vmatprep.mubr.f32.mxu0 %v3635_v13  ;;  %1721 = vmatprep.mubr.f32.mxu1 %v3635_v13 }
0x12cb   :  { %1857 = vmatprep.subr.mxu0 %v4062_v28  ;;  %1981 = vmatprep.subr.mxu1 %v4051_v21 }
0x12cc   :  { %1858 = vmatpush1.msra.mxu0 %v4067_v31  ;;  %1982 = vmatpush1.msra.mxu1 %v4055_v24 }
0x12cd   :  { %3212 = vmatmul.mubr.msk.f32.gmra.mxu0 %vm475_vm4, %v1470_v32  ;;  %3220 = vmatmul.mubr.msk.f32.gmra.mxu1 %vm475_vm4, %v1470_v32 }
0x12ce   :  { %1598 = vmatprep.mubr.f32.mxu0 %v3635_v13  ;;  %1727 = vmatprep.mubr.f32.mxu1 %v3635_v13 }
0x12cf   :  { %1859 = vmatprep.subr.mxu0 %v4074_v34  ;;  %1983 = vmatprep.subr.mxu1 %v4062_v28 }
0x12d0   :  { %1860 = vmatpush1.msra.mxu0 %v4079_v1  ;;  %1984 = vmatpush1.msra.mxu1 %v4067_v31 }
0x12d1   :  { %3213 = vmatmul.mubr.msk.f32.gmra.mxu0 %vm475_vm4, %v1471_v39  ;;  %3221 = vmatmul.mubr.msk.f32.gmra.mxu1 %vm475_vm4, %v1471_v39 }
0x12d2   :  { %1604 = vmatprep.mubr.f32.mxu0 %v3635_v13  ;;  %1733 = vmatprep.mubr.f32.mxu1 %v3635_v13 }
0x12d3   :  { %1861 = vmatprep.subr.mxu0 %v4086_v2  ;;  %1985 = vmatprep.subr.mxu1 %v4074_v34 }
0x12d4   :  { %1862 = vmatpush1.msra.mxu0 %v4091_v59  ;;  %1986 = vmatpush1.msra.mxu1 %v4079_v1 }
0x12d5   :  { %3214 = vmatmul.mubr.msk.f32.gmra.mxu0 %vm475_vm4, %v1472_v3  ;;  %3222 = vmatmul.mubr.msk.f32.gmra.mxu1 %vm475_vm4, %v1472_v3 }
0x12d6   :  { %1610 = vmatprep.mubr.f32.mxu0 %v3635_v13  ;;  %1739 = vmatprep.mubr.f32.mxu1 %v3635_v13 }
0x12d7   :  { %1863 = vmatprep.subr.mxu0 %v4098_v4  ;;  %1987 = vmatprep.subr.mxu1 %v4086_v2 }
0x12d8   :  { %1864 = vmatpush1.msra.mxu0 %v4103_v6  ;;  %1988 = vmatpush1.msra.mxu1 %v4091_v59 }
0x12d9   :  { %3215 = vmatmul.mubr.msk.f32.gmra.mxu0 %vm475_vm4, %v1473_v51  ;;  %3223 = vmatmul.mubr.msk.f32.gmra.mxu1 %vm475_vm4, %v1473_v51 }
0x12da   :  { %1616 = vmatprep.mubr.f32.mxu0 %v3635_v13  ;;  %1745 = vmatprep.mubr.f32.mxu1 %v3635_v13 }
0x12db   :  { %1865 = vmatprep.subr.mxu0 %v4110_v50  ;;  %1989 = vmatprep.subr.mxu1 %v4098_v4 }
0x12dc   :  { %1866 = vmatpush1.msra.mxu0 %v4115_v9  ;;  %1990 = vmatpush1.msra.mxu1 %v4103_v6 }
0x12dd   :  { %3216 = vmatmul.mubr.msk.f32.gmra.mxu0 %vm475_vm4, %v1474_v10  ;;  %3224 = vmatmul.mubr.msk.f32.gmra.mxu1 %vm475_vm4, %v1474_v10 }
0x12de   :  { %1622 = vmatprep.mubr.f32.mxu0 %v3635_v13  ;;  %1751 = vmatprep.mubr.f32.mxu1 %v3635_v13 }
0x12df   :  { %1867 = vmatprep.subr.mxu0 %v4122_v53  ;;  %1991 = vmatprep.subr.mxu1 %v4110_v50 }
0x12e0   :  { %1868 = vmatpush1.msra.mxu0 %v4127_v11  ;;  %1992 = vmatpush1.msra.mxu1 %v4115_v9 }
0x12e1   :  { %3217 = vmatmul.mubr.msk.f32.gmra.mxu0 %vm475_vm4, %v1475_v14  ;;  %3225 = vmatmul.mubr.msk.f32.gmra.mxu1 %vm475_vm4, %v1475_v14 }
0x12e2   :  { %1901 = vmatprep.mubr.f32.mxu0 %v3635_v13  ;;  %1993 = vmatprep.subr.mxu1 %v4122_v53 }
0x12e3   :  { %1994 = vmatpush1.msra.mxu1 %v4127_v11  ;;  %2027 = vmatprep.mubr.f32.mxu1 %v3635_v13 }
0x12e4   :  { %2105 = vmatprep.subr.mxu0 %v4041_v52  ;;  %2231 = vmatprep.subr.mxu1 %v4041_v52 }
0x12e5   :  { %1902 = vmatmul.mubr.f32.vlgmr.msra.gmra.mxu0 %v3635_v13 }
0x12e6   :  { %2106 = vmatpush1.msra.mxu0 %v4049_v15  ;;  %2153 = vmatprep.mubr.f32.mxu0 %v3635_v13 }
0x12e7   :  { %2107 = vmatprep.subr.mxu0 %v4051_v21 }
0x12e8   :  { %2108 = vmatpush1.msra.mxu0 %v4055_v24 }
0x12e9   :  { %2109 = vmatprep.subr.mxu0 %v4062_v28 }
0x12ea   :  { %2110 = vmatpush1.msra.mxu0 %v4067_v31 }
0x12eb   :  { %2111 = vmatprep.subr.mxu0 %v4074_v34 }
0x12ec   :  { %2112 = vmatpush1.msra.mxu0 %v4079_v1 }
0x12ed   :  { %2113 = vmatprep.subr.mxu0 %v4086_v2 }
0x12ee   :  { %2114 = vmatpush1.msra.mxu0 %v4091_v59 }
0x12ef   :  { %2115 = vmatprep.subr.mxu0 %v4098_v4 }
0x12f0   :  { %2116 = vmatpush1.msra.mxu0 %v4103_v6 }
0x12f1   :  { %2117 = vmatprep.subr.mxu0 %v4110_v50 }
0x12f2   :  { %2118 = vmatpush1.msra.mxu0 %v4115_v9 }
0x12f3   :  { %2119 = vmatprep.subr.mxu0 %v4122_v53 }
0x12f4   :  { %2120 = vmatpush1.msra.mxu0 %v4127_v11 }
0x12f5   :  { %2357 = vmatprep.subr.mxu0 %v4041_v52 }
0x1385   :  { %v1582_v56 = vpop.f32.mrf.mxu0  ;;  %v1711_v54 = vpop.f32.mrf.mxu1 }
0x1387   :  { %v1584_v16 = vpop.f32.mrf.mxu0  ;;  %v1713_v60 = vpop.f32.mrf.mxu1 }
0x1389   :  { %v1588_v20 = vpop.f32.mrf.mxu0  ;;  %v1717_v8 = vpop.f32.mrf.mxu1 }
0x138b   :  { %v1590_v40 = vpop.f32.mrf.mxu0  ;;  %v1719_v23 = vpop.f32.mrf.mxu1 }
0x138d   :  { %v1594_v58 = vpop.f32.mrf.mxu0  ;;  %v1723_v43 = vpop.f32.mrf.mxu1 }
0x138f   :  { %v1596_v25 = vpop.f32.mrf.mxu0  ;;  %v1725_v26 = vpop.f32.mrf.mxu1 }
0x1391   :  { %v1600_v17 = vpop.f32.mrf.mxu0  ;;  %v1729_v30 = vpop.f32.mrf.mxu1 }
0x1393   :  { %v1602_v33 = vpop.f32.mrf.mxu0  ;;  %v1731_v42 = vpop.f32.mrf.mxu1 }
0x1395   :  { %v1606_v46 = vpop.f32.mrf.mxu0  ;;  %v1735_v35 = vpop.f32.mrf.mxu1 }
0x1396   :  { %v1795_v55 = vadd.f32 %v1729_v30, %v1606_v46  ;;  %v1789_v57 = vadd.f32 %v1735_v35, %v1600_v17 }
0x1397   :  { %v1608_v0 = vpop.f32.mrf.mxu0  ;;  %v1737_v5 = vpop.f32.mrf.mxu1 }
0x1398   :  { %v1796_v7 = vadd.f32 %v1731_v42, %v1608_v0  ;;  %v1790_v12 = vadd.f32 %v1737_v5, %v1602_v33  ;;  %v4165_v61 = vadd.f32 %v1789_v57, %v1766_v47  ;;  %v4167_v37 = vadd.f32 %v1795_v55, %v1766_v47 }
0x1399   :  { %v1612_v44 = vpop.f32.mrf.mxu0  ;;  %v1741_v45 = vpop.f32.mrf.mxu1 }
0x139a   :  { %v1801_v48 = vadd.f32 %v1723_v43, %v1612_v44  ;;  %v1783_v49 = vadd.f32 %v1741_v45, %v1594_v58  ;;  %v4169_v38 = vadd.f32 %v1790_v12, %v1770_v62  ;;  %v4171_v63 = vadd.f32 %v1796_v7, %v1770_v62 }
0x139b   :  { %v1614_v18 = vpop.f32.mrf.mxu0  ;;  %v1743_v22 = vpop.f32.mrf.mxu1 }
0x139c   :  { %v1802_v36 = vadd.f32 %v1725_v26, %v1614_v18  ;;  %v1784_v41 = vadd.f32 %v1743_v22, %v1596_v25  ;;  %v4173_v19 = vadd.f32 %v1783_v49, %v1766_v47  ;;  %v4175_v29 = vadd.f32 %v1801_v48, %v1766_v47 }
0x139d   :  { %v1618_v32 = vpop.f32.mrf.mxu0  ;;  %v1747_v39 = vpop.f32.mrf.mxu1 }
0x139e   :  { %v1807_v3 = vadd.f32 %v1717_v8, %v1618_v32  ;;  %v1777_v51 = vadd.f32 %v1747_v39, %v1588_v20  ;;  %v4177_v10 = vadd.f32 %v1784_v41, %v1770_v62  ;;  %v4179_v14 = vadd.f32 %v1802_v36, %v1770_v62 }
0x139f   :  { %v1620_v58 = vpop.f32.mrf.mxu0  ;;  %v1749_v43 = vpop.f32.mrf.mxu1 }
0x13a0   :  { %v1808_v17 = vadd.f32 %v1719_v23, %v1620_v58  ;;  %v1778_v30 = vadd.f32 %v1749_v43, %v1590_v40  ;;  %v4181_v27 = vadd.f32 %v1777_v51, %v1766_v47  ;;  %v4183_v26 = vadd.f32 %v1807_v3, %v1766_v47 }
0x13a1   :  { %v1624_v25 = vpop.f32.mrf.mxu0  ;;  %v1753_v33 = vpop.f32.mrf.mxu1 }
0x13a2   :  { %v1813_v42 = vadd.f32 %v1711_v54, %v1624_v25  ;;  %v1760_v46 = vadd.f32 %v1753_v33, %v1582_v56  ;;  %v4185_v35 = vadd.f32 %v1778_v30, %v1770_v62  ;;  %v4187_v8 = vadd.f32 %v1808_v17, %v1770_v62 }
0x13a3   :  { %v1626_v20 = vpop.f32.mrf.mxu0  ;;  %v1755_v55 = vpop.f32.mrf.mxu1 }
0x13a4   :  { %v1814_v57 = vadd.f32 %v1713_v60, %v1626_v20  ;;  %v1761_v0 = vadd.f32 %v1755_v55, %v1584_v16  ;;  %v1773_v5 = vadd.f32 %v1766_v47, %v1760_v46  ;;  %v4189_v7 = vadd.f32 %v1813_v42, %v1766_v47 }
0x13a5   :  { %v1903_v40 = vpop.f32.mrf.mxu0 }
0x13a6   :  { %v1908_v23 = vadd.f32 %v1903_v40, %v1773_v5  ;;  %v1774_v12 = vadd.f32 %v1770_v62, %v1761_v0  ;;  %v4191_v44 = vadd.f32 %v1814_v57, %v1770_v62 }
0x13a7   :  { %v1905_v45 = vpop.f32.mrf.mxu0 }
0x13a8   :  { %v1909_v48 = vadd.f32 %v1905_v45, %v1774_v12  ;;  %v3226_v54 = vmul.f32 -1.442695, %v1908_v23 }
0x13aa   :  { %3465 = vtanh.f32 %v1909_v48  ;;  %v3227_v32 = vmul.f32 -1.442695, %v1909_v48 }
0x13ab   :  { %3467 = vpow2.f32 %v3226_v54 }
0x13b7   :  { %v3466_v56 = vpop.eup %3465 }
0x13b8   :  { %1925 = vrot.lane.b32.xlu0 %v3466_v56, %s3636_s0  ;;  %v3468_v49 = vpop.eup %3467 }
0x13b9   :  { %v1916_v18 = vadd.f32 1.0, %v3468_v49 }
0x13bb   :  { %3469 = vrcp.f32 %v1916_v18 }
0x13c8   :  { %v3470_v16 = vpop.eup %3469 }
0x13c9   :  { %v1923_v22 = vmul.f32 0.0, %v3470_v16 }
0x142a   :  { %v1926_v60 = vpop.permute.xlu0 %1925 }
0x142b   :  { %v1928_v47 = vmul.f32 %v3470_v16, %v1926_v60 }
0x142d   :  { %1930 = vrot.lane.b32.xlu1 %v1928_v47, %s3636_s0 }
0x149f   :  { %v1931_v36 = vpop.permute.xlu1 %1930 }
0x14a0   :  { %v1933_v62 = vadd.f32 %v1931_v36, %v1923_v22 }
0x14a2   :  { %3471 = vtanh.f32 %v1933_v62 }
0x14a3   :  { %3473 = vpow2.f32 %v3227_v32 }
0x14af   :  { %v3472_v41 = vpop.eup %3471 }
0x14b0   :  { %1936 = vrot.lane.b32.xlu0 %v3472_v41, %s3636_s0  ;;  %v3474_v39 = vpop.eup %3473 }
0x14b1   :  { %v1917_v3 = vadd.f32 1.0, %v3474_v39 }
0x14b3   :  { %3475 = vrcp.f32 %v1917_v3 }
0x14c0   :  { %v3476_v51 = vpop.eup %3475 }
0x1522   :  { %v1937_v58 = vpop.permute.xlu0 %1936 }
0x1523   :  { %v1939_v43 = vmul.f32 %v3476_v51, %v1937_v58 }
0x1525   :  { %1940 = vst.msk [vmem:[#allocation3] sm:$0xff] %vm582_vm2, %v1939_v43  ;;  %3228 = vmatmul.mubr.msk.f32.vlgmr.msra.gmra.mxu1 %vm475_vm4, %v1939_v43 }
0x1526   :  { %1941 = vst.msk [vmem:[#allocation3 + $0x38] sm:$0xff] %vm584_vm3, %v1939_v43  ;;  %2232 = vmatpush1.msra.mxu1 %v4049_v15  ;;  %2279 = vmatprep.mubr.f32.mxu1 %v3635_v13 }
0x1527   :  { %2233 = vmatprep.subr.mxu1 %v4051_v21 }
0x1528   :  { %2234 = vmatpush1.msra.mxu1 %v4055_v24 }
0x1529   :  { %2235 = vmatprep.subr.mxu1 %v4062_v28 }
0x152a   :  { %2236 = vmatpush1.msra.mxu1 %v4067_v31 }
0x152b   :  { %2237 = vmatprep.subr.mxu1 %v4074_v34 }
0x152c   :  { %2238 = vmatpush1.msra.mxu1 %v4079_v1 }
0x152d   :  { %2239 = vmatprep.subr.mxu1 %v4086_v2 }
0x152e   :  { %2240 = vmatpush1.msra.mxu1 %v4091_v59 }
0x152f   :  { %2241 = vmatprep.subr.mxu1 %v4098_v4 }
0x1530   :  { %2242 = vmatpush1.msra.mxu1 %v4103_v6 }
0x1531   :  { %2243 = vmatprep.subr.mxu1 %v4110_v50 }
0x1532   :  { %2244 = vmatpush1.msra.mxu1 %v4115_v9 }
0x1533   :  { %2245 = vmatprep.subr.mxu1 %v4122_v53 }
0x1534   :  { %2246 = vmatpush1.msra.mxu1 %v4127_v11 }
0x1535   :  { %2483 = vmatprep.subr.mxu1 %v4041_v52 }
0x15e5   :  { %v2029_v17 = vpop.f32.mrf.mxu1 }
0x15e6   :  { %v2034_v30 = vadd.f32 %v2029_v17, %v4181_v27 }
0x15e7   :  { %v2031_v25 = vpop.f32.mrf.mxu1 }
0x15e8   :  { %v2035_v33 = vadd.f32 %v2031_v25, %v4185_v35  ;;  %v3229_v46 = vmul.f32 -1.442695, %v2034_v30 }
0x15ea   :  { %3477 = vtanh.f32 %v2035_v33  ;;  %v3230_v35 = vmul.f32 -1.442695, %v2035_v33 }
0x15eb   :  { %3479 = vpow2.f32 %v3229_v46 }
0x15f7   :  { %v3478_v42 = vpop.eup %3477 }
0x15f8   :  { %2051 = vrot.lane.b32.xlu1 %v3478_v42, %s3636_s0  ;;  %v3480_v20 = vpop.eup %3479 }
0x15f9   :  { %v2042_v55 = vadd.f32 1.0, %v3480_v20 }
0x15fb   :  { %3481 = vrcp.f32 %v2042_v55 }
0x1608   :  { %v3482_v57 = vpop.eup %3481 }
0x1609   :  { %v2049_v40 = vmul.f32 %v3482_v57, %v1933_v62 }
0x166a   :  { %v2052_v0 = vpop.permute.xlu1 %2051 }
0x166b   :  { %v2054_v5 = vmul.f32 %v3482_v57, %v2052_v0 }
0x166d   :  { %2056 = vrot.lane.b32.xlu0 %v2054_v5, %s3636_s0 }
0x16df   :  { %v2057_v23 = vpop.permute.xlu0 %2056 }
0x16e0   :  { %v2059_v27 = vadd.f32 %v2057_v23, %v2049_v40 }
0x16e2   :  { %3483 = vtanh.f32 %v2059_v27 }
0x16e3   :  { %3485 = vpow2.f32 %v3230_v35 }
0x16ef   :  { %v3484_v12 = vpop.eup %3483 }
0x16f0   :  { %2062 = vrot.lane.b32.xlu1 %v3484_v12, %s3636_s0  ;;  %v3486_v45 = vpop.eup %3485 }
0x16f1   :  { %v2043_v48 = vadd.f32 1.0, %v3486_v45 }
0x16f3   :  { %3487 = vrcp.f32 %v2043_v48 }
0x1700   :  { %v3488_v56 = vpop.eup %3487 }
0x1762   :  { %v2063_v54 = vpop.permute.xlu1 %2062 }
0x1763   :  { %v2065_v49 = vmul.f32 %v3488_v56, %v2063_v54 }
0x1765   :  { %2066 = vst.msk [vmem:[#allocation3 + $0x8] sm:$0xff] %vm582_vm2, %v2065_v49  ;;  %3231 = vmatmul.mubr.msk.f32.vlgmr.msra.gmra.mxu0 %vm475_vm4, %v2065_v49 }
0x1766   :  { %2067 = vst.msk [vmem:[#allocation3 + $0x30] sm:$0xff] %vm584_vm3, %v2065_v49  ;;  %2358 = vmatpush1.msra.mxu0 %v4049_v15  ;;  %2405 = vmatprep.mubr.f32.mxu0 %v3635_v13 }
0x1767   :  { %2359 = vmatprep.subr.mxu0 %v4051_v21 }
0x1768   :  { %2360 = vmatpush1.msra.mxu0 %v4055_v24 }
0x1769   :  { %2361 = vmatprep.subr.mxu0 %v4062_v28 }
0x176a   :  { %2362 = vmatpush1.msra.mxu0 %v4067_v31 }
0x176b   :  { %2363 = vmatprep.subr.mxu0 %v4074_v34 }
0x176c   :  { %2364 = vmatpush1.msra.mxu0 %v4079_v1 }
0x176d   :  { %2365 = vmatprep.subr.mxu0 %v4086_v2 }
0x176e   :  { %2366 = vmatpush1.msra.mxu0 %v4091_v59 }
0x176f   :  { %2367 = vmatprep.subr.mxu0 %v4098_v4 }
0x1770   :  { %2368 = vmatpush1.msra.mxu0 %v4103_v6 }
0x1771   :  { %2369 = vmatprep.subr.mxu0 %v4110_v50 }
0x1772   :  { %2370 = vmatpush1.msra.mxu0 %v4115_v9 }
0x1773   :  { %2371 = vmatprep.subr.mxu0 %v4122_v53 }
0x1774   :  { %2372 = vmatpush1.msra.mxu0 %v4127_v11 }
0x1775   :  { %2609 = vmatprep.subr.mxu0 %v4041_v52 }
0x1825   :  { %v2155_v18 = vpop.f32.mrf.mxu0 }
0x1826   :  { %v2160_v16 = vadd.f32 %v2155_v18, %v4173_v19 }
0x1827   :  { %v2157_v60 = vpop.f32.mrf.mxu0 }
0x1828   :  { %v2161_v47 = vadd.f32 %v2157_v60, %v4177_v10  ;;  %v3232_v36 = vmul.f32 -1.442695, %v2160_v16 }
0x182a   :  { %3489 = vtanh.f32 %v2161_v47  ;;  %v3233_v10 = vmul.f32 -1.442695, %v2161_v47 }
0x182b   :  { %3491 = vpow2.f32 %v3232_v36 }
0x1837   :  { %v3490_v22 = vpop.eup %3489 }
0x1838   :  { %2177 = vrot.lane.b32.xlu0 %v3490_v22, %s3636_s0  ;;  %v3492_v62 = vpop.eup %3491 }
0x1839   :  { %v2168_v41 = vadd.f32 1.0, %v3492_v62 }
0x183b   :  { %3493 = vrcp.f32 %v2168_v41 }
0x1848   :  { %v3494_v32 = vpop.eup %3493 }
0x1849   :  { %v2175_v52 = vmul.f32 %v3494_v32, %v2059_v27 }
0x18aa   :  { %v2178_v39 = vpop.permute.xlu0 %2177 }
0x18ab   :  { %v2180_v3 = vmul.f32 %v3494_v32, %v2178_v39 }
0x18ad   :  { %2182 = vrot.lane.b32.xlu1 %v2180_v3, %s3636_s0 }
0x191f   :  { %v2183_v51 = vpop.permute.xlu1 %2182 }
0x1920   :  { %v2185_v19 = vadd.f32 %v2183_v51, %v2175_v52 }
0x1922   :  { %3495 = vtanh.f32 %v2185_v19 }
0x1923   :  { %3497 = vpow2.f32 %v3233_v10 }
0x192f   :  { %v3496_v58 = vpop.eup %3495 }
0x1930   :  { %2188 = vrot.lane.b32.xlu0 %v3496_v58, %s3636_s0  ;;  %v3498_v43 = vpop.eup %3497 }
0x1931   :  { %v2169_v17 = vadd.f32 1.0, %v3498_v43 }
0x1933   :  { %3499 = vrcp.f32 %v2169_v17 }
0x1940   :  { %v3500_v30 = vpop.eup %3499 }
0x19a2   :  { %v2189_v25 = vpop.permute.xlu0 %2188 }
0x19a3   :  { %v2191_v33 = vmul.f32 %v3500_v30, %v2189_v25 }
0x19a5   :  { %2192 = vst.msk [vmem:[#allocation3 + $0x10] sm:$0xff] %vm582_vm2, %v2191_v33  ;;  %3234 = vmatmul.mubr.msk.f32.vlgmr.msra.gmra.mxu1 %vm475_vm4, %v2191_v33 }
0x19a6   :  { %2193 = vst.msk [vmem:[#allocation3 + $0x28] sm:$0xff] %vm584_vm3, %v2191_v33  ;;  %2484 = vmatpush1.msra.mxu1 %v4049_v15  ;;  %2531 = vmatprep.mubr.f32.mxu1 %v3635_v13 }
0x19a7   :  { %2485 = vmatprep.subr.mxu1 %v4051_v21 }
0x19a8   :  { %2486 = vmatpush1.msra.mxu1 %v4055_v24 }
0x19a9   :  { %2487 = vmatprep.subr.mxu1 %v4062_v28 }
0x19aa   :  { %2488 = vmatpush1.msra.mxu1 %v4067_v31 }
0x19ab   :  { %2489 = vmatprep.subr.mxu1 %v4074_v34 }
0x19ac   :  { %2490 = vmatpush1.msra.mxu1 %v4079_v1 }
0x19ad   :  { %2491 = vmatprep.subr.mxu1 %v4086_v2 }
0x19ae   :  { %2492 = vmatpush1.msra.mxu1 %v4091_v59 }
0x19af   :  { %2493 = vmatprep.subr.mxu1 %v4098_v4 }
0x19b0   :  { %2494 = vmatpush1.msra.mxu1 %v4103_v6 }
0x19b1   :  { %2495 = vmatprep.subr.mxu1 %v4110_v50 }
0x19b2   :  { %2496 = vmatpush1.msra.mxu1 %v4115_v9 }
0x19b3   :  { %2497 = vmatprep.subr.mxu1 %v4122_v53 }
0x19b4   :  { %2498 = vmatpush1.msra.mxu1 %v4127_v11 }
0x1a65   :  { %v2281_v42 = vpop.f32.mrf.mxu1 }
0x1a66   :  { %v2286_v46 = vadd.f32 %v2281_v42, %v4165_v61 }
0x1a67   :  { %v2283_v20 = vpop.f32.mrf.mxu1 }
0x1a68   :  { %v2287_v55 = vadd.f32 %v2283_v20, %v4169_v38  ;;  %v3235_v0 = vmul.f32 -1.442695, %v2286_v46 }
0x1a6a   :  { %3501 = vtanh.f32 %v2287_v55  ;;  %v3236_v38 = vmul.f32 -1.442695, %v2287_v55 }
0x1a6b   :  { %3503 = vpow2.f32 %v3235_v0 }
0x1a77   :  { %v3502_v57 = vpop.eup %3501 }
0x1a78   :  { %2303 = vrot.lane.b32.xlu1 %v3502_v57, %s3636_s0  ;;  %v3504_v5 = vpop.eup %3503 }
0x1a79   :  { %v2294_v40 = vadd.f32 1.0, %v3504_v5 }
0x1a7b   :  { %3505 = vrcp.f32 %v2294_v40 }
0x1a88   :  { %v3506_v23 = vpop.eup %3505 }
0x1a89   :  { %v2301_v35 = vmul.f32 %v3506_v23, %v2185_v19 }
0x1aea   :  { %v2304_v27 = vpop.permute.xlu1 %2303 }
0x1aeb   :  { %v2306_v12 = vmul.f32 %v3506_v23, %v2304_v27 }
0x1aed   :  { %2308 = vrot.lane.b32.xlu0 %v2306_v12, %s3636_s0 }
0x1b5f   :  { %v2309_v45 = vpop.permute.xlu0 %2308 }
0x1b60   :  { %v2311_v61 = vadd.f32 %v2309_v45, %v2301_v35 }
0x1b62   :  { %3507 = vtanh.f32 %v2311_v61 }
0x1b63   :  { %3509 = vpow2.f32 %v3236_v38 }
0x1b6f   :  { %v3508_v48 = vpop.eup %3507 }
0x1b70   :  { %2314 = vrot.lane.b32.xlu1 %v3508_v48, %s3636_s0  ;;  %v3510_v56 = vpop.eup %3509 }
0x1b71   :  { %v2295_v54 = vadd.f32 1.0, %v3510_v56 }
0x1b73   :  { %3511 = vrcp.f32 %v2295_v54 }
0x1b80   :  { %v3512_v49 = vpop.eup %3511 }
0x1be2   :  { %v2315_v18 = vpop.permute.xlu1 %2314 }
0x1be3   :  { %v2317_v16 = vmul.f32 %v3512_v49, %v2315_v18 }
0x1be5   :  { %2318 = vst.msk [vmem:[#allocation3 + $0x18] sm:$0xff] %vm582_vm2, %v2317_v16  ;;  %3237 = vmatmul.mubr.msk.f32.vlgmr.msra.gmra.mxu0 %vm475_vm4, %v2317_v16 }
0x1be6   :  { %2319 = vst.msk [vmem:[#allocation3 + $0x20] sm:$0xff] %vm584_vm3, %v2317_v16  ;;  %2610 = vmatpush1.msra.mxu0 %v4049_v15  ;;  %2657 = vmatprep.mubr.f32.mxu0 %v3635_v13 }
0x1be7   :  { %2611 = vmatprep.subr.mxu0 %v4051_v21 }
0x1be8   :  { %2612 = vmatpush1.msra.mxu0 %v4055_v24 }
0x1be9   :  { %2613 = vmatprep.subr.mxu0 %v4062_v28 }
0x1bea   :  { %2614 = vmatpush1.msra.mxu0 %v4067_v31 }
0x1beb   :  { %2615 = vmatprep.subr.mxu0 %v4074_v34 }
0x1bec   :  { %2616 = vmatpush1.msra.mxu0 %v4079_v1 }
0x1bed   :  { %2617 = vmatprep.subr.mxu0 %v4086_v2 }
0x1bee   :  { %2618 = vmatpush1.msra.mxu0 %v4091_v59 }
0x1bef   :  { %2619 = vmatprep.subr.mxu0 %v4098_v4 }
0x1bf0   :  { %2620 = vmatpush1.msra.mxu0 %v4103_v6 }
0x1bf1   :  { %2621 = vmatprep.subr.mxu0 %v4110_v50 }
0x1bf2   :  { %2622 = vmatpush1.msra.mxu0 %v4115_v9 }
0x1bf3   :  { %2623 = vmatprep.subr.mxu0 %v4122_v53 }
0x1bf4   :  { %2624 = vmatpush1.msra.mxu0 %v4127_v11 }
0x1ca5   :  { %v2407_v15 = vpop.f32.mrf.mxu0 }
0x1ca6   :  { %v2412_v21 = vadd.f32 %v2407_v15, %v4167_v37 }
0x1ca7   :  { %v2409_v60 = vpop.f32.mrf.mxu0 }
0x1ca8   :  { %v2413_v47 = vadd.f32 %v2409_v60, %v4171_v63  ;;  %v3238_v36 = vmul.f32 -1.442695, %v2412_v21 }
0x1caa   :  { %3513 = vtanh.f32 %v2413_v47  ;;  %v3239_v63 = vmul.f32 -1.442695, %v2413_v47 }
0x1cab   :  { %3515 = vpow2.f32 %v3238_v36 }
0x1cb7   :  { %v3514_v22 = vpop.eup %3513 }
0x1cb8   :  { %2429 = vrot.lane.b32.xlu0 %v3514_v22, %s3636_s0  ;;  %v3516_v62 = vpop.eup %3515 }
0x1cb9   :  { %v2420_v41 = vadd.f32 1.0, %v3516_v62  ;;  %v2715_v62 = vld [vmem:[#allocation5 + $0x258] sm:$0xff] }
0x1cba   :  { %2735 = vmatprep.subr.mxu1 %v2715_v62 }
0x1cbb   :  { %3517 = vrcp.f32 %v2420_v41  ;;  %v2714_v41 = vld [vmem:[#allocation5 + $0x250] sm:$0xff] }
0x1cc8   :  { %v3518_v32 = vpop.eup %3517 }
0x1cc9   :  { %v2427_v52 = vmul.f32 %v3518_v32, %v2311_v61 }
0x1d2a   :  { %v2430_v39 = vpop.permute.xlu0 %2429 }
0x1d2b   :  { %v2432_v3 = vmul.f32 %v3518_v32, %v2430_v39 }
0x1d2d   :  { %2434 = vrot.lane.b32.xlu1 %v2432_v3, %s3636_s0 }
0x1d9f   :  { %v2435_v51 = vpop.permute.xlu1 %2434 }
0x1da0   :  { %v2437_v37 = vadd.f32 %v2435_v51, %v2427_v52 }
0x1da2   :  { %3519 = vtanh.f32 %v2437_v37 }
0x1da3   :  { %3521 = vpow2.f32 %v3239_v63  ;;  %v2839_v63 = vld [vmem:[#allocation5 + $0x2d0] sm:$0xff] }
0x1da4   :  { %3299 = vmatprep.subr.mxu0 %v2839_v63 }
0x1daf   :  { %v3520_v19 = vpop.eup %3519 }
0x1db0   :  { %2440 = vrot.lane.b32.xlu0 %v3520_v19, %s3636_s0  ;;  %v3522_v58 = vpop.eup %3521 }
0x1db1   :  { %v2421_v10 = vadd.f32 1.0, %v3522_v58  ;;  %v2838_v58 = vld [vmem:[#allocation5 + $0x2c0] sm:$0xff] }
0x1db3   :  { %3523 = vrcp.f32 %v2421_v10 }
0x1dc0   :  { %v3524_v43 = vpop.eup %3523 }
0x1e22   :  { %v2441_v17 = vpop.permute.xlu0 %2440 }
0x1e23   :  { %v2443_v30 = vmul.f32 %v3524_v43, %v2441_v17  ;;  %v2836_v17 = vld [vmem:[#allocation5 + $0x2a0] sm:$0xff] }
0x1e25   :  { %2444 = vst.msk [vmem:[#allocation3 + $0x20] sm:$0xff] %vm582_vm2, %v2443_v30  ;;  %3240 = vmatmul.mubr.msk.f32.vlgmr.msra.gmra.mxu1 %vm475_vm4, %v2443_v30 }
0x1e26   :  { %2445 = vst.msk [vmem:[#allocation3 + $0x18] sm:$0xff] %vm584_vm3, %v2443_v30  ;;  %2783 = vmatprep.mubr.f32.mxu1 %v3635_v13  ;;  %2736 = vmatpush1.msra.mxu1 %v2714_v41  ;;  %v2835_v30 = vld [vmem:[#allocation5 + $0x290] sm:$0xff] }
0x1ee5   :  { %v2533_v25 = vpop.f32.mrf.mxu1 }
0x1ee6   :  { %v2538_v33 = vadd.f32 %v2533_v25, %v4175_v29  ;;  %v2834_v25 = vld [vmem:[#allocation5 + $0x280] sm:$0xff] }
0x1ee7   :  { %v2535_v42 = vpop.f32.mrf.mxu1 }
0x1ee8   :  { %v2539_v46 = vadd.f32 %v2535_v42, %v4179_v14  ;;  %v3241_v55 = vmul.f32 -1.442695, %v2538_v33  ;;  %v2833_v33 = vld [vmem:[#allocation5 + $0x270] sm:$0xff]  ;;  %v2832_v42 = vld [vmem:[#allocation5 + $0x260] sm:$0xff] }
0x1eea   :  { %3525 = vtanh.f32 %v2539_v46  ;;  %v3242_v14 = vmul.f32 -1.442695, %v2539_v46 }
0x1eeb   :  { %3527 = vpow2.f32 %v3241_v55 }
0x1ef7   :  { %v3526_v20 = vpop.eup %3525 }
0x1ef8   :  { %2555 = vrot.lane.b32.xlu1 %v3526_v20, %s3636_s0  ;;  %v3528_v57 = vpop.eup %3527 }
0x1ef9   :  { %v2546_v0 = vadd.f32 1.0, %v3528_v57 }
0x1efb   :  { %3529 = vrcp.f32 %v2546_v0 }
0x1f08   :  { %v3530_v5 = vpop.eup %3529 }
0x1f09   :  { %v2553_v13 = vmul.f32 %v3530_v5, %v2437_v37 }
0x1f6a   :  { %v2556_v40 = vpop.permute.xlu1 %2555 }
0x1f6b   :  { %v2558_v23 = vmul.f32 %v3530_v5, %v2556_v40 }
0x1f6d   :  { %2560 = vrot.lane.b32.xlu0 %v2558_v23, %s3636_s0 }
0x1fdf   :  { %v2561_v27 = vpop.permute.xlu0 %2560 }
0x1fe0   :  { %v2563_v29 = vadd.f32 %v2561_v27, %v2553_v13 }
0x1fe2   :  { %3531 = vtanh.f32 %v2563_v29 }
0x1fe3   :  { %3533 = vpow2.f32 %v3242_v14 }
0x1fef   :  { %v3532_v12 = vpop.eup %3531 }
0x1ff0   :  { %2566 = vrot.lane.b32.xlu1 %v3532_v12, %s3636_s0  ;;  %v3534_v35 = vpop.eup %3533  ;;  %v2828_v12 = vld [vmem:[#allocation3 + $0x20] sm:$0xff] }
0x1ff1   :  { %v2547_v45 = vadd.f32 1.0, %v3534_v35 }
0x1ff3   :  { %3535 = vrcp.f32 %v2547_v45 }
0x2000   :  { %v3536_v61 = vpop.eup %3535 }
0x2062   :  { %v2567_v48 = vpop.permute.xlu1 %2566 }
0x2063   :  { %v2569_v38 = vmul.f32 %v3536_v61, %v2567_v48  ;;  %v2979_v61 = vld [vmem:[#allocation5 + $0x300] sm:$0xff]  ;;  %v2978_v48 = vld [vmem:[#allocation5 + $0x2f0] sm:$0xff] }
0x2065   :  { %2570 = vst.msk [vmem:[#allocation3 + $0x28] sm:$0xff] %vm582_vm2, %v2569_v38  ;;  %3243 = vmatmul.mubr.msk.f32.vlgmr.msra.gmra.mxu0 %vm475_vm4, %v2569_v38 }
0x2066   :  { %2571 = vst.msk [vmem:[#allocation3 + $0x10] sm:$0xff] %vm584_vm3, %v2569_v38  ;;  %3300 = vmatpush3.msra.mxu0 %v2839_v63  ;;  %v2840_v38 = vld [vmem:[#allocation5 + $0x2e0] ss:$0 sm:$0xff] }
0x2067   :  { %3301 = vmatprep.subr.mxu0 %v2838_v58 }
0x2068   :  { %3302 = vmatpush3.msra.mxu0 %v2838_v58 }
0x206c   :  { %v2829_v14 = vld [vmem:[#allocation3 + $0x28] sm:$0xff] }
0x206d   :  { %v2826_v27 = vld [vmem:[#allocation3 + $0x10] sm:$0xff] }
0x2125   :  { %v2659_v56 = vpop.f32.mrf.mxu0 }
0x2126   :  { %v2664_v54 = vadd.f32 %v2659_v56, %v4183_v26  ;;  %v2713_v26 = vld [vmem:[#allocation5 + $0x248] sm:$0xff] }
0x2127   :  { %v2661_v49 = vpop.f32.mrf.mxu0  ;;  %2737 = vmatprep.subr.mxu1 %v2713_v26 }
0x2128   :  { %v2665_v18 = vadd.f32 %v2661_v49, %v4187_v8  ;;  %v3244_v15 = vmul.f32 -1.442695, %v2664_v54  ;;  %2738 = vmatpush1.msra.mxu1 %v4055_v24 }
0x2129   :  { %2739 = vmatprep.subr.mxu1 %v4062_v28 }
0x212a   :  { %3537 = vtanh.f32 %v2665_v18  ;;  %2740 = vmatpush1.msra.mxu1 %v4067_v31 }
0x212b   :  { %3539 = vpow2.f32 %v3244_v15  ;;  %2741 = vmatprep.subr.mxu1 %v4074_v34 }
0x212c   :  { %2742 = vmatpush1.msra.mxu1 %v4079_v1  ;;  %v3245_v1 = vmul.f32 -1.442695, %v2665_v18 }
0x212d   :  { %2743 = vmatprep.subr.mxu1 %v4086_v2 }
0x212e   :  { %2744 = vmatpush1.msra.mxu1 %v4091_v59 }
0x212f   :  { %2745 = vmatprep.subr.mxu1 %v4098_v4 }
0x2130   :  { %2746 = vmatpush1.msra.mxu1 %v4103_v6 }
0x2131   :  { %2747 = vmatprep.subr.mxu1 %v4110_v50 }
0x2132   :  { %2748 = vmatpush1.msra.mxu1 %v4115_v9 }
0x2133   :  { %2749 = vmatprep.subr.mxu1 %v4122_v53 }
0x2134   :  { %2750 = vmatpush1.msra.mxu1 %v4127_v11 }
0x2135   :  { %3327 = vmatprep.subr.mxu1 %v2979_v61 }
0x2137   :  { %v3538_v16 = vpop.eup %3537 }
0x2138   :  { %2681 = vrot.lane.b32.xlu0 %v3538_v16, %s3636_s0  ;;  %v3540_v21 = vpop.eup %3539 }
0x2139   :  { %v2672_v60 = vadd.f32 1.0, %v3540_v21 }
0x213b   :  { %3541 = vrcp.f32 %v2672_v60 }
0x2148   :  { %v3542_v47 = vpop.eup %3541 }
0x2149   :  { %v2679_v24 = vmul.f32 %v3542_v47, %v2563_v29  ;;  %v2827_v29 = vld [vmem:[#allocation3 + $0x18] sm:$0xff] }
0x21aa   :  { %v2682_v22 = vpop.permute.xlu0 %2681 }
0x21ab   :  { %v2684_v36 = vmul.f32 %v3542_v47, %v2682_v22 }
0x21ad   :  { %2686 = vrot.lane.b32.xlu1 %v2684_v36, %s3636_s0 }
0x221f   :  { %v2687_v28 = vpop.permute.xlu1 %2686 }
0x2220   :  { %v2689_v31 = vadd.f32 %v2687_v28, %v2679_v24 }
0x2222   :  { %3543 = vtanh.f32 %v2689_v31 }
0x2223   :  { %3545 = vpow2.f32 %v3245_v1 }
0x222f   :  { %v3544_v34 = vpop.eup %3543 }
0x2230   :  { %2692 = vrot.lane.b32.xlu0 %v3544_v34, %s3636_s0  ;;  %v3546_v2 = vpop.eup %3545 }
0x2231   :  { %v2673_v59 = vadd.f32 1.0, %v3546_v2 }
0x2233   :  { %3547 = vrcp.f32 %v2673_v59 }
0x2240   :  { %v3548_v4 = vpop.eup %3547 }
0x22a2   :  { %v2693_v6 = vpop.permute.xlu0 %2692 }
0x22a3   :  { %v2695_v50 = vmul.f32 %v3548_v4, %v2693_v6 }
0x22a5   :  { %2696 = vst.msk [vmem:[#allocation3 + $0x30] sm:$0xff] %vm582_vm2, %v2695_v50  ;;  %3246 = vmatmul.mubr.msk.f32.vlgmr.msra.gmra.mxu1 %vm475_vm4, %v2695_v50 }
0x22a6   :  { %2697 = vst.msk [vmem:[#allocation3 + $0x8] sm:$0xff] %vm584_vm3, %v2695_v50  ;;  %3328 = vmatpush3.msra.mxu1 %v2979_v61 }
0x22a7   :  { %3329 = vmatprep.subr.mxu1 %v2978_v48 }
0x22a8   :  { %3330 = vmatpush3.msra.mxu1 %v2978_v48 }
0x22ac   :  { %v2830_v35 = vld [vmem:[#allocation3 + $0x30] sm:$0xff] }
0x22ad   :  { %v2825_v13 = vld [vmem:[#allocation3 + $0x8] sm:$0xff] }
0x2365   :  { %v2785_v9 = vpop.f32.mrf.mxu1 }
0x2366   :  { %v2790_v53 = vadd.f32 %v2785_v9, %v4189_v7  ;;  %v2837_v7 = vld [vmem:[#allocation5 + $0x2b0] sm:$0xff] }
0x2367   :  { %v2787_v11 = vpop.f32.mrf.mxu1  ;;  %3303 = vmatprep.subr.mxu0 %v2837_v7  ;;  %v2980_v9 = vld [vmem:[#allocation5 + $0x310] ss:$0 sm:$0xff] }
0x2368   :  { %v2791_v8 = vadd.f32 %v2787_v11, %v4191_v44  ;;  %v3247_v39 = vmul.f32 -1.442695, %v2790_v53  ;;  %3304 = vmatpush3.msra.mxu0 %v2837_v7 }
0x2369   :  { %3305 = vmatprep.subr.mxu0 %v2836_v17 }
0x236a   :  { %3549 = vtanh.f32 %v2791_v8  ;;  %3306 = vmatpush3.msra.mxu0 %v2836_v17  ;;  %v3248_v20 = vmul.f32 -1.442695, %v2791_v8 }
0x236b   :  { %3551 = vpow2.f32 %v3247_v39  ;;  %3307 = vmatprep.subr.mxu0 %v2835_v30 }
0x236c   :  { %3308 = vmatpush3.msra.mxu0 %v2835_v30 }
0x236d   :  { %3309 = vmatprep.subr.mxu0 %v2834_v25 }
0x236e   :  { %3310 = vmatpush3.msra.mxu0 %v2834_v25 }
0x236f   :  { %3311 = vmatprep.subr.mxu0 %v2833_v33 }
0x2370   :  { %3312 = vmatpush3.msra.mxu0 %v2833_v33 }
0x2371   :  { %3313 = vmatprep.subr.mxu0 %v2832_v42 }
0x2372   :  { %3314 = vmatpush3.msra.mxu0 %v2832_v42 }
0x2377   :  { %v3550_v32 = vpop.eup %3549 }
0x2378   :  { %2807 = vrot.lane.b32.xlu1 %v3550_v32, %s3636_s0  ;;  %v3552_v3 = vpop.eup %3551 }
0x2379   :  { %v2798_v52 = vadd.f32 1.0, %v3552_v3 }
0x237b   :  { %3553 = vrcp.f32 %v2798_v52 }
0x2388   :  { %v3554_v51 = vpop.eup %3553 }
0x2389   :  { %v2805_v44 = vmul.f32 %v3554_v51, %v2689_v31 }
0x23ea   :  { %v2808_v37 = vpop.permute.xlu1 %2807 }
0x23eb   :  { %v2810_v19 = vmul.f32 %v3554_v51, %v2808_v37 }
0x23ed   :  { %2812 = vrot.lane.b32.xlu0 %v2810_v19, %s3636_s0 }
0x245f   :  { %v2813_v10 = vpop.permute.xlu0 %2812 }
0x2460   :  { %v2815_v43 = vadd.f32 %v2813_v10, %v2805_v44 }
0x2462   :  { %3555 = vtanh.f32 %v2815_v43 }
0x2463   :  { %3557 = vpow2.f32 %v3248_v20 }
0x246f   :  { %v3556_v46 = vpop.eup %3555 }
0x2470   :  { %2818 = vrot.lane.b32.xlu1 %v3556_v46, %s3636_s0  ;;  %v3558_v55 = vpop.eup %3557 }
0x2471   :  { %v2799_v57 = vadd.f32 1.0, %v3558_v55 }
0x2473   :  { %3559 = vrcp.f32 %v2799_v57 }
0x2480   :  { %v3560_v0 = vpop.eup %3559 }
0x24e2   :  { %v2819_v5 = vpop.permute.xlu1 %2818 }
0x24e3   :  { %v2821_v40 = vmul.f32 %v3560_v0, %v2819_v5 }
0x24e5   :  { %2822 = vst.msk [vmem:[#allocation3 + $0x38] sm:$0xff] %vm582_vm2, %v2821_v40 }
0x24e6   :  { %2823 = vst.msk [vmem:[#allocation3] sm:$0xff] %vm584_vm3, %v2821_v40 }
0x24ec   :  { %v2831_v45 = vld [vmem:[#allocation3 + $0x38] sm:$0xff] }
0x24ed   :  { %v2824_v23 = vld [vmem:[#allocation3] sm:$0xff] }
0x24ee   :  { %3315 = vmatprep.mubr.msk.f32.mxu0 %vm475_vm4, %v2824_v23 }
0x24ef   :  { %3316 = vmatmul.mubr.msk.f32.vlgmr.msra.gmra.mxu0 %vm475_vm4, %v2825_v13 }
0x24f0   :  { %3318 = vmatprep.mubr.msk.f32.mxu0 %vm475_vm4, %v2826_v27 }
0x24f3   :  { %3319 = vmatmul.mubr.msk.f32.gmra.mxu0 %vm475_vm4, %v2827_v29 }
0x24f4   :  { %3321 = vmatprep.mubr.msk.f32.mxu0 %vm475_vm4, %v2828_v12 }
0x24f7   :  { %3322 = vmatmul.mubr.msk.f32.gmra.mxu0 %vm475_vm4, %v2829_v14 }
0x24f8   :  { %3324 = vmatprep.mubr.msk.f32.mxu0 %vm475_vm4, %v2830_v35 }
0x24fb   :  { %3325 = vmatmul.mubr.msk.f32.gmra.mxu0 %vm475_vm4, %v2831_v45 }
0x25af   :  { %v3317_v56 = vpop.f32.mrf.mxu0 }
0x25b0   :  { %v2937_v54 = vadd.f32 %v3317_v56, %v2840_v38 }
0x25b1   :  { %v2931_v49 = vpop.f32.mrf.mxu0 }
0x25b2   :  { %v2932_v18 = vadd.f32 %v2931_v49, %v2840_v38 }
0x25b3   :  { %v3320_v16 = vpop.f32.mrf.mxu0 }
0x25b4   :  { %3561 = vtanh.f32 %v2932_v18  ;;  %v2947_v15 = vadd.f32 %v3320_v16, %v2840_v38 }
0x25b5   :  { %3563 = vtanh.f32 %v2937_v54  ;;  %v2941_v21 = vpop.f32.mrf.mxu0 }
0x25b6   :  { %v2942_v60 = vadd.f32 %v2941_v21, %v2840_v38 }
0x25b7   :  { %v3323_v47 = vpop.f32.mrf.mxu0 }
0x25b8   :  { %3565 = vtanh.f32 %v2942_v60  ;;  %v2957_v22 = vadd.f32 %v3323_v47, %v2840_v38 }
0x25b9   :  { %3567 = vtanh.f32 %v2947_v15  ;;  %v2951_v36 = vpop.f32.mrf.mxu0 }
0x25ba   :  { %v2952_v62 = vadd.f32 %v2951_v36, %v2840_v38 }
0x25bb   :  { %v3326_v41 = vpop.f32.mrf.mxu0 }
0x25bc   :  { %3569 = vtanh.f32 %v2952_v62  ;;  %v2967_v26 = vadd.f32 %v3326_v41, %v2840_v38 }
0x25bd   :  { %3571 = vtanh.f32 %v2957_v22  ;;  %v2961_v24 = vpop.f32.mrf.mxu0 }
0x25be   :  { %v2962_v28 = vadd.f32 %v2961_v24, %v2840_v38 }
0x25c0   :  { %3573 = vtanh.f32 %v2962_v28 }
0x25c1   :  { %v3562_v31 = vpop.eup %3561  ;;  %3575 = vtanh.f32 %v2967_v26 }
0x25c2   :  { %v3564_v34 = vpop.eup %3563  ;;  %3331 = vmatprep.mubr.msk.f32.mxu1 %vm141_vm0, %v3562_v31 }
0x25c3   :  { %3332 = vmatmul.mubr.msk.f32.vlgmr.msra.gmra.mxu1 %vm141_vm0, %v3564_v34 }
0x25c5   :  { %v3566_v1 = vpop.eup %3565 }
0x25c6   :  { %v3568_v2 = vpop.eup %3567  ;;  %3334 = vmatprep.mubr.msk.f32.mxu1 %vm141_vm0, %v3566_v1 }
0x25c7   :  { %3335 = vmatmul.mubr.msk.f32.gmra.mxu1 %vm141_vm0, %v3568_v2 }
0x25c9   :  { %v3570_v59 = vpop.eup %3569 }
0x25ca   :  { %v3572_v4 = vpop.eup %3571  ;;  %3337 = vmatprep.mubr.msk.f32.mxu1 %vm141_vm0, %v3570_v59 }
0x25cb   :  { %3338 = vmatmul.mubr.msk.f32.gmra.mxu1 %vm141_vm0, %v3572_v4 }
0x25cd   :  { %v3574_v6 = vpop.eup %3573 }
0x25ce   :  { %v3576_v50 = vpop.eup %3575  ;;  %3340 = vmatprep.mubr.msk.f32.mxu1 %vm141_vm0, %v3574_v6 }
0x25cf   :  { %3341 = vmatmul.mubr.msk.f32.gmra.mxu1 %vm141_vm0, %v3576_v50 }
0x2683   :  { %v3333_v53 = vpop.f32.mrf.mxu1 }
0x2684   :  { %v3077_v11 = vadd.f32 %v3333_v53, %v2980_v9 }
0x2685   :  { %v3071_v8 = vpop.f32.mrf.mxu1 }
0x2686   :  { %v3266_v32 = vmul.f32 -1.442695, %v3077_v11  ;;  %v3072_v39 = vadd.f32 %v3071_v8, %v2980_v9 }
0x2687   :  { %v3336_v3 = vpop.f32.mrf.mxu1 }
0x2688   :  { %3577 = vpow2.f32 %v3266_v32  ;;  %v3265_v52 = vmul.f32 -1.442695, %v3072_v39  ;;  %v3087_v51 = vadd.f32 %v3336_v3, %v2980_v9 }
0x2689   :  { %v3081_v37 = vpop.f32.mrf.mxu1 }
0x268a   :  { %3579 = vpow2.f32 %v3265_v52  ;;  %v3268_v19 = vmul.f32 -1.442695, %v3087_v51  ;;  %v3082_v63 = vadd.f32 %v3081_v37, %v2980_v9 }
0x268b   :  { %v3339_v58 = vpop.f32.mrf.mxu1 }
0x268c   :  { %3581 = vpow2.f32 %v3268_v19  ;;  %v3267_v7 = vmul.f32 -1.442695, %v3082_v63  ;;  %v3097_v44 = vadd.f32 %v3339_v58, %v2980_v9 }
0x268d   :  { %v3091_v10 = vpop.f32.mrf.mxu1 }
0x268e   :  { %3583 = vpow2.f32 %v3267_v7  ;;  %v3270_v43 = vmul.f32 -1.442695, %v3097_v44  ;;  %v3092_v17 = vadd.f32 %v3091_v10, %v2980_v9 }
0x268f   :  { %v3342_v30 = vpop.f32.mrf.mxu1 }
0x2690   :  { %3585 = vpow2.f32 %v3270_v43  ;;  %v3269_v25 = vmul.f32 -1.442695, %v3092_v17  ;;  %v3107_v33 = vadd.f32 %v3342_v30, %v2980_v9 }
0x2691   :  { %v3101_v42 = vpop.f32.mrf.mxu1 }
0x2692   :  { %3587 = vpow2.f32 %v3269_v25  ;;  %v3272_v46 = vmul.f32 -1.442695, %v3107_v33  ;;  %v3102_v20 = vadd.f32 %v3101_v42, %v2980_v9 }
0x2694   :  { %3589 = vpow2.f32 %v3272_v46  ;;  %v3271_v55 = vmul.f32 -1.442695, %v3102_v20 }
0x2695   :  { %v3578_v57 = vpop.eup %3577 }
0x2696   :  { %v3135_v0 = vadd.f32 1.0, %v3578_v57  ;;  %3591 = vpow2.f32 %v3271_v55 }
0x2697   :  { %v3580_v5 = vpop.eup %3579 }
0x2698   :  { %3593 = vrcp.f32 %v3135_v0  ;;  %v3134_v40 = vadd.f32 1.0, %v3580_v5 }
0x2699   :  { %v3582_v23 = vpop.eup %3581 }
0x269a   :  { %3595 = vrcp.f32 %v3134_v40  ;;  %v3137_v13 = vadd.f32 1.0, %v3582_v23 }
0x269b   :  { %v3584_v27 = vpop.eup %3583 }
0x269c   :  { %3597 = vrcp.f32 %v3137_v13  ;;  %v3136_v29 = vadd.f32 1.0, %v3584_v27 }
0x269d   :  { %v3586_v12 = vpop.eup %3585 }
0x269e   :  { %3599 = vrcp.f32 %v3136_v29  ;;  %v3139_v14 = vadd.f32 1.0, %v3586_v12 }
0x269f   :  { %v3588_v35 = vpop.eup %3587 }
0x26a0   :  { %3601 = vrcp.f32 %v3139_v14  ;;  %v3138_v45 = vadd.f32 1.0, %v3588_v35 }
0x26a1   :  { %v3590_v61 = vpop.eup %3589 }
0x26a2   :  { %3603 = vrcp.f32 %v3138_v45  ;;  %v3141_v48 = vadd.f32 1.0, %v3590_v61 }
0x26a3   :  { %v3592_v38 = vpop.eup %3591 }
0x26a4   :  { %3605 = vrcp.f32 %v3141_v48  ;;  %v3140_v56 = vadd.f32 1.0, %v3592_v38 }
0x26a5   :  { %v3594_v54 = vpop.eup %3593 }
0x26a6   :  { %3159 = vst [vmem:[%s4376_s2 + $0x8] sm:$0xff] %v3594_v54  ;;  %3607 = vrcp.f32 %v3140_v56 }
0x26a7   :  { %v3596_v49 = vpop.eup %3595 }
0x26a8   :  { %3158 = vst [vmem:[%s4376_s2] sm:$0xff] %v3596_v49 }
0x26a9   :  { %v3598_v18 = vpop.eup %3597 }
0x26aa   :  { %3161 = vst [vmem:[%s4376_s2 + $0x18] sm:$0xff] %v3598_v18 }
0x26ab   :  { %v3600_v16 = vpop.eup %3599 }
0x26ac   :  { %3160 = vst [vmem:[%s4376_s2 + $0x10] sm:$0xff] %v3600_v16 }
0x26ad   :  { %v3602_v15 = vpop.eup %3601 }
0x26ae   :  { %3163 = vst [vmem:[%s4376_s2 + $0x28] sm:$0xff] %v3602_v15 }
0x26af   :  { %v3604_v21 = vpop.eup %3603 }
0x26b0   :  { %3162 = vst [vmem:[%s4376_s2 + $0x20] sm:$0xff] %v3604_v21 }
0x26b1   :  { %v3606_v60 = vpop.eup %3605 }
0x26b2   :  { %3165 = vst [vmem:[%s4376_s2 + $0x38] sm:$0xff] %v3606_v60 }
0x26b3   :  { %v3608_v47 = vpop.eup %3607 }
0x26b4   :  { %3164 = vst [vmem:[%s4376_s2 + $0x30] sm:$0xff] %v3608_v47 }
0x26b5   :  { %3170 = vsyncpa [#allocation6], 1 }

</bundles_post_ra>
